<compile_context>
chip_gen: v6e
topology: v6e:2x2x1
jax: 0.10.0
libtpu: 0.0.40
codegen_flags: <defaults>
</compile_context>

<pallas_src>
import math

import numpy as np

import jax
import jax.numpy as jnp
from jax import lax
from jax.experimental import pallas as pl
from jax.experimental.pallas import tpu as pltpu


# ---------------------------------------------------------------------------
# Interior mask over the (H+2)x(W+2) zero-halo frame: 1 on real pixels,
# 0 on the halo ring.  Applied once per conv output so the halo stays zero.
# ---------------------------------------------------------------------------
def _interior_mask(H, W):
    HP, WP = H + 2, W + 2
    m = np.zeros((HP, WP), np.float32)
    m[1:H + 1, 1:W + 1] = 1.0
    return m.reshape(1, HP * WP)


# ---------------------------------------------------------------------------
# Fused kernel: 5 ResBlocks + 4-layer MLP head, one image per grid step.
# ---------------------------------------------------------------------------
def _make_qnet_kernel(n_blocks, C, H, W, GUARD):
    HP, WP = H + 2, W + 2
    HPWP = HP * WP
    taps = [(ky - 1) * WP + (kx - 1) for ky in range(3) for kx in range(3)]

    def kernel(*refs):
        it = iter(refs)
        x_ref = next(it)                       # (1, C, HPWP) halo-padded input
        mask_ref = next(it)                    # (1, HPWP) interior mask
        conv = [next(it) for _ in range(6 * n_blocks)]
        w0p_hbm = next(it)                     # (C, HPWP, 256) in HBM (ANY)
        b0, w1m, b1m, w2m, b2m, w3m, b3m = (next(it) for _ in range(7))
        out_ref = next(it)                     # (1, 1, A)
        pad_ref = next(it)                     # VMEM (C, NB) zero-halo scratch
        col_ref = next(it)                     # VMEM (9*C, HPWP) im2col scratch
        w0p_vmem = next(it)                    # VMEM (C, HPWP, 256)
        dma_sem = next(it)

        # Prefetch the big first-MLP weight behind the trunk compute.
        w0p_copy = pltpu.make_async_copy(w0p_hbm, w0p_vmem, dma_sem)
        w0p_copy.start()

        mask = mask_ref[...]                   # (1, HPWP)

        # Zero once: guard lanes then stay zero forever; only the HPWP window
        # is ever rewritten.  The input already carries zeros on its own halo.
        pad_ref[...] = jnp.zeros(pad_ref.shape, pad_ref.dtype)
        pad_ref[:, GUARD:GUARD + HPWP] = x_ref[0]

        def conv3x3(w_ref, b_ref, apply_mask):
            # Build im2col with 9 static lane-window copies, then ONE matmul.
            for t, d in enumerate(taps):
                col_ref[t * C:(t + 1) * C, :] = (
                    pad_ref[:, GUARD + d:GUARD + d + HPWP])
            y = jnp.dot(w_ref[...], col_ref[...],
                        preferred_element_type=jnp.float32)   # (cout, HPWP)
            y = jnp.maximum(y + b_ref[...], 0.0)
            return y * mask if apply_mask else y

        for blk in range(n_blocks):
            w1, b1, w2, b2, w3, b3 = conv[6 * blk:6 * blk + 6]
            x_in = pad_ref[:, GUARD:GUARD + HPWP]      # residual snapshot
            y1 = conv3x3(w1, b1, True)                 # C  -> C   (3x3)
            pad_ref[:, GUARD:GUARD + HPWP] = y1
            y2 = conv3x3(w2, b2, False)                # C  -> 3C  (3x3)
            z = jnp.dot(w3[...], y2,                   # 3C -> C   (1x1)
                        preferred_element_type=jnp.float32)
            z = jnp.maximum(z + b3[...], 0.0) * mask
            pad_ref[:, GUARD:GUARD + HPWP] = x_in + z  # residual add

        w0p_copy.wait()

        # MLP head.  Torch's NCHW flatten is already folded into w0p (rows in
        # padded (c, h_pad, w_pad) order with zeros on halo rows), so layer 1
        # is just one small matmul per channel row of the trunk output.
        h = b0[...]                                    # (1, 256)
        for c in range(C):
            a_c = pad_ref[c:c + 1, GUARD:GUARD + HPWP]  # (1, HPWP)
            h = h + jnp.dot(a_c, w0p_vmem[c],
                            preferred_element_type=jnp.float32)
        h = jnp.maximum(h, 0.0)
        h = jnp.maximum(jnp.dot(h, w1m[...],
                                preferred_element_type=jnp.float32)
                        + b1m[...], 0.0)
        h = jnp.maximum(jnp.dot(h, w2m[...],
                                preferred_element_type=jnp.float32)
                        + b2m[...], 0.0)
        out_ref[0] = (jnp.dot(h, w3m[...],
                              preferred_element_type=jnp.float32) + b3m[...])

    return kernel


# ---------------------------------------------------------------------------
# Parameter init (canonical layouts, PyTorch-default-style uniform bounds)
# ---------------------------------------------------------------------------
def _uniform(key, shape, bound):
    return jax.random.uniform(key, shape, jnp.float32, -bound, bound)


def _init_conv3x3(key, cin, cout):
    kw, kb = jax.random.split(key)
    bound = 1.0 / math.sqrt(cin * 9)
    return _uniform(kw, (3, 3, cin, cout), bound), _uniform(kb, (cout,), bound)


def _init_conv1x1(key, cin, cout):
    kw, kb = jax.random.split(key)
    bound = 1.0 / math.sqrt(cin)
    return _uniform(kw, (cin, cout), bound), _uniform(kb, (cout,), bound)


def _init_linear(key, fin, fout):
    kw, kb = jax.random.split(key)
    bound = 1.0 / math.sqrt(fin)
    return _uniform(kw, (fin, fout), bound), _uniform(kb, (fout,), bound)


def init_qnetwork(key, observation_shape, action_shape):
    H, W, C = observation_shape
    keys = jax.random.split(key, 19)
    ki = 0
    resblocks = []
    for _ in range(5):
        w1, b1 = _init_conv3x3(keys[ki], C, C); ki += 1
        w2, b2 = _init_conv3x3(keys[ki], C, 3 * C); ki += 1
        w3, b3 = _init_conv1x1(keys[ki], 3 * C, C); ki += 1
        resblocks.append(dict(w1=w1, b1=b1, w2=w2, b2=b2, w3=w3, b3=b3))
    dims = [C * H * W, 256, 128, 64, action_shape]
    mlp = []
    for fin, fout in zip(dims[:-1], dims[1:]):
        mlp.append(_init_linear(keys[ki], fin, fout)); ki += 1
    return dict(resblocks=resblocks, mlp=mlp)


# ---------------------------------------------------------------------------
# One-time host-side conversion of canonical params to kernel layout.
#   3x3 conv  -> (cout, 9*cin),   bias -> (cout, 1)
#   1x1 conv  -> (cout, cin),     bias -> (cout, 1)
#   MLP w0    -> zero-padded (C, (H+2)*(W+2), 256) folding the NCHW flatten
# ---------------------------------------------------------------------------
def prepare_params(params, observation_shape):
    H, W, C = observation_shape
    HP, WP = H + 2, W + 2

    def conv3x3_to_kernel(w_hwio, b):
        cout = w_hwio.shape[-1]
        wk = jnp.transpose(w_hwio, (3, 0, 1, 2)).reshape(cout, -1)
        return wk, b.reshape(-1, 1)

    conv = []
    for p in params["resblocks"]:
        w1, b1 = conv3x3_to_kernel(p["w1"], p["b1"])
        w2, b2 = conv3x3_to_kernel(p["w2"], p["b2"])
        conv.append(dict(w1=w1, b1=b1, w2=w2, b2=b2,
                         w3=p["w3"].T, b3=p["b3"].reshape(-1, 1)))

    (w0, b0), (w1m, b1m), (w2m, b2m), (w3m, b3m) = params["mlp"]
    nh = w0.shape[1]
    w0p = jnp.pad(w0.reshape(C, H, W, nh),
                  ((0, 0), (1, 1), (1, 1), (0, 0))).reshape(C, HP * WP, nh)
    mlp = dict(w0p=w0p, b0=b0.reshape(1, -1),
               w1=w1m, b1=b1m.reshape(1, -1),
               w2=w2m, b2=b2m.reshape(1, -1),
               w3=w3m, b3=b3m.reshape(1, -1))
    return dict(conv=conv, mlp=mlp)


# ---------------------------------------------------------------------------
# Forward pass (matches torch QNetwork.forward semantics)
# ---------------------------------------------------------------------------
def qnetwork_forward(kparams, x):
    """x: (B, C, H, W) or (C, H, W) float32 (PyTorch NCHW convention)."""
    assert x.ndim >= 3, "only support magent input observation"
    if x.ndim == 3:
        x = x[None]
    B, C, H, W = x.shape
    HP, WP = H + 2, W + 2
    HPWP = HP * WP
    mlp = kparams["mlp"]
    nh0 = mlp["w0p"].shape[-1]
    A = mlp["b3"].shape[-1]
    assert mlp["w0p"].shape == (C, HPWP, nh0)

    GUARD = WP + 1                                 # covers max tap shift
    NB = -(-(2 * GUARD + HPWP) // 128) * 128       # lane-dense scratch width

    # Tiny boundary op: zero-halo pad the input and flatten the spatial dims.
    x_pad = jnp.pad(x, ((0, 0), (0, 0), (1, 1), (1, 1))).reshape(B, C, HPWP)
    mask = jnp.asarray(_interior_mask(H, W))

    conv_flat = []
    for p in kparams["conv"]:
        conv_flat += [p["w1"], p["b1"], p["w2"], p["b2"], p["w3"], p["b3"]]
    mlp_rest = [mlp["b0"], mlp["w1"], mlp["b1"],
                mlp["w2"], mlp["b2"], mlp["w3"], mlp["b3"]]

    def const_spec(shape):
        nd = len(shape)
        return pl.BlockSpec(shape, lambda b, _n=nd: (0,) * _n)

    in_specs = ([pl.BlockSpec((1, C, HPWP), lambda b: (b, 0, 0)),
                 const_spec(mask.shape)]
                + [const_spec(a.shape) for a in conv_flat]
                + [pl.BlockSpec(memory_space=pl.ANY)]          # w0p stays in HBM
                + [const_spec(a.shape) for a in mlp_rest])

    kernel = _make_qnet_kernel(len(kparams["conv"]), C, H, W, GUARD)

    out = pl.pallas_call(
        kernel,
        out_shape=jax.ShapeDtypeStruct((B, 1, A), jnp.float32),
        grid=(B,),
        in_specs=in_specs,
        out_specs=pl.BlockSpec((1, 1, A), lambda b: (b, 0, 0)),
        scratch_shapes=[
            pltpu.VMEM((C, NB), jnp.float32),          # zero-halo activation
            pltpu.VMEM((9 * C, HPWP), jnp.float32),    # im2col buffer
            pltpu.VMEM((C, HPWP, nh0), jnp.float32),   # prefetched MLP w0
            pltpu.SemaphoreType.DMA,
        ],
        compiler_params=pltpu.CompilerParams(
            dimension_semantics=("parallel",)),
    )(x_pad, mask, *conv_flat, mlp["w0p"], *mlp_rest)
    return out.reshape(B, A)


# ---------------------------------------------------------------------------
# Pure-JAX (XLA) reference, numerically independent of the Pallas path.
# ---------------------------------------------------------------------------
def reference_forward(params, x):
    if x.ndim == 3:
        x = x[None]
    B = x.shape[0]
    a = jnp.transpose(x, (0, 2, 3, 1))                       # NHWC
    dn = ("NHWC", "HWIO", "NHWC")
    prec = lax.Precision.HIGHEST
    for p in params["resblocks"]:
        y = lax.conv_general_dilated(a, p["w1"], (1, 1), "SAME",
                                     dimension_numbers=dn, precision=prec)
        y = jax.nn.relu(y + p["b1"])
        y = lax.conv_general_dilated(y, p["w2"], (1, 1), "SAME",
                                     dimension_numbers=dn, precision=prec)
        y = jax.nn.relu(y + p["b2"])
        y = jax.nn.relu(jnp.einsum("bhwc,cd->bhwd", y, p["w3"],
                                   precision=prec) + p["b3"])
        a = a + y
    flat = jnp.transpose(a, (0, 3, 1, 2)).reshape(B, -1)     # torch Flatten
    h = flat
    n = len(params["mlp"])
    for i, (w, b) in enumerate(params["mlp"]):
        h = jnp.dot(h, w, precision=prec) + b
        if i < n - 1:
            h = jax.nn.relu(h)
    return h


# ---------------------------------------------------------------------------
if __name__ == "__main__":
    observation_shape = (8, 8, 4)   # (H, W, C) magent-style
    action_shape = 5
    batch = 2

    key = jax.random.PRNGKey(0)
    k_param, k_input = jax.random.split(key)
    params = init_qnetwork(k_param, observation_shape, action_shape)
    kparams = prepare_params(params, observation_shape)

    H, W, C = observation_shape
    x = jax.random.normal(k_input, (batch, C, H, W), dtype=jnp.float32)

    fwd = jax.jit(qnetwork_forward)
    out = fwd(kparams, x)
    jax.block_until_ready(out)
    assert out.shape == (batch, action_shape)
    assert bool(jnp.all(jnp.isfinite(out)))

    ref = reference_forward(params, x)
    assert jnp.allclose(out, ref, atol=3e-2, rtol=3e-2), (
        f"mismatch vs reference, max|diff|={float(jnp.max(jnp.abs(out - ref)))}")

    print("KERNEL_OK")
</pallas_src>

<mosaic_0001>
module attributes {stable_mosaic.version = 11 : i64} {
  func.func @kernel(%arg0: i32, %arg1: memref<1x4x100xf32, #tpu.memory_space<vmem>>, %arg2: memref<1x100xf32, #tpu.memory_space<vmem>>, %arg3: memref<4x36xf32, #tpu.memory_space<vmem>>, %arg4: memref<4x1xf32, #tpu.memory_space<vmem>>, %arg5: memref<12x36xf32, #tpu.memory_space<vmem>>, %arg6: memref<12x1xf32, #tpu.memory_space<vmem>>, %arg7: memref<4x12xf32, #tpu.memory_space<vmem>>, %arg8: memref<4x1xf32, #tpu.memory_space<vmem>>, %arg9: memref<4x36xf32, #tpu.memory_space<vmem>>, %arg10: memref<4x1xf32, #tpu.memory_space<vmem>>, %arg11: memref<12x36xf32, #tpu.memory_space<vmem>>, %arg12: memref<12x1xf32, #tpu.memory_space<vmem>>, %arg13: memref<4x12xf32, #tpu.memory_space<vmem>>, %arg14: memref<4x1xf32, #tpu.memory_space<vmem>>, %arg15: memref<4x36xf32, #tpu.memory_space<vmem>>, %arg16: memref<4x1xf32, #tpu.memory_space<vmem>>, %arg17: memref<12x36xf32, #tpu.memory_space<vmem>>, %arg18: memref<12x1xf32, #tpu.memory_space<vmem>>, %arg19: memref<4x12xf32, #tpu.memory_space<vmem>>, %arg20: memref<4x1xf32, #tpu.memory_space<vmem>>, %arg21: memref<4x36xf32, #tpu.memory_space<vmem>>, %arg22: memref<4x1xf32, #tpu.memory_space<vmem>>, %arg23: memref<12x36xf32, #tpu.memory_space<vmem>>, %arg24: memref<12x1xf32, #tpu.memory_space<vmem>>, %arg25: memref<4x12xf32, #tpu.memory_space<vmem>>, %arg26: memref<4x1xf32, #tpu.memory_space<vmem>>, %arg27: memref<4x36xf32, #tpu.memory_space<vmem>>, %arg28: memref<4x1xf32, #tpu.memory_space<vmem>>, %arg29: memref<12x36xf32, #tpu.memory_space<vmem>>, %arg30: memref<12x1xf32, #tpu.memory_space<vmem>>, %arg31: memref<4x12xf32, #tpu.memory_space<vmem>>, %arg32: memref<4x1xf32, #tpu.memory_space<vmem>>, %arg33: memref<4x100x256xf32, #tpu.memory_space<any>>, %arg34: memref<1x256xf32, #tpu.memory_space<vmem>>, %arg35: memref<256x128xf32, #tpu.memory_space<vmem>>, %arg36: memref<1x128xf32, #tpu.memory_space<vmem>>, %arg37: memref<128x64xf32, #tpu.memory_space<vmem>>, %arg38: memref<1x64xf32, #tpu.memory_space<vmem>>, %arg39: memref<64x5xf32, #tpu.memory_space<vmem>>, %arg40: memref<1x5xf32, #tpu.memory_space<vmem>>, %arg41: memref<1x1x5xf32, #tpu.memory_space<vmem>>, %arg42: memref<4x128xf32, #tpu.memory_space<vmem>>, %arg43: memref<36x100xf32, #tpu.memory_space<vmem>>, %arg44: memref<4x100x256xf32, #tpu.memory_space<vmem>>, %arg45: memref<!tpu.dma_semaphore, #tpu.memory_space<semaphore_mem>>) attributes {dimension_semantics = [#tpu.dimension_semantics<parallel>], iteration_bounds = array<i64: 2>, scalar_prefetch = 0 : i64, scratch_operands = 4 : i64, tpu.core_type = #tpu.core_type<tc>, window_params = [{transform_indices = @transform_0, window_bounds = array<i64: 1, 4, 100>}, {pipeline_mode = #tpu.pipeline_mode<synchronous>, transform_indices = @transform_1, window_bounds = array<i64: 1, 100>}, {pipeline_mode = #tpu.pipeline_mode<synchronous>, transform_indices = @transform_2, window_bounds = array<i64: 4, 36>}, {pipeline_mode = #tpu.pipeline_mode<synchronous>, transform_indices = @transform_3, window_bounds = array<i64: 4, 1>}, {pipeline_mode = #tpu.pipeline_mode<synchronous>, transform_indices = @transform_4, window_bounds = array<i64: 12, 36>}, {pipeline_mode = #tpu.pipeline_mode<synchronous>, transform_indices = @transform_5, window_bounds = array<i64: 12, 1>}, {pipeline_mode = #tpu.pipeline_mode<synchronous>, transform_indices = @transform_6, window_bounds = array<i64: 4, 12>}, {pipeline_mode = #tpu.pipeline_mode<synchronous>, transform_indices = @transform_7, window_bounds = array<i64: 4, 1>}, {pipeline_mode = #tpu.pipeline_mode<synchronous>, transform_indices = @transform_8, window_bounds = array<i64: 4, 36>}, {pipeline_mode = #tpu.pipeline_mode<synchronous>, transform_indices = @transform_9, window_bounds = array<i64: 4, 1>}, {pipeline_mode = #tpu.pipeline_mode<synchronous>, transform_indices = @transform_10, window_bounds = array<i64: 12, 36>}, {pipeline_mode = #tpu.pipeline_mode<synchronous>, transform_indices = @transform_11, window_bounds = array<i64: 12, 1>}, {pipeline_mode = #tpu.pipeline_mode<synchronous>, transform_indices = @transform_12, window_bounds = array<i64: 4, 12>}, {pipeline_mode = #tpu.pipeline_mode<synchronous>, transform_indices = @transform_13, window_bounds = array<i64: 4, 1>}, {pipeline_mode = #tpu.pipeline_mode<synchronous>, transform_indices = @transform_14, window_bounds = array<i64: 4, 36>}, {pipeline_mode = #tpu.pipeline_mode<synchronous>, transform_indices = @transform_15, window_bounds = array<i64: 4, 1>}, {pipeline_mode = #tpu.pipeline_mode<synchronous>, transform_indices = @transform_16, window_bounds = array<i64: 12, 36>}, {pipeline_mode = #tpu.pipeline_mode<synchronous>, transform_indices = @transform_17, window_bounds = array<i64: 12, 1>}, {pipeline_mode = #tpu.pipeline_mode<synchronous>, transform_indices = @transform_18, window_bounds = array<i64: 4, 12>}, {pipeline_mode = #tpu.pipeline_mode<synchronous>, transform_indices = @transform_19, window_bounds = array<i64: 4, 1>}, {pipeline_mode = #tpu.pipeline_mode<synchronous>, transform_indices = @transform_20, window_bounds = array<i64: 4, 36>}, {pipeline_mode = #tpu.pipeline_mode<synchronous>, transform_indices = @transform_21, window_bounds = array<i64: 4, 1>}, {pipeline_mode = #tpu.pipeline_mode<synchronous>, transform_indices = @transform_22, window_bounds = array<i64: 12, 36>}, {pipeline_mode = #tpu.pipeline_mode<synchronous>, transform_indices = @transform_23, window_bounds = array<i64: 12, 1>}, {pipeline_mode = #tpu.pipeline_mode<synchronous>, transform_indices = @transform_24, window_bounds = array<i64: 4, 12>}, {pipeline_mode = #tpu.pipeline_mode<synchronous>, transform_indices = @transform_25, window_bounds = array<i64: 4, 1>}, {pipeline_mode = #tpu.pipeline_mode<synchronous>, transform_indices = @transform_26, window_bounds = array<i64: 4, 36>}, {pipeline_mode = #tpu.pipeline_mode<synchronous>, transform_indices = @transform_27, window_bounds = array<i64: 4, 1>}, {pipeline_mode = #tpu.pipeline_mode<synchronous>, transform_indices = @transform_28, window_bounds = array<i64: 12, 36>}, {pipeline_mode = #tpu.pipeline_mode<synchronous>, transform_indices = @transform_29, window_bounds = array<i64: 12, 1>}, {pipeline_mode = #tpu.pipeline_mode<synchronous>, transform_indices = @transform_30, window_bounds = array<i64: 4, 12>}, {pipeline_mode = #tpu.pipeline_mode<synchronous>, transform_indices = @transform_31, window_bounds = array<i64: 4, 1>}, {}, {pipeline_mode = #tpu.pipeline_mode<synchronous>, transform_indices = @transform_33, window_bounds = array<i64: 1, 256>}, {pipeline_mode = #tpu.pipeline_mode<synchronous>, transform_indices = @transform_34, window_bounds = array<i64: 256, 128>}, {pipeline_mode = #tpu.pipeline_mode<synchronous>, transform_indices = @transform_35, window_bounds = array<i64: 1, 128>}, {pipeline_mode = #tpu.pipeline_mode<synchronous>, transform_indices = @transform_36, window_bounds = array<i64: 128, 64>}, {pipeline_mode = #tpu.pipeline_mode<synchronous>, transform_indices = @transform_37, window_bounds = array<i64: 1, 64>}, {pipeline_mode = #tpu.pipeline_mode<synchronous>, transform_indices = @transform_38, window_bounds = array<i64: 64, 5>}, {pipeline_mode = #tpu.pipeline_mode<synchronous>, transform_indices = @transform_39, window_bounds = array<i64: 1, 5>}, {transform_indices = @transform_40, window_bounds = array<i64: 1, 1, 5>}]} {
    tpu.enqueue_dma source(%arg33 : memref<4x100x256xf32, #tpu.memory_space<any>>) target(%arg44 : memref<4x100x256xf32, #tpu.memory_space<vmem>>) target_semaphore(%arg45 : memref<!tpu.dma_semaphore, #tpu.memory_space<semaphore_mem>>)
    %c0 = arith.constant 0 : index
    %c0_0 = arith.constant 0 : index
    %0 = vector.load %arg2[%c0, %c0_0] : memref<1x100xf32, #tpu.memory_space<vmem>>, vector<1x100xf32>
    %cst = arith.constant 0.000000e+00 : f32
    %1 = vector.broadcast %cst : f32 to vector<4x128xf32>
    %c0_1 = arith.constant 0 : index
    %c0_2 = arith.constant 0 : index
    %2 = vector.load %arg42[%c0_1, %c0_2] : memref<4x128xf32, #tpu.memory_space<vmem>>, vector<4x128xf32>
    tpu.vector_store %arg42[%c0_1, %c0_2], %1 {strides = array<i32>} : memref<4x128xf32, #tpu.memory_space<vmem>>, vector<4x128xf32>,
    %c0_3 = arith.constant 0 : index
    %c0_4 = arith.constant 0 : index
    %c0_5 = arith.constant 0 : index
    %3 = vector.load %arg1[%c0_3, %c0_4, %c0_5] : memref<1x4x100xf32, #tpu.memory_space<vmem>>, vector<1x4x100xf32>
    %4 = vector.shape_cast %3 : vector<1x4x100xf32> to vector<4x100xf32>
    %c0_6 = arith.constant 0 : index
    %c11 = arith.constant 11 : index
    %5 = vector.load %arg42[%c0_6, %c11] : memref<4x128xf32, #tpu.memory_space<vmem>>, vector<4x100xf32>
    tpu.vector_store %arg42[%c0_6, %c11], %4 {strides = array<i32>} : memref<4x128xf32, #tpu.memory_space<vmem>>, vector<4x100xf32>,
    %c0_7 = arith.constant 0 : index
    %c11_8 = arith.constant 11 : index
    %6 = vector.load %arg42[%c0_7, %c11_8] : memref<4x128xf32, #tpu.memory_space<vmem>>, vector<4x100xf32>
    %c0_9 = arith.constant 0 : index
    %c0_10 = arith.constant 0 : index
    %7 = vector.load %arg42[%c0_9, %c0_10] : memref<4x128xf32, #tpu.memory_space<vmem>>, vector<4x100xf32>
    %c0_11 = arith.constant 0 : index
    %c0_12 = arith.constant 0 : index
    %8 = vector.load %arg43[%c0_11, %c0_12] : memref<36x100xf32, #tpu.memory_space<vmem>>, vector<4x100xf32>
    tpu.vector_store %arg43[%c0_11, %c0_12], %7 {strides = array<i32>} : memref<36x100xf32, #tpu.memory_space<vmem>>, vector<4x100xf32>,
    %c0_13 = arith.constant 0 : index
    %c1 = arith.constant 1 : index
    %9 = vector.load %arg42[%c0_13, %c1] : memref<4x128xf32, #tpu.memory_space<vmem>>, vector<4x100xf32>
    %c4 = arith.constant 4 : index
    %c0_14 = arith.constant 0 : index
    %10 = vector.load %arg43[%c4, %c0_14] : memref<36x100xf32, #tpu.memory_space<vmem>>, vector<4x100xf32>
    tpu.vector_store %arg43[%c4, %c0_14], %9 {strides = array<i32>} : memref<36x100xf32, #tpu.memory_space<vmem>>, vector<4x100xf32>,
    %c0_15 = arith.constant 0 : index
    %c2 = arith.constant 2 : index
    %11 = vector.load %arg42[%c0_15, %c2] : memref<4x128xf32, #tpu.memory_space<vmem>>, vector<4x100xf32>
    %c8 = arith.constant 8 : index
    %c0_16 = arith.constant 0 : index
    %12 = vector.load %arg43[%c8, %c0_16] : memref<36x100xf32, #tpu.memory_space<vmem>>, vector<4x100xf32>
    tpu.vector_store %arg43[%c8, %c0_16], %11 {strides = array<i32>} : memref<36x100xf32, #tpu.memory_space<vmem>>, vector<4x100xf32>,
    %c0_17 = arith.constant 0 : index
    %c10 = arith.constant 10 : index
    %13 = vector.load %arg42[%c0_17, %c10] : memref<4x128xf32, #tpu.memory_space<vmem>>, vector<4x100xf32>
    %c12 = arith.constant 12 : index
    %c0_18 = arith.constant 0 : index
    %14 = vector.load %arg43[%c12, %c0_18] : memref<36x100xf32, #tpu.memory_space<vmem>>, vector<4x100xf32>
    tpu.vector_store %arg43[%c12, %c0_18], %13 {strides = array<i32>} : memref<36x100xf32, #tpu.memory_space<vmem>>, vector<4x100xf32>,
    %c0_19 = arith.constant 0 : index
    %c11_20 = arith.constant 11 : index
    %15 = vector.load %arg42[%c0_19, %c11_20] : memref<4x128xf32, #tpu.memory_space<vmem>>, vector<4x100xf32>
    %c16 = arith.constant 16 : index
    %c0_21 = arith.constant 0 : index
    %16 = vector.load %arg43[%c16, %c0_21] : memref<36x100xf32, #tpu.memory_space<vmem>>, vector<4x100xf32>
    tpu.vector_store %arg43[%c16, %c0_21], %15 {strides = array<i32>} : memref<36x100xf32, #tpu.memory_space<vmem>>, vector<4x100xf32>,
    %c0_22 = arith.constant 0 : index
    %c12_23 = arith.constant 12 : index
    %17 = vector.load %arg42[%c0_22, %c12_23] : memref<4x128xf32, #tpu.memory_space<vmem>>, vector<4x100xf32>
    %c20 = arith.constant 20 : index
    %c0_24 = arith.constant 0 : index
    %18 = vector.load %arg43[%c20, %c0_24] : memref<36x100xf32, #tpu.memory_space<vmem>>, vector<4x100xf32>
    tpu.vector_store %arg43[%c20, %c0_24], %17 {strides = array<i32>} : memref<36x100xf32, #tpu.memory_space<vmem>>, vector<4x100xf32>,
    %c0_25 = arith.constant 0 : index
    %c20_26 = arith.constant 20 : index
    %19 = vector.load %arg42[%c0_25, %c20_26] : memref<4x128xf32, #tpu.memory_space<vmem>>, vector<4x100xf32>
    %c24 = arith.constant 24 : index
    %c0_27 = arith.constant 0 : index
    %20 = vector.load %arg43[%c24, %c0_27] : memref<36x100xf32, #tpu.memory_space<vmem>>, vector<4x100xf32>
    tpu.vector_store %arg43[%c24, %c0_27], %19 {strides = array<i32>} : memref<36x100xf32, #tpu.memory_space<vmem>>, vector<4x100xf32>,
    %c0_28 = arith.constant 0 : index
    %c21 = arith.constant 21 : index
    %21 = vector.load %arg42[%c0_28, %c21] : memref<4x128xf32, #tpu.memory_space<vmem>>, vector<4x100xf32>
    %c28 = arith.constant 28 : index
    %c0_29 = arith.constant 0 : index
    %22 = vector.load %arg43[%c28, %c0_29] : memref<36x100xf32, #tpu.memory_space<vmem>>, vector<4x100xf32>
    tpu.vector_store %arg43[%c28, %c0_29], %21 {strides = array<i32>} : memref<36x100xf32, #tpu.memory_space<vmem>>, vector<4x100xf32>,
    %c0_30 = arith.constant 0 : index
    %c22 = arith.constant 22 : index
    %23 = vector.load %arg42[%c0_30, %c22] : memref<4x128xf32, #tpu.memory_space<vmem>>, vector<4x100xf32>
    %c32 = arith.constant 32 : index
    %c0_31 = arith.constant 0 : index
    %24 = vector.load %arg43[%c32, %c0_31] : memref<36x100xf32, #tpu.memory_space<vmem>>, vector<4x100xf32>
    tpu.vector_store %arg43[%c32, %c0_31], %23 {strides = array<i32>} : memref<36x100xf32, #tpu.memory_space<vmem>>, vector<4x100xf32>,
    %c0_32 = arith.constant 0 : index
    %c0_33 = arith.constant 0 : index
    %25 = vector.load %arg3[%c0_32, %c0_33] : memref<4x36xf32, #tpu.memory_space<vmem>>, vector<4x36xf32>
    %c0_34 = arith.constant 0 : index
    %c0_35 = arith.constant 0 : index
    %26 = vector.load %arg43[%c0_34, %c0_35] : memref<36x100xf32, #tpu.memory_space<vmem>>, vector<36x100xf32>
    %cst_36 = arith.constant dense<0.000000e+00> : vector<4x100xf32>
    %27 = tpu.matmul %25, %26, %cst_36 {dimension_numbers = #tpu.dot_dimension_numbers<[1], [0], [0], [1], [0, 0, 1, 1], [], []>} : vector<4x36xf32>, vector<36x100xf32>, vector<4x100xf32> -> vector<4x100xf32>
    %c0_37 = arith.constant 0 : index
    %c0_38 = arith.constant 0 : index
    %28 = vector.load %arg4[%c0_37, %c0_38] : memref<4x1xf32, #tpu.memory_space<vmem>>, vector<4x1xf32>
    %29 = vector.broadcast %28 : vector<4x1xf32> to vector<4x100xf32>
    %30 = arith.addf %27, %29 : vector<4x100xf32>
    %cst_39 = arith.constant 0.000000e+00 : f32
    %31 = vector.broadcast %cst_39 : f32 to vector<4x100xf32>
    %32 = arith.maximumf %30, %31 : vector<4x100xf32>
    %33 = vector.broadcast %0 : vector<1x100xf32> to vector<4x100xf32>
    %34 = arith.mulf %32, %33 : vector<4x100xf32>
    %c0_40 = arith.constant 0 : index
    %c11_41 = arith.constant 11 : index
    %35 = vector.load %arg42[%c0_40, %c11_41] : memref<4x128xf32, #tpu.memory_space<vmem>>, vector<4x100xf32>
    tpu.vector_store %arg42[%c0_40, %c11_41], %34 {strides = array<i32>} : memref<4x128xf32, #tpu.memory_space<vmem>>, vector<4x100xf32>,
    %c0_42 = arith.constant 0 : index
    %c0_43 = arith.constant 0 : index
    %36 = vector.load %arg42[%c0_42, %c0_43] : memref<4x128xf32, #tpu.memory_space<vmem>>, vector<4x100xf32>
    %c0_44 = arith.constant 0 : index
    %c0_45 = arith.constant 0 : index
    %37 = vector.load %arg43[%c0_44, %c0_45] : memref<36x100xf32, #tpu.memory_space<vmem>>, vector<4x100xf32>
    tpu.vector_store %arg43[%c0_44, %c0_45], %36 {strides = array<i32>} : memref<36x100xf32, #tpu.memory_space<vmem>>, vector<4x100xf32>,
    %c0_46 = arith.constant 0 : index
    %c1_47 = arith.constant 1 : index
    %38 = vector.load %arg42[%c0_46, %c1_47] : memref<4x128xf32, #tpu.memory_space<vmem>>, vector<4x100xf32>
    %c4_48 = arith.constant 4 : index
    %c0_49 = arith.constant 0 : index
    %39 = vector.load %arg43[%c4_48, %c0_49] : memref<36x100xf32, #tpu.memory_space<vmem>>, vector<4x100xf32>
    tpu.vector_store %arg43[%c4_48, %c0_49], %38 {strides = array<i32>} : memref<36x100xf32, #tpu.memory_space<vmem>>, vector<4x100xf32>,
    %c0_50 = arith.constant 0 : index
    %c2_51 = arith.constant 2 : index
    %40 = vector.load %arg42[%c0_50, %c2_51] : memref<4x128xf32, #tpu.memory_space<vmem>>, vector<4x100xf32>
    %c8_52 = arith.constant 8 : index
    %c0_53 = arith.constant 0 : index
    %41 = vector.load %arg43[%c8_52, %c0_53] : memref<36x100xf32, #tpu.memory_space<vmem>>, vector<4x100xf32>
    tpu.vector_store %arg43[%c8_52, %c0_53], %40 {strides = array<i32>} : memref<36x100xf32, #tpu.memory_space<vmem>>, vector<4x100xf32>,
    %c0_54 = arith.constant 0 : index
    %c10_55 = arith.constant 10 : index
    %42 = vector.load %arg42[%c0_54, %c10_55] : memref<4x128xf32, #tpu.memory_space<vmem>>, vector<4x100xf32>
    %c12_56 = arith.constant 12 : index
    %c0_57 = arith.constant 0 : index
    %43 = vector.load %arg43[%c12_56, %c0_57] : memref<36x100xf32, #tpu.memory_space<vmem>>, vector<4x100xf32>
    tpu.vector_store %arg43[%c12_56, %c0_57], %42 {strides = array<i32>} : memref<36x100xf32, #tpu.memory_space<vmem>>, vector<4x100xf32>,
    %c0_58 = arith.constant 0 : index
    %c11_59 = arith.constant 11 : index
    %44 = vector.load %arg42[%c0_58, %c11_59] : memref<4x128xf32, #tpu.memory_space<vmem>>, vector<4x100xf32>
    %c16_60 = arith.constant 16 : index
    %c0_61 = arith.constant 0 : index
    %45 = vector.load %arg43[%c16_60, %c0_61] : memref<36x100xf32, #tpu.memory_space<vmem>>, vector<4x100xf32>
    tpu.vector_store %arg43[%c16_60, %c0_61], %44 {strides = array<i32>} : memref<36x100xf32, #tpu.memory_space<vmem>>, vector<4x100xf32>,
    %c0_62 = arith.constant 0 : index
    %c12_63 = arith.constant 12 : index
    %46 = vector.load %arg42[%c0_62, %c12_63] : memref<4x128xf32, #tpu.memory_space<vmem>>, vector<4x100xf32>
    %c20_64 = arith.constant 20 : index
    %c0_65 = arith.constant 0 : index
    %47 = vector.load %arg43[%c20_64, %c0_65] : memref<36x100xf32, #tpu.memory_space<vmem>>, vector<4x100xf32>
    tpu.vector_store %arg43[%c20_64, %c0_65], %46 {strides = array<i32>} : memref<36x100xf32, #tpu.memory_space<vmem>>, vector<4x100xf32>,
    %c0_66 = arith.constant 0 : index
    %c20_67 = arith.constant 20 : index
    %48 = vector.load %arg42[%c0_66, %c20_67] : memref<4x128xf32, #tpu.memory_space<vmem>>, vector<4x100xf32>
    %c24_68 = arith.constant 24 : index
    %c0_69 = arith.constant 0 : index
    %49 = vector.load %arg43[%c24_68, %c0_69] : memref<36x100xf32, #tpu.memory_space<vmem>>, vector<4x100xf32>
    tpu.vector_store %arg43[%c24_68, %c0_69], %48 {strides = array<i32>} : memref<36x100xf32, #tpu.memory_space<vmem>>, vector<4x100xf32>,
    %c0_70 = arith.constant 0 : index
    %c21_71 = arith.constant 21 : index
    %50 = vector.load %arg42[%c0_70, %c21_71] : memref<4x128xf32, #tpu.memory_space<vmem>>, vector<4x100xf32>
    %c28_72 = arith.constant 28 : index
    %c0_73 = arith.constant 0 : index
    %51 = vector.load %arg43[%c28_72, %c0_73] : memref<36x100xf32, #tpu.memory_space<vmem>>, vector<4x100xf32>
    tpu.vector_store %arg43[%c28_72, %c0_73], %50 {strides = array<i32>} : memref<36x100xf32, #tpu.memory_space<vmem>>, vector<4x100xf32>,
    %c0_74 = arith.constant 0 : index
    %c22_75 = arith.constant 22 : index
    %52 = vector.load %arg42[%c0_74, %c22_75] : memref<4x128xf32, #tpu.memory_space<vmem>>, vector<4x100xf32>
    %c32_76 = arith.constant 32 : index
    %c0_77 = arith.constant 0 : index
    %53 = vector.load %arg43[%c32_76, %c0_77] : memref<36x100xf32, #tpu.memory_space<vmem>>, vector<4x100xf32>
    tpu.vector_store %arg43[%c32_76, %c0_77], %52 {strides = array<i32>} : memref<36x100xf32, #tpu.memory_space<vmem>>, vector<4x100xf32>,
    %c0_78 = arith.constant 0 : index
    %c0_79 = arith.constant 0 : index
    %54 = vector.load %arg5[%c0_78, %c0_79] : memref<12x36xf32, #tpu.memory_space<vmem>>, vector<12x36xf32>
    %c0_80 = arith.constant 0 : index
    %c0_81 = arith.constant 0 : index
    %55 = vector.load %arg43[%c0_80, %c0_81] : memref<36x100xf32, #tpu.memory_space<vmem>>, vector<36x100xf32>
    %cst_82 = arith.constant dense<0.000000e+00> : vector<12x100xf32>
    %56 = tpu.matmul %54, %55, %cst_82 {dimension_numbers = #tpu.dot_dimension_numbers<[1], [0], [0], [1], [0, 0, 1, 1], [], []>} : vector<12x36xf32>, vector<36x100xf32>, vector<12x100xf32> -> vector<12x100xf32>
    %c0_83 = arith.constant 0 : index
    %c0_84 = arith.constant 0 : index
    %57 = vector.load %arg6[%c0_83, %c0_84] : memref<12x1xf32, #tpu.memory_space<vmem>>, vector<12x1xf32>
    %58 = vector.broadcast %57 : vector<12x1xf32> to vector<12x100xf32>
    %59 = arith.addf %56, %58 : vector<12x100xf32>
    %cst_85 = arith.constant 0.000000e+00 : f32
    %60 = vector.broadcast %cst_85 : f32 to vector<12x100xf32>
    %61 = arith.maximumf %59, %60 : vector<12x100xf32>
    %c0_86 = arith.constant 0 : index
    %c0_87 = arith.constant 0 : index
    %62 = vector.load %arg7[%c0_86, %c0_87] : memref<4x12xf32, #tpu.memory_space<vmem>>, vector<4x12xf32>
    %cst_88 = arith.constant dense<0.000000e+00> : vector<4x100xf32>
    %63 = tpu.matmul %62, %61, %cst_88 {dimension_numbers = #tpu.dot_dimension_numbers<[1], [0], [0], [1], [0, 0, 1, 1], [], []>} : vector<4x12xf32>, vector<12x100xf32>, vector<4x100xf32> -> vector<4x100xf32>
    %c0_89 = arith.constant 0 : index
    %c0_90 = arith.constant 0 : index
    %64 = vector.load %arg8[%c0_89, %c0_90] : memref<4x1xf32, #tpu.memory_space<vmem>>, vector<4x1xf32>
    %65 = vector.broadcast %64 : vector<4x1xf32> to vector<4x100xf32>
    %66 = arith.addf %63, %65 : vector<4x100xf32>
    %cst_91 = arith.constant 0.000000e+00 : f32
    %67 = vector.broadcast %cst_91 : f32 to vector<4x100xf32>
    %68 = arith.maximumf %66, %67 : vector<4x100xf32>
    %69 = vector.broadcast %0 : vector<1x100xf32> to vector<4x100xf32>
    %70 = arith.mulf %68, %69 : vector<4x100xf32>
    %71 = arith.addf %6, %70 : vector<4x100xf32>
    %c0_92 = arith.constant 0 : index
    %c11_93 = arith.constant 11 : index
    %72 = vector.load %arg42[%c0_92, %c11_93] : memref<4x128xf32, #tpu.memory_space<vmem>>, vector<4x100xf32>
    tpu.vector_store %arg42[%c0_92, %c11_93], %71 {strides = array<i32>} : memref<4x128xf32, #tpu.memory_space<vmem>>, vector<4x100xf32>,
    %c0_94 = arith.constant 0 : index
    %c11_95 = arith.constant 11 : index
    %73 = vector.load %arg42[%c0_94, %c11_95] : memref<4x128xf32, #tpu.memory_space<vmem>>, vector<4x100xf32>
    %c0_96 = arith.constant 0 : index
    %c0_97 = arith.constant 0 : index
    %74 = vector.load %arg42[%c0_96, %c0_97] : memref<4x128xf32, #tpu.memory_space<vmem>>, vector<4x100xf32>
    %c0_98 = arith.constant 0 : index
    %c0_99 = arith.constant 0 : index
    %75 = vector.load %arg43[%c0_98, %c0_99] : memref<36x100xf32, #tpu.memory_space<vmem>>, vector<4x100xf32>
    tpu.vector_store %arg43[%c0_98, %c0_99], %74 {strides = array<i32>} : memref<36x100xf32, #tpu.memory_space<vmem>>, vector<4x100xf32>,
    %c0_100 = arith.constant 0 : index
    %c1_101 = arith.constant 1 : index
    %76 = vector.load %arg42[%c0_100, %c1_101] : memref<4x128xf32, #tpu.memory_space<vmem>>, vector<4x100xf32>
    %c4_102 = arith.constant 4 : index
    %c0_103 = arith.constant 0 : index
    %77 = vector.load %arg43[%c4_102, %c0_103] : memref<36x100xf32, #tpu.memory_space<vmem>>, vector<4x100xf32>
    tpu.vector_store %arg43[%c4_102, %c0_103], %76 {strides = array<i32>} : memref<36x100xf32, #tpu.memory_space<vmem>>, vector<4x100xf32>,
    %c0_104 = arith.constant 0 : index
    %c2_105 = arith.constant 2 : index
    %78 = vector.load %arg42[%c0_104, %c2_105] : memref<4x128xf32, #tpu.memory_space<vmem>>, vector<4x100xf32>
    %c8_106 = arith.constant 8 : index
    %c0_107 = arith.constant 0 : index
    %79 = vector.load %arg43[%c8_106, %c0_107] : memref<36x100xf32, #tpu.memory_space<vmem>>, vector<4x100xf32>
    tpu.vector_store %arg43[%c8_106, %c0_107], %78 {strides = array<i32>} : memref<36x100xf32, #tpu.memory_space<vmem>>, vector<4x100xf32>,
    %c0_108 = arith.constant 0 : index
    %c10_109 = arith.constant 10 : index
    %80 = vector.load %arg42[%c0_108, %c10_109] : memref<4x128xf32, #tpu.memory_space<vmem>>, vector<4x100xf32>
    %c12_110 = arith.constant 12 : index
    %c0_111 = arith.constant 0 : index
    %81 = vector.load %arg43[%c12_110, %c0_111] : memref<36x100xf32, #tpu.memory_space<vmem>>, vector<4x100xf32>
    tpu.vector_store %arg43[%c12_110, %c0_111], %80 {strides = array<i32>} : memref<36x100xf32, #tpu.memory_space<vmem>>, vector<4x100xf32>,
    %c0_112 = arith.constant 0 : index
    %c11_113 = arith.constant 11 : index
    %82 = vector.load %arg42[%c0_112, %c11_113] : memref<4x128xf32, #tpu.memory_space<vmem>>, vector<4x100xf32>
    %c16_114 = arith.constant 16 : index
    %c0_115 = arith.constant 0 : index
    %83 = vector.load %arg43[%c16_114, %c0_115] : memref<36x100xf32, #tpu.memory_space<vmem>>, vector<4x100xf32>
    tpu.vector_store %arg43[%c16_114, %c0_115], %82 {strides = array<i32>} : memref<36x100xf32, #tpu.memory_space<vmem>>, vector<4x100xf32>,
    %c0_116 = arith.constant 0 : index
    %c12_117 = arith.constant 12 : index
    %84 = vector.load %arg42[%c0_116, %c12_117] : memref<4x128xf32, #tpu.memory_space<vmem>>, vector<4x100xf32>
    %c20_118 = arith.constant 20 : index
    %c0_119 = arith.constant 0 : index
    %85 = vector.load %arg43[%c20_118, %c0_119] : memref<36x100xf32, #tpu.memory_space<vmem>>, vector<4x100xf32>
    tpu.vector_store %arg43[%c20_118, %c0_119], %84 {strides = array<i32>} : memref<36x100xf32, #tpu.memory_space<vmem>>, vector<4x100xf32>,
    %c0_120 = arith.constant 0 : index
    %c20_121 = arith.constant 20 : index
    %86 = vector.load %arg42[%c0_120, %c20_121] : memref<4x128xf32, #tpu.memory_space<vmem>>, vector<4x100xf32>
    %c24_122 = arith.constant 24 : index
    %c0_123 = arith.constant 0 : index
    %87 = vector.load %arg43[%c24_122, %c0_123] : memref<36x100xf32, #tpu.memory_space<vmem>>, vector<4x100xf32>
    tpu.vector_store %arg43[%c24_122, %c0_123], %86 {strides = array<i32>} : memref<36x100xf32, #tpu.memory_space<vmem>>, vector<4x100xf32>,
    %c0_124 = arith.constant 0 : index
    %c21_125 = arith.constant 21 : index
    %88 = vector.load %arg42[%c0_124, %c21_125] : memref<4x128xf32, #tpu.memory_space<vmem>>, vector<4x100xf32>
    %c28_126 = arith.constant 28 : index
    %c0_127 = arith.constant 0 : index
    %89 = vector.load %arg43[%c28_126, %c0_127] : memref<36x100xf32, #tpu.memory_space<vmem>>, vector<4x100xf32>
    tpu.vector_store %arg43[%c28_126, %c0_127], %88 {strides = array<i32>} : memref<36x100xf32, #tpu.memory_space<vmem>>, vector<4x100xf32>,
    %c0_128 = arith.constant 0 : index
    %c22_129 = arith.constant 22 : index
    %90 = vector.load %arg42[%c0_128, %c22_129] : memref<4x128xf32, #tpu.memory_space<vmem>>, vector<4x100xf32>
    %c32_130 = arith.constant 32 : index
    %c0_131 = arith.constant 0 : index
    %91 = vector.load %arg43[%c32_130, %c0_131] : memref<36x100xf32, #tpu.memory_space<vmem>>, vector<4x100xf32>
    tpu.vector_store %arg43[%c32_130, %c0_131], %90 {strides = array<i32>} : memref<36x100xf32, #tpu.memory_space<vmem>>, vector<4x100xf32>,
    %c0_132 = arith.constant 0 : index
    %c0_133 = arith.constant 0 : index
    %92 = vector.load %arg9[%c0_132, %c0_133] : memref<4x36xf32, #tpu.memory_space<vmem>>, vector<4x36xf32>
    %c0_134 = arith.constant 0 : index
    %c0_135 = arith.constant 0 : index
    %93 = vector.load %arg43[%c0_134, %c0_135] : memref<36x100xf32, #tpu.memory_space<vmem>>, vector<36x100xf32>
    %cst_136 = arith.constant dense<0.000000e+00> : vector<4x100xf32>
    %94 = tpu.matmul %92, %93, %cst_136 {dimension_numbers = #tpu.dot_dimension_numbers<[1], [0], [0], [1], [0, 0, 1, 1], [], []>} : vector<4x36xf32>, vector<36x100xf32>, vector<4x100xf32> -> vector<4x100xf32>
    %c0_137 = arith.constant 0 : index
    %c0_138 = arith.constant 0 : index
    %95 = vector.load %arg10[%c0_137, %c0_138] : memref<4x1xf32, #tpu.memory_space<vmem>>, vector<4x1xf32>
    %96 = vector.broadcast %95 : vector<4x1xf32> to vector<4x100xf32>
    %97 = arith.addf %94, %96 : vector<4x100xf32>
    %cst_139 = arith.constant 0.000000e+00 : f32
    %98 = vector.broadcast %cst_139 : f32 to vector<4x100xf32>
    %99 = arith.maximumf %97, %98 : vector<4x100xf32>
    %100 = vector.broadcast %0 : vector<1x100xf32> to vector<4x100xf32>
    %101 = arith.mulf %99, %100 : vector<4x100xf32>
    %c0_140 = arith.constant 0 : index
    %c11_141 = arith.constant 11 : index
    %102 = vector.load %arg42[%c0_140, %c11_141] : memref<4x128xf32, #tpu.memory_space<vmem>>, vector<4x100xf32>
    tpu.vector_store %arg42[%c0_140, %c11_141], %101 {strides = array<i32>} : memref<4x128xf32, #tpu.memory_space<vmem>>, vector<4x100xf32>,
    %c0_142 = arith.constant 0 : index
    %c0_143 = arith.constant 0 : index
    %103 = vector.load %arg42[%c0_142, %c0_143] : memref<4x128xf32, #tpu.memory_space<vmem>>, vector<4x100xf32>
    %c0_144 = arith.constant 0 : index
    %c0_145 = arith.constant 0 : index
    %104 = vector.load %arg43[%c0_144, %c0_145] : memref<36x100xf32, #tpu.memory_space<vmem>>, vector<4x100xf32>
    tpu.vector_store %arg43[%c0_144, %c0_145], %103 {strides = array<i32>} : memref<36x100xf32, #tpu.memory_space<vmem>>, vector<4x100xf32>,
    %c0_146 = arith.constant 0 : index
    %c1_147 = arith.constant 1 : index
    %105 = vector.load %arg42[%c0_146, %c1_147] : memref<4x128xf32, #tpu.memory_space<vmem>>, vector<4x100xf32>
    %c4_148 = arith.constant 4 : index
    %c0_149 = arith.constant 0 : index
    %106 = vector.load %arg43[%c4_148, %c0_149] : memref<36x100xf32, #tpu.memory_space<vmem>>, vector<4x100xf32>
    tpu.vector_store %arg43[%c4_148, %c0_149], %105 {strides = array<i32>} : memref<36x100xf32, #tpu.memory_space<vmem>>, vector<4x100xf32>,
    %c0_150 = arith.constant 0 : index
    %c2_151 = arith.constant 2 : index
    %107 = vector.load %arg42[%c0_150, %c2_151] : memref<4x128xf32, #tpu.memory_space<vmem>>, vector<4x100xf32>
    %c8_152 = arith.constant 8 : index
    %c0_153 = arith.constant 0 : index
    %108 = vector.load %arg43[%c8_152, %c0_153] : memref<36x100xf32, #tpu.memory_space<vmem>>, vector<4x100xf32>
    tpu.vector_store %arg43[%c8_152, %c0_153], %107 {strides = array<i32>} : memref<36x100xf32, #tpu.memory_space<vmem>>, vector<4x100xf32>,
    %c0_154 = arith.constant 0 : index
    %c10_155 = arith.constant 10 : index
    %109 = vector.load %arg42[%c0_154, %c10_155] : memref<4x128xf32, #tpu.memory_space<vmem>>, vector<4x100xf32>
    %c12_156 = arith.constant 12 : index
    %c0_157 = arith.constant 0 : index
    %110 = vector.load %arg43[%c12_156, %c0_157] : memref<36x100xf32, #tpu.memory_space<vmem>>, vector<4x100xf32>
    tpu.vector_store %arg43[%c12_156, %c0_157], %109 {strides = array<i32>} : memref<36x100xf32, #tpu.memory_space<vmem>>, vector<4x100xf32>,
    %c0_158 = arith.constant 0 : index
    %c11_159 = arith.constant 11 : index
    %111 = vector.load %arg42[%c0_158, %c11_159] : memref<4x128xf32, #tpu.memory_space<vmem>>, vector<4x100xf32>
    %c16_160 = arith.constant 16 : index
    %c0_161 = arith.constant 0 : index
    %112 = vector.load %arg43[%c16_160, %c0_161] : memref<36x100xf32, #tpu.memory_space<vmem>>, vector<4x100xf32>
    tpu.vector_store %arg43[%c16_160, %c0_161], %111 {strides = array<i32>} : memref<36x100xf32, #tpu.memory_space<vmem>>, vector<4x100xf32>,
    %c0_162 = arith.constant 0 : index
    %c12_163 = arith.constant 12 : index
    %113 = vector.load %arg42[%c0_162, %c12_163] : memref<4x128xf32, #tpu.memory_space<vmem>>, vector<4x100xf32>
    %c20_164 = arith.constant 20 : index
    %c0_165 = arith.constant 0 : index
    %114 = vector.load %arg43[%c20_164, %c0_165] : memref<36x100xf32, #tpu.memory_space<vmem>>, vector<4x100xf32>
    tpu.vector_store %arg43[%c20_164, %c0_165], %113 {strides = array<i32>} : memref<36x100xf32, #tpu.memory_space<vmem>>, vector<4x100xf32>,
    %c0_166 = arith.constant 0 : index
    %c20_167 = arith.constant 20 : index
    %115 = vector.load %arg42[%c0_166, %c20_167] : memref<4x128xf32, #tpu.memory_space<vmem>>, vector<4x100xf32>
    %c24_168 = arith.constant 24 : index
    %c0_169 = arith.constant 0 : index
    %116 = vector.load %arg43[%c24_168, %c0_169] : memref<36x100xf32, #tpu.memory_space<vmem>>, vector<4x100xf32>
    tpu.vector_store %arg43[%c24_168, %c0_169], %115 {strides = array<i32>} : memref<36x100xf32, #tpu.memory_space<vmem>>, vector<4x100xf32>,
    %c0_170 = arith.constant 0 : index
    %c21_171 = arith.constant 21 : index
    %117 = vector.load %arg42[%c0_170, %c21_171] : memref<4x128xf32, #tpu.memory_space<vmem>>, vector<4x100xf32>
    %c28_172 = arith.constant 28 : index
    %c0_173 = arith.constant 0 : index
    %118 = vector.load %arg43[%c28_172, %c0_173] : memref<36x100xf32, #tpu.memory_space<vmem>>, vector<4x100xf32>
    tpu.vector_store %arg43[%c28_172, %c0_173], %117 {strides = array<i32>} : memref<36x100xf32, #tpu.memory_space<vmem>>, vector<4x100xf32>,
    %c0_174 = arith.constant 0 : index
    %c22_175 = arith.constant 22 : index
    %119 = vector.load %arg42[%c0_174, %c22_175] : memref<4x128xf32, #tpu.memory_space<vmem>>, vector<4x100xf32>
    %c32_176 = arith.constant 32 : index
    %c0_177 = arith.constant 0 : index
    %120 = vector.load %arg43[%c32_176, %c0_177] : memref<36x100xf32, #tpu.memory_space<vmem>>, vector<4x100xf32>
    tpu.vector_store %arg43[%c32_176, %c0_177], %119 {strides = array<i32>} : memref<36x100xf32, #tpu.memory_space<vmem>>, vector<4x100xf32>,
    %c0_178 = arith.constant 0 : index
    %c0_179 = arith.constant 0 : index
    %121 = vector.load %arg11[%c0_178, %c0_179] : memref<12x36xf32, #tpu.memory_space<vmem>>, vector<12x36xf32>
    %c0_180 = arith.constant 0 : index
    %c0_181 = arith.constant 0 : index
    %122 = vector.load %arg43[%c0_180, %c0_181] : memref<36x100xf32, #tpu.memory_space<vmem>>, vector<36x100xf32>
    %cst_182 = arith.constant dense<0.000000e+00> : vector<12x100xf32>
    %123 = tpu.matmul %121, %122, %cst_182 {dimension_numbers = #tpu.dot_dimension_numbers<[1], [0], [0], [1], [0, 0, 1, 1], [], []>} : vector<12x36xf32>, vector<36x100xf32>, vector<12x100xf32> -> vector<12x100xf32>
    %c0_183 = arith.constant 0 : index
    %c0_184 = arith.constant 0 : index
    %124 = vector.load %arg12[%c0_183, %c0_184] : memref<12x1xf32, #tpu.memory_space<vmem>>, vector<12x1xf32>
    %125 = vector.broadcast %124 : vector<12x1xf32> to vector<12x100xf32>
    %126 = arith.addf %123, %125 : vector<12x100xf32>
    %cst_185 = arith.constant 0.000000e+00 : f32
    %127 = vector.broadcast %cst_185 : f32 to vector<12x100xf32>
    %128 = arith.maximumf %126, %127 : vector<12x100xf32>
    %c0_186 = arith.constant 0 : index
    %c0_187 = arith.constant 0 : index
    %129 = vector.load %arg13[%c0_186, %c0_187] : memref<4x12xf32, #tpu.memory_space<vmem>>, vector<4x12xf32>
    %cst_188 = arith.constant dense<0.000000e+00> : vector<4x100xf32>
    %130 = tpu.matmul %129, %128, %cst_188 {dimension_numbers = #tpu.dot_dimension_numbers<[1], [0], [0], [1], [0, 0, 1, 1], [], []>} : vector<4x12xf32>, vector<12x100xf32>, vector<4x100xf32> -> vector<4x100xf32>
    %c0_189 = arith.constant 0 : index
    %c0_190 = arith.constant 0 : index
    %131 = vector.load %arg14[%c0_189, %c0_190] : memref<4x1xf32, #tpu.memory_space<vmem>>, vector<4x1xf32>
    %132 = vector.broadcast %131 : vector<4x1xf32> to vector<4x100xf32>
    %133 = arith.addf %130, %132 : vector<4x100xf32>
    %cst_191 = arith.constant 0.000000e+00 : f32
    %134 = vector.broadcast %cst_191 : f32 to vector<4x100xf32>
    %135 = arith.maximumf %133, %134 : vector<4x100xf32>
    %136 = vector.broadcast %0 : vector<1x100xf32> to vector<4x100xf32>
    %137 = arith.mulf %135, %136 : vector<4x100xf32>
    %138 = arith.addf %73, %137 : vector<4x100xf32>
    %c0_192 = arith.constant 0 : index
    %c11_193 = arith.constant 11 : index
    %139 = vector.load %arg42[%c0_192, %c11_193] : memref<4x128xf32, #tpu.memory_space<vmem>>, vector<4x100xf32>
    tpu.vector_store %arg42[%c0_192, %c11_193], %138 {strides = array<i32>} : memref<4x128xf32, #tpu.memory_space<vmem>>, vector<4x100xf32>,
    %c0_194 = arith.constant 0 : index
    %c11_195 = arith.constant 11 : index
    %140 = vector.load %arg42[%c0_194, %c11_195] : memref<4x128xf32, #tpu.memory_space<vmem>>, vector<4x100xf32>
    %c0_196 = arith.constant 0 : index
    %c0_197 = arith.constant 0 : index
    %141 = vector.load %arg42[%c0_196, %c0_197] : memref<4x128xf32, #tpu.memory_space<vmem>>, vector<4x100xf32>
    %c0_198 = arith.constant 0 : index
    %c0_199 = arith.constant 0 : index
    %142 = vector.load %arg43[%c0_198, %c0_199] : memref<36x100xf32, #tpu.memory_space<vmem>>, vector<4x100xf32>
    tpu.vector_store %arg43[%c0_198, %c0_199], %141 {strides = array<i32>} : memref<36x100xf32, #tpu.memory_space<vmem>>, vector<4x100xf32>,
    %c0_200 = arith.constant 0 : index
    %c1_201 = arith.constant 1 : index
    %143 = vector.load %arg42[%c0_200, %c1_201] : memref<4x128xf32, #tpu.memory_space<vmem>>, vector<4x100xf32>
    %c4_202 = arith.constant 4 : index
    %c0_203 = arith.constant 0 : index
    %144 = vector.load %arg43[%c4_202, %c0_203] : memref<36x100xf32, #tpu.memory_space<vmem>>, vector<4x100xf32>
    tpu.vector_store %arg43[%c4_202, %c0_203], %143 {strides = array<i32>} : memref<36x100xf32, #tpu.memory_space<vmem>>, vector<4x100xf32>,
    %c0_204 = arith.constant 0 : index
    %c2_205 = arith.constant 2 : index
    %145 = vector.load %arg42[%c0_204, %c2_205] : memref<4x128xf32, #tpu.memory_space<vmem>>, vector<4x100xf32>
    %c8_206 = arith.constant 8 : index
    %c0_207 = arith.constant 0 : index
    %146 = vector.load %arg43[%c8_206, %c0_207] : memref<36x100xf32, #tpu.memory_space<vmem>>, vector<4x100xf32>
    tpu.vector_store %arg43[%c8_206, %c0_207], %145 {strides = array<i32>} : memref<36x100xf32, #tpu.memory_space<vmem>>, vector<4x100xf32>,
    %c0_208 = arith.constant 0 : index
    %c10_209 = arith.constant 10 : index
    %147 = vector.load %arg42[%c0_208, %c10_209] : memref<4x128xf32, #tpu.memory_space<vmem>>, vector<4x100xf32>
    %c12_210 = arith.constant 12 : index
    %c0_211 = arith.constant 0 : index
    %148 = vector.load %arg43[%c12_210, %c0_211] : memref<36x100xf32, #tpu.memory_space<vmem>>, vector<4x100xf32>
    tpu.vector_store %arg43[%c12_210, %c0_211], %147 {strides = array<i32>} : memref<36x100xf32, #tpu.memory_space<vmem>>, vector<4x100xf32>,
    %c0_212 = arith.constant 0 : index
    %c11_213 = arith.constant 11 : index
    %149 = vector.load %arg42[%c0_212, %c11_213] : memref<4x128xf32, #tpu.memory_space<vmem>>, vector<4x100xf32>
    %c16_214 = arith.constant 16 : index
    %c0_215 = arith.constant 0 : index
    %150 = vector.load %arg43[%c16_214, %c0_215] : memref<36x100xf32, #tpu.memory_space<vmem>>, vector<4x100xf32>
    tpu.vector_store %arg43[%c16_214, %c0_215], %149 {strides = array<i32>} : memref<36x100xf32, #tpu.memory_space<vmem>>, vector<4x100xf32>,
    %c0_216 = arith.constant 0 : index
    %c12_217 = arith.constant 12 : index
    %151 = vector.load %arg42[%c0_216, %c12_217] : memref<4x128xf32, #tpu.memory_space<vmem>>, vector<4x100xf32>
    %c20_218 = arith.constant 20 : index
    %c0_219 = arith.constant 0 : index
    %152 = vector.load %arg43[%c20_218, %c0_219] : memref<36x100xf32, #tpu.memory_space<vmem>>, vector<4x100xf32>
    tpu.vector_store %arg43[%c20_218, %c0_219], %151 {strides = array<i32>} : memref<36x100xf32, #tpu.memory_space<vmem>>, vector<4x100xf32>,
    %c0_220 = arith.constant 0 : index
    %c20_221 = arith.constant 20 : index
    %153 = vector.load %arg42[%c0_220, %c20_221] : memref<4x128xf32, #tpu.memory_space<vmem>>, vector<4x100xf32>
    %c24_222 = arith.constant 24 : index
    %c0_223 = arith.constant 0 : index
    %154 = vector.load %arg43[%c24_222, %c0_223] : memref<36x100xf32, #tpu.memory_space<vmem>>, vector<4x100xf32>
    tpu.vector_store %arg43[%c24_222, %c0_223], %153 {strides = array<i32>} : memref<36x100xf32, #tpu.memory_space<vmem>>, vector<4x100xf32>,
    %c0_224 = arith.constant 0 : index
    %c21_225 = arith.constant 21 : index
    %155 = vector.load %arg42[%c0_224, %c21_225] : memref<4x128xf32, #tpu.memory_space<vmem>>, vector<4x100xf32>
    %c28_226 = arith.constant 28 : index
    %c0_227 = arith.constant 0 : index
    %156 = vector.load %arg43[%c28_226, %c0_227] : memref<36x100xf32, #tpu.memory_space<vmem>>, vector<4x100xf32>
    tpu.vector_store %arg43[%c28_226, %c0_227], %155 {strides = array<i32>} : memref<36x100xf32, #tpu.memory_space<vmem>>, vector<4x100xf32>,
    %c0_228 = arith.constant 0 : index
    %c22_229 = arith.constant 22 : index
    %157 = vector.load %arg42[%c0_228, %c22_229] : memref<4x128xf32, #tpu.memory_space<vmem>>, vector<4x100xf32>
    %c32_230 = arith.constant 32 : index
    %c0_231 = arith.constant 0 : index
    %158 = vector.load %arg43[%c32_230, %c0_231] : memref<36x100xf32, #tpu.memory_space<vmem>>, vector<4x100xf32>
    tpu.vector_store %arg43[%c32_230, %c0_231], %157 {strides = array<i32>} : memref<36x100xf32, #tpu.memory_space<vmem>>, vector<4x100xf32>,
    %c0_232 = arith.constant 0 : index
    %c0_233 = arith.constant 0 : index
    %159 = vector.load %arg15[%c0_232, %c0_233] : memref<4x36xf32, #tpu.memory_space<vmem>>, vector<4x36xf32>
    %c0_234 = arith.constant 0 : index
    %c0_235 = arith.constant 0 : index
    %160 = vector.load %arg43[%c0_234, %c0_235] : memref<36x100xf32, #tpu.memory_space<vmem>>, vector<36x100xf32>
    %cst_236 = arith.constant dense<0.000000e+00> : vector<4x100xf32>
    %161 = tpu.matmul %159, %160, %cst_236 {dimension_numbers = #tpu.dot_dimension_numbers<[1], [0], [0], [1], [0, 0, 1, 1], [], []>} : vector<4x36xf32>, vector<36x100xf32>, vector<4x100xf32> -> vector<4x100xf32>
    %c0_237 = arith.constant 0 : index
    %c0_238 = arith.constant 0 : index
    %162 = vector.load %arg16[%c0_237, %c0_238] : memref<4x1xf32, #tpu.memory_space<vmem>>, vector<4x1xf32>
    %163 = vector.broadcast %162 : vector<4x1xf32> to vector<4x100xf32>
    %164 = arith.addf %161, %163 : vector<4x100xf32>
    %cst_239 = arith.constant 0.000000e+00 : f32
    %165 = vector.broadcast %cst_239 : f32 to vector<4x100xf32>
    %166 = arith.maximumf %164, %165 : vector<4x100xf32>
    %167 = vector.broadcast %0 : vector<1x100xf32> to vector<4x100xf32>
    %168 = arith.mulf %166, %167 : vector<4x100xf32>
    %c0_240 = arith.constant 0 : index
    %c11_241 = arith.constant 11 : index
    %169 = vector.load %arg42[%c0_240, %c11_241] : memref<4x128xf32, #tpu.memory_space<vmem>>, vector<4x100xf32>
    tpu.vector_store %arg42[%c0_240, %c11_241], %168 {strides = array<i32>} : memref<4x128xf32, #tpu.memory_space<vmem>>, vector<4x100xf32>,
    %c0_242 = arith.constant 0 : index
    %c0_243 = arith.constant 0 : index
    %170 = vector.load %arg42[%c0_242, %c0_243] : memref<4x128xf32, #tpu.memory_space<vmem>>, vector<4x100xf32>
    %c0_244 = arith.constant 0 : index
    %c0_245 = arith.constant 0 : index
    %171 = vector.load %arg43[%c0_244, %c0_245] : memref<36x100xf32, #tpu.memory_space<vmem>>, vector<4x100xf32>
    tpu.vector_store %arg43[%c0_244, %c0_245], %170 {strides = array<i32>} : memref<36x100xf32, #tpu.memory_space<vmem>>, vector<4x100xf32>,
    %c0_246 = arith.constant 0 : index
    %c1_247 = arith.constant 1 : index
    %172 = vector.load %arg42[%c0_246, %c1_247] : memref<4x128xf32, #tpu.memory_space<vmem>>, vector<4x100xf32>
    %c4_248 = arith.constant 4 : index
    %c0_249 = arith.constant 0 : index
    %173 = vector.load %arg43[%c4_248, %c0_249] : memref<36x100xf32, #tpu.memory_space<vmem>>, vector<4x100xf32>
    tpu.vector_store %arg43[%c4_248, %c0_249], %172 {strides = array<i32>} : memref<36x100xf32, #tpu.memory_space<vmem>>, vector<4x100xf32>,
    %c0_250 = arith.constant 0 : index
    %c2_251 = arith.constant 2 : index
    %174 = vector.load %arg42[%c0_250, %c2_251] : memref<4x128xf32, #tpu.memory_space<vmem>>, vector<4x100xf32>
    %c8_252 = arith.constant 8 : index
    %c0_253 = arith.constant 0 : index
    %175 = vector.load %arg43[%c8_252, %c0_253] : memref<36x100xf32, #tpu.memory_space<vmem>>, vector<4x100xf32>
    tpu.vector_store %arg43[%c8_252, %c0_253], %174 {strides = array<i32>} : memref<36x100xf32, #tpu.memory_space<vmem>>, vector<4x100xf32>,
    %c0_254 = arith.constant 0 : index
    %c10_255 = arith.constant 10 : index
    %176 = vector.load %arg42[%c0_254, %c10_255] : memref<4x128xf32, #tpu.memory_space<vmem>>, vector<4x100xf32>
    %c12_256 = arith.constant 12 : index
    %c0_257 = arith.constant 0 : index
    %177 = vector.load %arg43[%c12_256, %c0_257] : memref<36x100xf32, #tpu.memory_space<vmem>>, vector<4x100xf32>
    tpu.vector_store %arg43[%c12_256, %c0_257], %176 {strides = array<i32>} : memref<36x100xf32, #tpu.memory_space<vmem>>, vector<4x100xf32>,
    %c0_258 = arith.constant 0 : index
    %c11_259 = arith.constant 11 : index
    %178 = vector.load %arg42[%c0_258, %c11_259] : memref<4x128xf32, #tpu.memory_space<vmem>>, vector<4x100xf32>
    %c16_260 = arith.constant 16 : index
    %c0_261 = arith.constant 0 : index
    %179 = vector.load %arg43[%c16_260, %c0_261] : memref<36x100xf32, #tpu.memory_space<vmem>>, vector<4x100xf32>
    tpu.vector_store %arg43[%c16_260, %c0_261], %178 {strides = array<i32>} : memref<36x100xf32, #tpu.memory_space<vmem>>, vector<4x100xf32>,
    %c0_262 = arith.constant 0 : index
    %c12_263 = arith.constant 12 : index
    %180 = vector.load %arg42[%c0_262, %c12_263] : memref<4x128xf32, #tpu.memory_space<vmem>>, vector<4x100xf32>
    %c20_264 = arith.constant 20 : index
    %c0_265 = arith.constant 0 : index
    %181 = vector.load %arg43[%c20_264, %c0_265] : memref<36x100xf32, #tpu.memory_space<vmem>>, vector<4x100xf32>
    tpu.vector_store %arg43[%c20_264, %c0_265], %180 {strides = array<i32>} : memref<36x100xf32, #tpu.memory_space<vmem>>, vector<4x100xf32>,
    %c0_266 = arith.constant 0 : index
    %c20_267 = arith.constant 20 : index
    %182 = vector.load %arg42[%c0_266, %c20_267] : memref<4x128xf32, #tpu.memory_space<vmem>>, vector<4x100xf32>
    %c24_268 = arith.constant 24 : index
    %c0_269 = arith.constant 0 : index
    %183 = vector.load %arg43[%c24_268, %c0_269] : memref<36x100xf32, #tpu.memory_space<vmem>>, vector<4x100xf32>
    tpu.vector_store %arg43[%c24_268, %c0_269], %182 {strides = array<i32>} : memref<36x100xf32, #tpu.memory_space<vmem>>, vector<4x100xf32>,
    %c0_270 = arith.constant 0 : index
    %c21_271 = arith.constant 21 : index
    %184 = vector.load %arg42[%c0_270, %c21_271] : memref<4x128xf32, #tpu.memory_space<vmem>>, vector<4x100xf32>
    %c28_272 = arith.constant 28 : index
    %c0_273 = arith.constant 0 : index
    %185 = vector.load %arg43[%c28_272, %c0_273] : memref<36x100xf32, #tpu.memory_space<vmem>>, vector<4x100xf32>
    tpu.vector_store %arg43[%c28_272, %c0_273], %184 {strides = array<i32>} : memref<36x100xf32, #tpu.memory_space<vmem>>, vector<4x100xf32>,
    %c0_274 = arith.constant 0 : index
    %c22_275 = arith.constant 22 : index
    %186 = vector.load %arg42[%c0_274, %c22_275] : memref<4x128xf32, #tpu.memory_space<vmem>>, vector<4x100xf32>
    %c32_276 = arith.constant 32 : index
    %c0_277 = arith.constant 0 : index
    %187 = vector.load %arg43[%c32_276, %c0_277] : memref<36x100xf32, #tpu.memory_space<vmem>>, vector<4x100xf32>
    tpu.vector_store %arg43[%c32_276, %c0_277], %186 {strides = array<i32>} : memref<36x100xf32, #tpu.memory_space<vmem>>, vector<4x100xf32>,
    %c0_278 = arith.constant 0 : index
    %c0_279 = arith.constant 0 : index
    %188 = vector.load %arg17[%c0_278, %c0_279] : memref<12x36xf32, #tpu.memory_space<vmem>>, vector<12x36xf32>
    %c0_280 = arith.constant 0 : index
    %c0_281 = arith.constant 0 : index
    %189 = vector.load %arg43[%c0_280, %c0_281] : memref<36x100xf32, #tpu.memory_space<vmem>>, vector<36x100xf32>
    %cst_282 = arith.constant dense<0.000000e+00> : vector<12x100xf32>
    %190 = tpu.matmul %188, %189, %cst_282 {dimension_numbers = #tpu.dot_dimension_numbers<[1], [0], [0], [1], [0, 0, 1, 1], [], []>} : vector<12x36xf32>, vector<36x100xf32>, vector<12x100xf32> -> vector<12x100xf32>
    %c0_283 = arith.constant 0 : index
    %c0_284 = arith.constant 0 : index
    %191 = vector.load %arg18[%c0_283, %c0_284] : memref<12x1xf32, #tpu.memory_space<vmem>>, vector<12x1xf32>
    %192 = vector.broadcast %191 : vector<12x1xf32> to vector<12x100xf32>
    %193 = arith.addf %190, %192 : vector<12x100xf32>
    %cst_285 = arith.constant 0.000000e+00 : f32
    %194 = vector.broadcast %cst_285 : f32 to vector<12x100xf32>
    %195 = arith.maximumf %193, %194 : vector<12x100xf32>
    %c0_286 = arith.constant 0 : index
    %c0_287 = arith.constant 0 : index
    %196 = vector.load %arg19[%c0_286, %c0_287] : memref<4x12xf32, #tpu.memory_space<vmem>>, vector<4x12xf32>
    %cst_288 = arith.constant dense<0.000000e+00> : vector<4x100xf32>
    %197 = tpu.matmul %196, %195, %cst_288 {dimension_numbers = #tpu.dot_dimension_numbers<[1], [0], [0], [1], [0, 0, 1, 1], [], []>} : vector<4x12xf32>, vector<12x100xf32>, vector<4x100xf32> -> vector<4x100xf32>
    %c0_289 = arith.constant 0 : index
    %c0_290 = arith.constant 0 : index
    %198 = vector.load %arg20[%c0_289, %c0_290] : memref<4x1xf32, #tpu.memory_space<vmem>>, vector<4x1xf32>
    %199 = vector.broadcast %198 : vector<4x1xf32> to vector<4x100xf32>
    %200 = arith.addf %197, %199 : vector<4x100xf32>
    %cst_291 = arith.constant 0.000000e+00 : f32
    %201 = vector.broadcast %cst_291 : f32 to vector<4x100xf32>
    %202 = arith.maximumf %200, %201 : vector<4x100xf32>
    %203 = vector.broadcast %0 : vector<1x100xf32> to vector<4x100xf32>
    %204 = arith.mulf %202, %203 : vector<4x100xf32>
    %205 = arith.addf %140, %204 : vector<4x100xf32>
    %c0_292 = arith.constant 0 : index
    %c11_293 = arith.constant 11 : index
    %206 = vector.load %arg42[%c0_292, %c11_293] : memref<4x128xf32, #tpu.memory_space<vmem>>, vector<4x100xf32>
    tpu.vector_store %arg42[%c0_292, %c11_293], %205 {strides = array<i32>} : memref<4x128xf32, #tpu.memory_space<vmem>>, vector<4x100xf32>,
    %c0_294 = arith.constant 0 : index
    %c11_295 = arith.constant 11 : index
    %207 = vector.load %arg42[%c0_294, %c11_295] : memref<4x128xf32, #tpu.memory_space<vmem>>, vector<4x100xf32>
    %c0_296 = arith.constant 0 : index
    %c0_297 = arith.constant 0 : index
    %208 = vector.load %arg42[%c0_296, %c0_297] : memref<4x128xf32, #tpu.memory_space<vmem>>, vector<4x100xf32>
    %c0_298 = arith.constant 0 : index
    %c0_299 = arith.constant 0 : index
    %209 = vector.load %arg43[%c0_298, %c0_299] : memref<36x100xf32, #tpu.memory_space<vmem>>, vector<4x100xf32>
    tpu.vector_store %arg43[%c0_298, %c0_299], %208 {strides = array<i32>} : memref<36x100xf32, #tpu.memory_space<vmem>>, vector<4x100xf32>,
    %c0_300 = arith.constant 0 : index
    %c1_301 = arith.constant 1 : index
    %210 = vector.load %arg42[%c0_300, %c1_301] : memref<4x128xf32, #tpu.memory_space<vmem>>, vector<4x100xf32>
    %c4_302 = arith.constant 4 : index
    %c0_303 = arith.constant 0 : index
    %211 = vector.load %arg43[%c4_302, %c0_303] : memref<36x100xf32, #tpu.memory_space<vmem>>, vector<4x100xf32>
    tpu.vector_store %arg43[%c4_302, %c0_303], %210 {strides = array<i32>} : memref<36x100xf32, #tpu.memory_space<vmem>>, vector<4x100xf32>,
    %c0_304 = arith.constant 0 : index
    %c2_305 = arith.constant 2 : index
    %212 = vector.load %arg42[%c0_304, %c2_305] : memref<4x128xf32, #tpu.memory_space<vmem>>, vector<4x100xf32>
    %c8_306 = arith.constant 8 : index
    %c0_307 = arith.constant 0 : index
    %213 = vector.load %arg43[%c8_306, %c0_307] : memref<36x100xf32, #tpu.memory_space<vmem>>, vector<4x100xf32>
    tpu.vector_store %arg43[%c8_306, %c0_307], %212 {strides = array<i32>} : memref<36x100xf32, #tpu.memory_space<vmem>>, vector<4x100xf32>,
    %c0_308 = arith.constant 0 : index
    %c10_309 = arith.constant 10 : index
    %214 = vector.load %arg42[%c0_308, %c10_309] : memref<4x128xf32, #tpu.memory_space<vmem>>, vector<4x100xf32>
    %c12_310 = arith.constant 12 : index
    %c0_311 = arith.constant 0 : index
    %215 = vector.load %arg43[%c12_310, %c0_311] : memref<36x100xf32, #tpu.memory_space<vmem>>, vector<4x100xf32>
    tpu.vector_store %arg43[%c12_310, %c0_311], %214 {strides = array<i32>} : memref<36x100xf32, #tpu.memory_space<vmem>>, vector<4x100xf32>,
    %c0_312 = arith.constant 0 : index
    %c11_313 = arith.constant 11 : index
    %216 = vector.load %arg42[%c0_312, %c11_313] : memref<4x128xf32, #tpu.memory_space<vmem>>, vector<4x100xf32>
    %c16_314 = arith.constant 16 : index
    %c0_315 = arith.constant 0 : index
    %217 = vector.load %arg43[%c16_314, %c0_315] : memref<36x100xf32, #tpu.memory_space<vmem>>, vector<4x100xf32>
    tpu.vector_store %arg43[%c16_314, %c0_315], %216 {strides = array<i32>} : memref<36x100xf32, #tpu.memory_space<vmem>>, vector<4x100xf32>,
    %c0_316 = arith.constant 0 : index
    %c12_317 = arith.constant 12 : index
    %218 = vector.load %arg42[%c0_316, %c12_317] : memref<4x128xf32, #tpu.memory_space<vmem>>, vector<4x100xf32>
    %c20_318 = arith.constant 20 : index
    %c0_319 = arith.constant 0 : index
    %219 = vector.load %arg43[%c20_318, %c0_319] : memref<36x100xf32, #tpu.memory_space<vmem>>, vector<4x100xf32>
    tpu.vector_store %arg43[%c20_318, %c0_319], %218 {strides = array<i32>} : memref<36x100xf32, #tpu.memory_space<vmem>>, vector<4x100xf32>,
    %c0_320 = arith.constant 0 : index
    %c20_321 = arith.constant 20 : index
    %220 = vector.load %arg42[%c0_320, %c20_321] : memref<4x128xf32, #tpu.memory_space<vmem>>, vector<4x100xf32>
    %c24_322 = arith.constant 24 : index
    %c0_323 = arith.constant 0 : index
    %221 = vector.load %arg43[%c24_322, %c0_323] : memref<36x100xf32, #tpu.memory_space<vmem>>, vector<4x100xf32>
    tpu.vector_store %arg43[%c24_322, %c0_323], %220 {strides = array<i32>} : memref<36x100xf32, #tpu.memory_space<vmem>>, vector<4x100xf32>,
    %c0_324 = arith.constant 0 : index
    %c21_325 = arith.constant 21 : index
    %222 = vector.load %arg42[%c0_324, %c21_325] : memref<4x128xf32, #tpu.memory_space<vmem>>, vector<4x100xf32>
    %c28_326 = arith.constant 28 : index
    %c0_327 = arith.constant 0 : index
    %223 = vector.load %arg43[%c28_326, %c0_327] : memref<36x100xf32, #tpu.memory_space<vmem>>, vector<4x100xf32>
    tpu.vector_store %arg43[%c28_326, %c0_327], %222 {strides = array<i32>} : memref<36x100xf32, #tpu.memory_space<vmem>>, vector<4x100xf32>,
    %c0_328 = arith.constant 0 : index
    %c22_329 = arith.constant 22 : index
    %224 = vector.load %arg42[%c0_328, %c22_329] : memref<4x128xf32, #tpu.memory_space<vmem>>, vector<4x100xf32>
    %c32_330 = arith.constant 32 : index
    %c0_331 = arith.constant 0 : index
    %225 = vector.load %arg43[%c32_330, %c0_331] : memref<36x100xf32, #tpu.memory_space<vmem>>, vector<4x100xf32>
    tpu.vector_store %arg43[%c32_330, %c0_331], %224 {strides = array<i32>} : memref<36x100xf32, #tpu.memory_space<vmem>>, vector<4x100xf32>,
    %c0_332 = arith.constant 0 : index
    %c0_333 = arith.constant 0 : index
    %226 = vector.load %arg21[%c0_332, %c0_333] : memref<4x36xf32, #tpu.memory_space<vmem>>, vector<4x36xf32>
    %c0_334 = arith.constant 0 : index
    %c0_335 = arith.constant 0 : index
    %227 = vector.load %arg43[%c0_334, %c0_335] : memref<36x100xf32, #tpu.memory_space<vmem>>, vector<36x100xf32>
    %cst_336 = arith.constant dense<0.000000e+00> : vector<4x100xf32>
    %228 = tpu.matmul %226, %227, %cst_336 {dimension_numbers = #tpu.dot_dimension_numbers<[1], [0], [0], [1], [0, 0, 1, 1], [], []>} : vector<4x36xf32>, vector<36x100xf32>, vector<4x100xf32> -> vector<4x100xf32>
    %c0_337 = arith.constant 0 : index
    %c0_338 = arith.constant 0 : index
    %229 = vector.load %arg22[%c0_337, %c0_338] : memref<4x1xf32, #tpu.memory_space<vmem>>, vector<4x1xf32>
    %230 = vector.broadcast %229 : vector<4x1xf32> to vector<4x100xf32>
    %231 = arith.addf %228, %230 : vector<4x100xf32>
    %cst_339 = arith.constant 0.000000e+00 : f32
    %232 = vector.broadcast %cst_339 : f32 to vector<4x100xf32>
    %233 = arith.maximumf %231, %232 : vector<4x100xf32>
    %234 = vector.broadcast %0 : vector<1x100xf32> to vector<4x100xf32>
    %235 = arith.mulf %233, %234 : vector<4x100xf32>
    %c0_340 = arith.constant 0 : index
    %c11_341 = arith.constant 11 : index
    %236 = vector.load %arg42[%c0_340, %c11_341] : memref<4x128xf32, #tpu.memory_space<vmem>>, vector<4x100xf32>
    tpu.vector_store %arg42[%c0_340, %c11_341], %235 {strides = array<i32>} : memref<4x128xf32, #tpu.memory_space<vmem>>, vector<4x100xf32>,
    %c0_342 = arith.constant 0 : index
    %c0_343 = arith.constant 0 : index
    %237 = vector.load %arg42[%c0_342, %c0_343] : memref<4x128xf32, #tpu.memory_space<vmem>>, vector<4x100xf32>
    %c0_344 = arith.constant 0 : index
    %c0_345 = arith.constant 0 : index
    %238 = vector.load %arg43[%c0_344, %c0_345] : memref<36x100xf32, #tpu.memory_space<vmem>>, vector<4x100xf32>
    tpu.vector_store %arg43[%c0_344, %c0_345], %237 {strides = array<i32>} : memref<36x100xf32, #tpu.memory_space<vmem>>, vector<4x100xf32>,
    %c0_346 = arith.constant 0 : index
    %c1_347 = arith.constant 1 : index
    %239 = vector.load %arg42[%c0_346, %c1_347] : memref<4x128xf32, #tpu.memory_space<vmem>>, vector<4x100xf32>
    %c4_348 = arith.constant 4 : index
    %c0_349 = arith.constant 0 : index
    %240 = vector.load %arg43[%c4_348, %c0_349] : memref<36x100xf32, #tpu.memory_space<vmem>>, vector<4x100xf32>
    tpu.vector_store %arg43[%c4_348, %c0_349], %239 {strides = array<i32>} : memref<36x100xf32, #tpu.memory_space<vmem>>, vector<4x100xf32>,
    %c0_350 = arith.constant 0 : index
    %c2_351 = arith.constant 2 : index
    %241 = vector.load %arg42[%c0_350, %c2_351] : memref<4x128xf32, #tpu.memory_space<vmem>>, vector<4x100xf32>
    %c8_352 = arith.constant 8 : index
    %c0_353 = arith.constant 0 : index
    %242 = vector.load %arg43[%c8_352, %c0_353] : memref<36x100xf32, #tpu.memory_space<vmem>>, vector<4x100xf32>
    tpu.vector_store %arg43[%c8_352, %c0_353], %241 {strides = array<i32>} : memref<36x100xf32, #tpu.memory_space<vmem>>, vector<4x100xf32>,
    %c0_354 = arith.constant 0 : index
    %c10_355 = arith.constant 10 : index
    %243 = vector.load %arg42[%c0_354, %c10_355] : memref<4x128xf32, #tpu.memory_space<vmem>>, vector<4x100xf32>
    %c12_356 = arith.constant 12 : index
    %c0_357 = arith.constant 0 : index
    %244 = vector.load %arg43[%c12_356, %c0_357] : memref<36x100xf32, #tpu.memory_space<vmem>>, vector<4x100xf32>
    tpu.vector_store %arg43[%c12_356, %c0_357], %243 {strides = array<i32>} : memref<36x100xf32, #tpu.memory_space<vmem>>, vector<4x100xf32>,
    %c0_358 = arith.constant 0 : index
    %c11_359 = arith.constant 11 : index
    %245 = vector.load %arg42[%c0_358, %c11_359] : memref<4x128xf32, #tpu.memory_space<vmem>>, vector<4x100xf32>
    %c16_360 = arith.constant 16 : index
    %c0_361 = arith.constant 0 : index
    %246 = vector.load %arg43[%c16_360, %c0_361] : memref<36x100xf32, #tpu.memory_space<vmem>>, vector<4x100xf32>
    tpu.vector_store %arg43[%c16_360, %c0_361], %245 {strides = array<i32>} : memref<36x100xf32, #tpu.memory_space<vmem>>, vector<4x100xf32>,
    %c0_362 = arith.constant 0 : index
    %c12_363 = arith.constant 12 : index
    %247 = vector.load %arg42[%c0_362, %c12_363] : memref<4x128xf32, #tpu.memory_space<vmem>>, vector<4x100xf32>
    %c20_364 = arith.constant 20 : index
    %c0_365 = arith.constant 0 : index
    %248 = vector.load %arg43[%c20_364, %c0_365] : memref<36x100xf32, #tpu.memory_space<vmem>>, vector<4x100xf32>
    tpu.vector_store %arg43[%c20_364, %c0_365], %247 {strides = array<i32>} : memref<36x100xf32, #tpu.memory_space<vmem>>, vector<4x100xf32>,
    %c0_366 = arith.constant 0 : index
    %c20_367 = arith.constant 20 : index
    %249 = vector.load %arg42[%c0_366, %c20_367] : memref<4x128xf32, #tpu.memory_space<vmem>>, vector<4x100xf32>
    %c24_368 = arith.constant 24 : index
    %c0_369 = arith.constant 0 : index
    %250 = vector.load %arg43[%c24_368, %c0_369] : memref<36x100xf32, #tpu.memory_space<vmem>>, vector<4x100xf32>
    tpu.vector_store %arg43[%c24_368, %c0_369], %249 {strides = array<i32>} : memref<36x100xf32, #tpu.memory_space<vmem>>, vector<4x100xf32>,
    %c0_370 = arith.constant 0 : index
    %c21_371 = arith.constant 21 : index
    %251 = vector.load %arg42[%c0_370, %c21_371] : memref<4x128xf32, #tpu.memory_space<vmem>>, vector<4x100xf32>
    %c28_372 = arith.constant 28 : index
    %c0_373 = arith.constant 0 : index
    %252 = vector.load %arg43[%c28_372, %c0_373] : memref<36x100xf32, #tpu.memory_space<vmem>>, vector<4x100xf32>
    tpu.vector_store %arg43[%c28_372, %c0_373], %251 {strides = array<i32>} : memref<36x100xf32, #tpu.memory_space<vmem>>, vector<4x100xf32>,
    %c0_374 = arith.constant 0 : index
    %c22_375 = arith.constant 22 : index
    %253 = vector.load %arg42[%c0_374, %c22_375] : memref<4x128xf32, #tpu.memory_space<vmem>>, vector<4x100xf32>
    %c32_376 = arith.constant 32 : index
    %c0_377 = arith.constant 0 : index
    %254 = vector.load %arg43[%c32_376, %c0_377] : memref<36x100xf32, #tpu.memory_space<vmem>>, vector<4x100xf32>
    tpu.vector_store %arg43[%c32_376, %c0_377], %253 {strides = array<i32>} : memref<36x100xf32, #tpu.memory_space<vmem>>, vector<4x100xf32>,
    %c0_378 = arith.constant 0 : index
    %c0_379 = arith.constant 0 : index
    %255 = vector.load %arg23[%c0_378, %c0_379] : memref<12x36xf32, #tpu.memory_space<vmem>>, vector<12x36xf32>
    %c0_380 = arith.constant 0 : index
    %c0_381 = arith.constant 0 : index
    %256 = vector.load %arg43[%c0_380, %c0_381] : memref<36x100xf32, #tpu.memory_space<vmem>>, vector<36x100xf32>
    %cst_382 = arith.constant dense<0.000000e+00> : vector<12x100xf32>
    %257 = tpu.matmul %255, %256, %cst_382 {dimension_numbers = #tpu.dot_dimension_numbers<[1], [0], [0], [1], [0, 0, 1, 1], [], []>} : vector<12x36xf32>, vector<36x100xf32>, vector<12x100xf32> -> vector<12x100xf32>
    %c0_383 = arith.constant 0 : index
    %c0_384 = arith.constant 0 : index
    %258 = vector.load %arg24[%c0_383, %c0_384] : memref<12x1xf32, #tpu.memory_space<vmem>>, vector<12x1xf32>
    %259 = vector.broadcast %258 : vector<12x1xf32> to vector<12x100xf32>
    %260 = arith.addf %257, %259 : vector<12x100xf32>
    %cst_385 = arith.constant 0.000000e+00 : f32
    %261 = vector.broadcast %cst_385 : f32 to vector<12x100xf32>
    %262 = arith.maximumf %260, %261 : vector<12x100xf32>
    %c0_386 = arith.constant 0 : index
    %c0_387 = arith.constant 0 : index
    %263 = vector.load %arg25[%c0_386, %c0_387] : memref<4x12xf32, #tpu.memory_space<vmem>>, vector<4x12xf32>
    %cst_388 = arith.constant dense<0.000000e+00> : vector<4x100xf32>
    %264 = tpu.matmul %263, %262, %cst_388 {dimension_numbers = #tpu.dot_dimension_numbers<[1], [0], [0], [1], [0, 0, 1, 1], [], []>} : vector<4x12xf32>, vector<12x100xf32>, vector<4x100xf32> -> vector<4x100xf32>
    %c0_389 = arith.constant 0 : index
    %c0_390 = arith.constant 0 : index
    %265 = vector.load %arg26[%c0_389, %c0_390] : memref<4x1xf32, #tpu.memory_space<vmem>>, vector<4x1xf32>
    %266 = vector.broadcast %265 : vector<4x1xf32> to vector<4x100xf32>
    %267 = arith.addf %264, %266 : vector<4x100xf32>
    %cst_391 = arith.constant 0.000000e+00 : f32
    %268 = vector.broadcast %cst_391 : f32 to vector<4x100xf32>
    %269 = arith.maximumf %267, %268 : vector<4x100xf32>
    %270 = vector.broadcast %0 : vector<1x100xf32> to vector<4x100xf32>
    %271 = arith.mulf %269, %270 : vector<4x100xf32>
    %272 = arith.addf %207, %271 : vector<4x100xf32>
    %c0_392 = arith.constant 0 : index
    %c11_393 = arith.constant 11 : index
    %273 = vector.load %arg42[%c0_392, %c11_393] : memref<4x128xf32, #tpu.memory_space<vmem>>, vector<4x100xf32>
    tpu.vector_store %arg42[%c0_392, %c11_393], %272 {strides = array<i32>} : memref<4x128xf32, #tpu.memory_space<vmem>>, vector<4x100xf32>,
    %c0_394 = arith.constant 0 : index
    %c11_395 = arith.constant 11 : index
    %274 = vector.load %arg42[%c0_394, %c11_395] : memref<4x128xf32, #tpu.memory_space<vmem>>, vector<4x100xf32>
    %c0_396 = arith.constant 0 : index
    %c0_397 = arith.constant 0 : index
    %275 = vector.load %arg42[%c0_396, %c0_397] : memref<4x128xf32, #tpu.memory_space<vmem>>, vector<4x100xf32>
    %c0_398 = arith.constant 0 : index
    %c0_399 = arith.constant 0 : index
    %276 = vector.load %arg43[%c0_398, %c0_399] : memref<36x100xf32, #tpu.memory_space<vmem>>, vector<4x100xf32>
    tpu.vector_store %arg43[%c0_398, %c0_399], %275 {strides = array<i32>} : memref<36x100xf32, #tpu.memory_space<vmem>>, vector<4x100xf32>,
    %c0_400 = arith.constant 0 : index
    %c1_401 = arith.constant 1 : index
    %277 = vector.load %arg42[%c0_400, %c1_401] : memref<4x128xf32, #tpu.memory_space<vmem>>, vector<4x100xf32>
    %c4_402 = arith.constant 4 : index
    %c0_403 = arith.constant 0 : index
    %278 = vector.load %arg43[%c4_402, %c0_403] : memref<36x100xf32, #tpu.memory_space<vmem>>, vector<4x100xf32>
    tpu.vector_store %arg43[%c4_402, %c0_403], %277 {strides = array<i32>} : memref<36x100xf32, #tpu.memory_space<vmem>>, vector<4x100xf32>,
    %c0_404 = arith.constant 0 : index
    %c2_405 = arith.constant 2 : index
    %279 = vector.load %arg42[%c0_404, %c2_405] : memref<4x128xf32, #tpu.memory_space<vmem>>, vector<4x100xf32>
    %c8_406 = arith.constant 8 : index
    %c0_407 = arith.constant 0 : index
    %280 = vector.load %arg43[%c8_406, %c0_407] : memref<36x100xf32, #tpu.memory_space<vmem>>, vector<4x100xf32>
    tpu.vector_store %arg43[%c8_406, %c0_407], %279 {strides = array<i32>} : memref<36x100xf32, #tpu.memory_space<vmem>>, vector<4x100xf32>,
    %c0_408 = arith.constant 0 : index
    %c10_409 = arith.constant 10 : index
    %281 = vector.load %arg42[%c0_408, %c10_409] : memref<4x128xf32, #tpu.memory_space<vmem>>, vector<4x100xf32>
    %c12_410 = arith.constant 12 : index
    %c0_411 = arith.constant 0 : index
    %282 = vector.load %arg43[%c12_410, %c0_411] : memref<36x100xf32, #tpu.memory_space<vmem>>, vector<4x100xf32>
    tpu.vector_store %arg43[%c12_410, %c0_411], %281 {strides = array<i32>} : memref<36x100xf32, #tpu.memory_space<vmem>>, vector<4x100xf32>,
    %c0_412 = arith.constant 0 : index
    %c11_413 = arith.constant 11 : index
    %283 = vector.load %arg42[%c0_412, %c11_413] : memref<4x128xf32, #tpu.memory_space<vmem>>, vector<4x100xf32>
    %c16_414 = arith.constant 16 : index
    %c0_415 = arith.constant 0 : index
    %284 = vector.load %arg43[%c16_414, %c0_415] : memref<36x100xf32, #tpu.memory_space<vmem>>, vector<4x100xf32>
    tpu.vector_store %arg43[%c16_414, %c0_415], %283 {strides = array<i32>} : memref<36x100xf32, #tpu.memory_space<vmem>>, vector<4x100xf32>,
    %c0_416 = arith.constant 0 : index
    %c12_417 = arith.constant 12 : index
    %285 = vector.load %arg42[%c0_416, %c12_417] : memref<4x128xf32, #tpu.memory_space<vmem>>, vector<4x100xf32>
    %c20_418 = arith.constant 20 : index
    %c0_419 = arith.constant 0 : index
    %286 = vector.load %arg43[%c20_418, %c0_419] : memref<36x100xf32, #tpu.memory_space<vmem>>, vector<4x100xf32>
    tpu.vector_store %arg43[%c20_418, %c0_419], %285 {strides = array<i32>} : memref<36x100xf32, #tpu.memory_space<vmem>>, vector<4x100xf32>,
    %c0_420 = arith.constant 0 : index
    %c20_421 = arith.constant 20 : index
    %287 = vector.load %arg42[%c0_420, %c20_421] : memref<4x128xf32, #tpu.memory_space<vmem>>, vector<4x100xf32>
    %c24_422 = arith.constant 24 : index
    %c0_423 = arith.constant 0 : index
    %288 = vector.load %arg43[%c24_422, %c0_423] : memref<36x100xf32, #tpu.memory_space<vmem>>, vector<4x100xf32>
    tpu.vector_store %arg43[%c24_422, %c0_423], %287 {strides = array<i32>} : memref<36x100xf32, #tpu.memory_space<vmem>>, vector<4x100xf32>,
    %c0_424 = arith.constant 0 : index
    %c21_425 = arith.constant 21 : index
    %289 = vector.load %arg42[%c0_424, %c21_425] : memref<4x128xf32, #tpu.memory_space<vmem>>, vector<4x100xf32>
    %c28_426 = arith.constant 28 : index
    %c0_427 = arith.constant 0 : index
    %290 = vector.load %arg43[%c28_426, %c0_427] : memref<36x100xf32, #tpu.memory_space<vmem>>, vector<4x100xf32>
    tpu.vector_store %arg43[%c28_426, %c0_427], %289 {strides = array<i32>} : memref<36x100xf32, #tpu.memory_space<vmem>>, vector<4x100xf32>,
    %c0_428 = arith.constant 0 : index
    %c22_429 = arith.constant 22 : index
    %291 = vector.load %arg42[%c0_428, %c22_429] : memref<4x128xf32, #tpu.memory_space<vmem>>, vector<4x100xf32>
    %c32_430 = arith.constant 32 : index
    %c0_431 = arith.constant 0 : index
    %292 = vector.load %arg43[%c32_430, %c0_431] : memref<36x100xf32, #tpu.memory_space<vmem>>, vector<4x100xf32>
    tpu.vector_store %arg43[%c32_430, %c0_431], %291 {strides = array<i32>} : memref<36x100xf32, #tpu.memory_space<vmem>>, vector<4x100xf32>,
    %c0_432 = arith.constant 0 : index
    %c0_433 = arith.constant 0 : index
    %293 = vector.load %arg27[%c0_432, %c0_433] : memref<4x36xf32, #tpu.memory_space<vmem>>, vector<4x36xf32>
    %c0_434 = arith.constant 0 : index
    %c0_435 = arith.constant 0 : index
    %294 = vector.load %arg43[%c0_434, %c0_435] : memref<36x100xf32, #tpu.memory_space<vmem>>, vector<36x100xf32>
    %cst_436 = arith.constant dense<0.000000e+00> : vector<4x100xf32>
    %295 = tpu.matmul %293, %294, %cst_436 {dimension_numbers = #tpu.dot_dimension_numbers<[1], [0], [0], [1], [0, 0, 1, 1], [], []>} : vector<4x36xf32>, vector<36x100xf32>, vector<4x100xf32> -> vector<4x100xf32>
    %c0_437 = arith.constant 0 : index
    %c0_438 = arith.constant 0 : index
    %296 = vector.load %arg28[%c0_437, %c0_438] : memref<4x1xf32, #tpu.memory_space<vmem>>, vector<4x1xf32>
    %297 = vector.broadcast %296 : vector<4x1xf32> to vector<4x100xf32>
    %298 = arith.addf %295, %297 : vector<4x100xf32>
    %cst_439 = arith.constant 0.000000e+00 : f32
    %299 = vector.broadcast %cst_439 : f32 to vector<4x100xf32>
    %300 = arith.maximumf %298, %299 : vector<4x100xf32>
    %301 = vector.broadcast %0 : vector<1x100xf32> to vector<4x100xf32>
    %302 = arith.mulf %300, %301 : vector<4x100xf32>
    %c0_440 = arith.constant 0 : index
    %c11_441 = arith.constant 11 : index
    %303 = vector.load %arg42[%c0_440, %c11_441] : memref<4x128xf32, #tpu.memory_space<vmem>>, vector<4x100xf32>
    tpu.vector_store %arg42[%c0_440, %c11_441], %302 {strides = array<i32>} : memref<4x128xf32, #tpu.memory_space<vmem>>, vector<4x100xf32>,
    %c0_442 = arith.constant 0 : index
    %c0_443 = arith.constant 0 : index
    %304 = vector.load %arg42[%c0_442, %c0_443] : memref<4x128xf32, #tpu.memory_space<vmem>>, vector<4x100xf32>
    %c0_444 = arith.constant 0 : index
    %c0_445 = arith.constant 0 : index
    %305 = vector.load %arg43[%c0_444, %c0_445] : memref<36x100xf32, #tpu.memory_space<vmem>>, vector<4x100xf32>
    tpu.vector_store %arg43[%c0_444, %c0_445], %304 {strides = array<i32>} : memref<36x100xf32, #tpu.memory_space<vmem>>, vector<4x100xf32>,
    %c0_446 = arith.constant 0 : index
    %c1_447 = arith.constant 1 : index
    %306 = vector.load %arg42[%c0_446, %c1_447] : memref<4x128xf32, #tpu.memory_space<vmem>>, vector<4x100xf32>
    %c4_448 = arith.constant 4 : index
    %c0_449 = arith.constant 0 : index
    %307 = vector.load %arg43[%c4_448, %c0_449] : memref<36x100xf32, #tpu.memory_space<vmem>>, vector<4x100xf32>
    tpu.vector_store %arg43[%c4_448, %c0_449], %306 {strides = array<i32>} : memref<36x100xf32, #tpu.memory_space<vmem>>, vector<4x100xf32>,
    %c0_450 = arith.constant 0 : index
    %c2_451 = arith.constant 2 : index
    %308 = vector.load %arg42[%c0_450, %c2_451] : memref<4x128xf32, #tpu.memory_space<vmem>>, vector<4x100xf32>
    %c8_452 = arith.constant 8 : index
    %c0_453 = arith.constant 0 : index
    %309 = vector.load %arg43[%c8_452, %c0_453] : memref<36x100xf32, #tpu.memory_space<vmem>>, vector<4x100xf32>
    tpu.vector_store %arg43[%c8_452, %c0_453], %308 {strides = array<i32>} : memref<36x100xf32, #tpu.memory_space<vmem>>, vector<4x100xf32>,
    %c0_454 = arith.constant 0 : index
    %c10_455 = arith.constant 10 : index
    %310 = vector.load %arg42[%c0_454, %c10_455] : memref<4x128xf32, #tpu.memory_space<vmem>>, vector<4x100xf32>
    %c12_456 = arith.constant 12 : index
    %c0_457 = arith.constant 0 : index
    %311 = vector.load %arg43[%c12_456, %c0_457] : memref<36x100xf32, #tpu.memory_space<vmem>>, vector<4x100xf32>
    tpu.vector_store %arg43[%c12_456, %c0_457], %310 {strides = array<i32>} : memref<36x100xf32, #tpu.memory_space<vmem>>, vector<4x100xf32>,
    %c0_458 = arith.constant 0 : index
    %c11_459 = arith.constant 11 : index
    %312 = vector.load %arg42[%c0_458, %c11_459] : memref<4x128xf32, #tpu.memory_space<vmem>>, vector<4x100xf32>
    %c16_460 = arith.constant 16 : index
    %c0_461 = arith.constant 0 : index
    %313 = vector.load %arg43[%c16_460, %c0_461] : memref<36x100xf32, #tpu.memory_space<vmem>>, vector<4x100xf32>
    tpu.vector_store %arg43[%c16_460, %c0_461], %312 {strides = array<i32>} : memref<36x100xf32, #tpu.memory_space<vmem>>, vector<4x100xf32>,
    %c0_462 = arith.constant 0 : index
    %c12_463 = arith.constant 12 : index
    %314 = vector.load %arg42[%c0_462, %c12_463] : memref<4x128xf32, #tpu.memory_space<vmem>>, vector<4x100xf32>
    %c20_464 = arith.constant 20 : index
    %c0_465 = arith.constant 0 : index
    %315 = vector.load %arg43[%c20_464, %c0_465] : memref<36x100xf32, #tpu.memory_space<vmem>>, vector<4x100xf32>
    tpu.vector_store %arg43[%c20_464, %c0_465], %314 {strides = array<i32>} : memref<36x100xf32, #tpu.memory_space<vmem>>, vector<4x100xf32>,
    %c0_466 = arith.constant 0 : index
    %c20_467 = arith.constant 20 : index
    %316 = vector.load %arg42[%c0_466, %c20_467] : memref<4x128xf32, #tpu.memory_space<vmem>>, vector<4x100xf32>
    %c24_468 = arith.constant 24 : index
    %c0_469 = arith.constant 0 : index
    %317 = vector.load %arg43[%c24_468, %c0_469] : memref<36x100xf32, #tpu.memory_space<vmem>>, vector<4x100xf32>
    tpu.vector_store %arg43[%c24_468, %c0_469], %316 {strides = array<i32>} : memref<36x100xf32, #tpu.memory_space<vmem>>, vector<4x100xf32>,
    %c0_470 = arith.constant 0 : index
    %c21_471 = arith.constant 21 : index
    %318 = vector.load %arg42[%c0_470, %c21_471] : memref<4x128xf32, #tpu.memory_space<vmem>>, vector<4x100xf32>
    %c28_472 = arith.constant 28 : index
    %c0_473 = arith.constant 0 : index
    %319 = vector.load %arg43[%c28_472, %c0_473] : memref<36x100xf32, #tpu.memory_space<vmem>>, vector<4x100xf32>
    tpu.vector_store %arg43[%c28_472, %c0_473], %318 {strides = array<i32>} : memref<36x100xf32, #tpu.memory_space<vmem>>, vector<4x100xf32>,
    %c0_474 = arith.constant 0 : index
    %c22_475 = arith.constant 22 : index
    %320 = vector.load %arg42[%c0_474, %c22_475] : memref<4x128xf32, #tpu.memory_space<vmem>>, vector<4x100xf32>
    %c32_476 = arith.constant 32 : index
    %c0_477 = arith.constant 0 : index
    %321 = vector.load %arg43[%c32_476, %c0_477] : memref<36x100xf32, #tpu.memory_space<vmem>>, vector<4x100xf32>
    tpu.vector_store %arg43[%c32_476, %c0_477], %320 {strides = array<i32>} : memref<36x100xf32, #tpu.memory_space<vmem>>, vector<4x100xf32>,
    %c0_478 = arith.constant 0 : index
    %c0_479 = arith.constant 0 : index
    %322 = vector.load %arg29[%c0_478, %c0_479] : memref<12x36xf32, #tpu.memory_space<vmem>>, vector<12x36xf32>
    %c0_480 = arith.constant 0 : index
    %c0_481 = arith.constant 0 : index
    %323 = vector.load %arg43[%c0_480, %c0_481] : memref<36x100xf32, #tpu.memory_space<vmem>>, vector<36x100xf32>
    %cst_482 = arith.constant dense<0.000000e+00> : vector<12x100xf32>
    %324 = tpu.matmul %322, %323, %cst_482 {dimension_numbers = #tpu.dot_dimension_numbers<[1], [0], [0], [1], [0, 0, 1, 1], [], []>} : vector<12x36xf32>, vector<36x100xf32>, vector<12x100xf32> -> vector<12x100xf32>
    %c0_483 = arith.constant 0 : index
    %c0_484 = arith.constant 0 : index
    %325 = vector.load %arg30[%c0_483, %c0_484] : memref<12x1xf32, #tpu.memory_space<vmem>>, vector<12x1xf32>
    %326 = vector.broadcast %325 : vector<12x1xf32> to vector<12x100xf32>
    %327 = arith.addf %324, %326 : vector<12x100xf32>
    %cst_485 = arith.constant 0.000000e+00 : f32
    %328 = vector.broadcast %cst_485 : f32 to vector<12x100xf32>
    %329 = arith.maximumf %327, %328 : vector<12x100xf32>
    %c0_486 = arith.constant 0 : index
    %c0_487 = arith.constant 0 : index
    %330 = vector.load %arg31[%c0_486, %c0_487] : memref<4x12xf32, #tpu.memory_space<vmem>>, vector<4x12xf32>
    %cst_488 = arith.constant dense<0.000000e+00> : vector<4x100xf32>
    %331 = tpu.matmul %330, %329, %cst_488 {dimension_numbers = #tpu.dot_dimension_numbers<[1], [0], [0], [1], [0, 0, 1, 1], [], []>} : vector<4x12xf32>, vector<12x100xf32>, vector<4x100xf32> -> vector<4x100xf32>
    %c0_489 = arith.constant 0 : index
    %c0_490 = arith.constant 0 : index
    %332 = vector.load %arg32[%c0_489, %c0_490] : memref<4x1xf32, #tpu.memory_space<vmem>>, vector<4x1xf32>
    %333 = vector.broadcast %332 : vector<4x1xf32> to vector<4x100xf32>
    %334 = arith.addf %331, %333 : vector<4x100xf32>
    %cst_491 = arith.constant 0.000000e+00 : f32
    %335 = vector.broadcast %cst_491 : f32 to vector<4x100xf32>
    %336 = arith.maximumf %334, %335 : vector<4x100xf32>
    %337 = vector.broadcast %0 : vector<1x100xf32> to vector<4x100xf32>
    %338 = arith.mulf %336, %337 : vector<4x100xf32>
    %339 = arith.addf %274, %338 : vector<4x100xf32>
    %c0_492 = arith.constant 0 : index
    %c11_493 = arith.constant 11 : index
    %340 = vector.load %arg42[%c0_492, %c11_493] : memref<4x128xf32, #tpu.memory_space<vmem>>, vector<4x100xf32>
    tpu.vector_store %arg42[%c0_492, %c11_493], %339 {strides = array<i32>} : memref<4x128xf32, #tpu.memory_space<vmem>>, vector<4x100xf32>,
    tpu.wait_dma2 semaphore(%arg45 : memref<!tpu.dma_semaphore, #tpu.memory_space<semaphore_mem>>) src(%arg33 : memref<4x100x256xf32, #tpu.memory_space<any>>) dst(%arg44 : memref<4x100x256xf32, #tpu.memory_space<vmem>>)
    %c0_494 = arith.constant 0 : index
    %c0_495 = arith.constant 0 : index
    %341 = vector.load %arg34[%c0_494, %c0_495] : memref<1x256xf32, #tpu.memory_space<vmem>>, vector<1x256xf32>
    %c0_496 = arith.constant 0 : index
    %c11_497 = arith.constant 11 : index
    %342 = vector.load %arg42[%c0_496, %c11_497] : memref<4x128xf32, #tpu.memory_space<vmem>>, vector<1x100xf32>
    %c0_498 = arith.constant 0 : index
    %c0_499 = arith.constant 0 : index
    %c0_500 = arith.constant 0 : index
    %343 = vector.load %arg44[%c0_498, %c0_499, %c0_500] : memref<4x100x256xf32, #tpu.memory_space<vmem>>, vector<1x100x256xf32>
    %344 = vector.shape_cast %343 : vector<1x100x256xf32> to vector<100x256xf32>
    %cst_501 = arith.constant dense<0.000000e+00> : vector<1x256xf32>
    %345 = tpu.matmul %342, %344, %cst_501 {dimension_numbers = #tpu.dot_dimension_numbers<[1], [0], [0], [1], [0, 0, 1, 1], [], []>} : vector<1x100xf32>, vector<100x256xf32>, vector<1x256xf32> -> vector<1x256xf32>
    %346 = arith.addf %341, %345 : vector<1x256xf32>
    %c1_502 = arith.constant 1 : index
    %c11_503 = arith.constant 11 : index
    %347 = vector.load %arg42[%c1_502, %c11_503] : memref<4x128xf32, #tpu.memory_space<vmem>>, vector<1x100xf32>
    %c1_504 = arith.constant 1 : index
    %c0_505 = arith.constant 0 : index
    %c0_506 = arith.constant 0 : index
    %348 = vector.load %arg44[%c1_504, %c0_505, %c0_506] : memref<4x100x256xf32, #tpu.memory_space<vmem>>, vector<1x100x256xf32>
    %349 = vector.shape_cast %348 : vector<1x100x256xf32> to vector<100x256xf32>
    %cst_507 = arith.constant dense<0.000000e+00> : vector<1x256xf32>
    %350 = tpu.matmul %347, %349, %cst_507 {dimension_numbers = #tpu.dot_dimension_numbers<[1], [0], [0], [1], [0, 0, 1, 1], [], []>} : vector<1x100xf32>, vector<100x256xf32>, vector<1x256xf32> -> vector<1x256xf32>
    %351 = arith.addf %346, %350 : vector<1x256xf32>
    %c2_508 = arith.constant 2 : index
    %c11_509 = arith.constant 11 : index
    %352 = vector.load %arg42[%c2_508, %c11_509] : memref<4x128xf32, #tpu.memory_space<vmem>>, vector<1x100xf32>
    %c2_510 = arith.constant 2 : index
    %c0_511 = arith.constant 0 : index
    %c0_512 = arith.constant 0 : index
    %353 = vector.load %arg44[%c2_510, %c0_511, %c0_512] : memref<4x100x256xf32, #tpu.memory_space<vmem>>, vector<1x100x256xf32>
    %354 = vector.shape_cast %353 : vector<1x100x256xf32> to vector<100x256xf32>
    %cst_513 = arith.constant dense<0.000000e+00> : vector<1x256xf32>
    %355 = tpu.matmul %352, %354, %cst_513 {dimension_numbers = #tpu.dot_dimension_numbers<[1], [0], [0], [1], [0, 0, 1, 1], [], []>} : vector<1x100xf32>, vector<100x256xf32>, vector<1x256xf32> -> vector<1x256xf32>
    %356 = arith.addf %351, %355 : vector<1x256xf32>
    %c3 = arith.constant 3 : index
    %c11_514 = arith.constant 11 : index
    %357 = vector.load %arg42[%c3, %c11_514] : memref<4x128xf32, #tpu.memory_space<vmem>>, vector<1x100xf32>
    %c3_515 = arith.constant 3 : index
    %c0_516 = arith.constant 0 : index
    %c0_517 = arith.constant 0 : index
    %358 = vector.load %arg44[%c3_515, %c0_516, %c0_517] : memref<4x100x256xf32, #tpu.memory_space<vmem>>, vector<1x100x256xf32>
    %359 = vector.shape_cast %358 : vector<1x100x256xf32> to vector<100x256xf32>
    %cst_518 = arith.constant dense<0.000000e+00> : vector<1x256xf32>
    %360 = tpu.matmul %357, %359, %cst_518 {dimension_numbers = #tpu.dot_dimension_numbers<[1], [0], [0], [1], [0, 0, 1, 1], [], []>} : vector<1x100xf32>, vector<100x256xf32>, vector<1x256xf32> -> vector<1x256xf32>
    %361 = arith.addf %356, %360 : vector<1x256xf32>
    %cst_519 = arith.constant 0.000000e+00 : f32
    %362 = vector.broadcast %cst_519 : f32 to vector<1x256xf32>
    %363 = arith.maximumf %361, %362 : vector<1x256xf32>
    %c0_520 = arith.constant 0 : index
    %c0_521 = arith.constant 0 : index
    %364 = vector.load %arg35[%c0_520, %c0_521] : memref<256x128xf32, #tpu.memory_space<vmem>>, vector<256x128xf32>
    %cst_522 = arith.constant dense<0.000000e+00> : vector<1x128xf32>
    %365 = tpu.matmul %363, %364, %cst_522 {dimension_numbers = #tpu.dot_dimension_numbers<[1], [0], [0], [1], [0, 0, 1, 1], [], []>} : vector<1x256xf32>, vector<256x128xf32>, vector<1x128xf32> -> vector<1x128xf32>
    %c0_523 = arith.constant 0 : index
    %c0_524 = arith.constant 0 : index
    %366 = vector.load %arg36[%c0_523, %c0_524] : memref<1x128xf32, #tpu.memory_space<vmem>>, vector<1x128xf32>
    %367 = arith.addf %365, %366 : vector<1x128xf32>
    %cst_525 = arith.constant 0.000000e+00 : f32
    %368 = vector.broadcast %cst_525 : f32 to vector<1x128xf32>
    %369 = arith.maximumf %367, %368 : vector<1x128xf32>
    %c0_526 = arith.constant 0 : index
    %c0_527 = arith.constant 0 : index
    %370 = vector.load %arg37[%c0_526, %c0_527] : memref<128x64xf32, #tpu.memory_space<vmem>>, vector<128x64xf32>
    %cst_528 = arith.constant dense<0.000000e+00> : vector<1x64xf32>
    %371 = tpu.matmul %369, %370, %cst_528 {dimension_numbers = #tpu.dot_dimension_numbers<[1], [0], [0], [1], [0, 0, 1, 1], [], []>} : vector<1x128xf32>, vector<128x64xf32>, vector<1x64xf32> -> vector<1x64xf32>
    %c0_529 = arith.constant 0 : index
    %c0_530 = arith.constant 0 : index
    %372 = vector.load %arg38[%c0_529, %c0_530] : memref<1x64xf32, #tpu.memory_space<vmem>>, vector<1x64xf32>
    %373 = arith.addf %371, %372 : vector<1x64xf32>
    %cst_531 = arith.constant 0.000000e+00 : f32
    %374 = vector.broadcast %cst_531 : f32 to vector<1x64xf32>
    %375 = arith.maximumf %373, %374 : vector<1x64xf32>
    %c0_532 = arith.constant 0 : index
    %c0_533 = arith.constant 0 : index
    %376 = vector.load %arg39[%c0_532, %c0_533] : memref<64x5xf32, #tpu.memory_space<vmem>>, vector<64x5xf32>
    %cst_534 = arith.constant dense<0.000000e+00> : vector<1x5xf32>
    %377 = tpu.matmul %375, %376, %cst_534 {dimension_numbers = #tpu.dot_dimension_numbers<[1], [0], [0], [1], [0, 0, 1, 1], [], []>} : vector<1x64xf32>, vector<64x5xf32>, vector<1x5xf32> -> vector<1x5xf32>
    %c0_535 = arith.constant 0 : index
    %c0_536 = arith.constant 0 : index
    %378 = vector.load %arg40[%c0_535, %c0_536] : memref<1x5xf32, #tpu.memory_space<vmem>>, vector<1x5xf32>
    %379 = arith.addf %377, %378 : vector<1x5xf32>
    %c0_537 = arith.constant 0 : index
    %c0_538 = arith.constant 0 : index
    %c0_539 = arith.constant 0 : index
    %380 = vector.load %arg41[%c0_537, %c0_538, %c0_539] : memref<1x1x5xf32, #tpu.memory_space<vmem>>, vector<1x1x5xf32>
    %381 = vector.shape_cast %380 : vector<1x1x5xf32> to vector<1x5xf32>
    %382 = vector.shape_cast %379 : vector<1x5xf32> to vector<1x1x5xf32>
    tpu.vector_store %arg41[%c0_537, %c0_538, %c0_539], %382 {strides = array<i32>} : memref<1x1x5xf32, #tpu.memory_space<vmem>>, vector<1x1x5xf32>,
    return
  }
  func.func @transform_0(%arg0: i32) -> (i32, i32, i32) {
    %c0_i32 = arith.constant 0 : i32
    %c0_i32_0 = arith.constant 0 : i32
    %c0_i32_1 = arith.constant 0 : i32
    return %arg0, %c0_i32, %c0_i32_0 : i32, i32, i32
  }
  func.func @transform_1(%arg0: i32) -> (i32, i32) {
    %c0_i32 = arith.constant 0 : i32
    %c0_i32_0 = arith.constant 0 : i32
    %c0_i32_1 = arith.constant 0 : i32
    return %c0_i32, %c0_i32_0 : i32, i32
  }
  func.func @transform_2(%arg0: i32) -> (i32, i32) {
    %c0_i32 = arith.constant 0 : i32
    %c0_i32_0 = arith.constant 0 : i32
    %c0_i32_1 = arith.constant 0 : i32
    return %c0_i32, %c0_i32_0 : i32, i32
  }
  func.func @transform_3(%arg0: i32) -> (i32, i32) {
    %c0_i32 = arith.constant 0 : i32
    %c0_i32_0 = arith.constant 0 : i32
    %c0_i32_1 = arith.constant 0 : i32
    return %c0_i32, %c0_i32_0 : i32, i32
  }
  func.func @transform_4(%arg0: i32) -> (i32, i32) {
    %c0_i32 = arith.constant 0 : i32
    %c0_i32_0 = arith.constant 0 : i32
    %c0_i32_1 = arith.constant 0 : i32
    return %c0_i32, %c0_i32_0 : i32, i32
  }
  func.func @transform_5(%arg0: i32) -> (i32, i32) {
    %c0_i32 = arith.constant 0 : i32
    %c0_i32_0 = arith.constant 0 : i32
    %c0_i32_1 = arith.constant 0 : i32
    return %c0_i32, %c0_i32_0 : i32, i32
  }
  func.func @transform_6(%arg0: i32) -> (i32, i32) {
    %c0_i32 = arith.constant 0 : i32
    %c0_i32_0 = arith.constant 0 : i32
    %c0_i32_1 = arith.constant 0 : i32
    return %c0_i32, %c0_i32_0 : i32, i32
  }
  func.func @transform_7(%arg0: i32) -> (i32, i32) {
    %c0_i32 = arith.constant 0 : i32
    %c0_i32_0 = arith.constant 0 : i32
    %c0_i32_1 = arith.constant 0 : i32
    return %c0_i32, %c0_i32_0 : i32, i32
  }
  func.func @transform_8(%arg0: i32) -> (i32, i32) {
    %c0_i32 = arith.constant 0 : i32
    %c0_i32_0 = arith.constant 0 : i32
    %c0_i32_1 = arith.constant 0 : i32
    return %c0_i32, %c0_i32_0 : i32, i32
  }
  func.func @transform_9(%arg0: i32) -> (i32, i32) {
    %c0_i32 = arith.constant 0 : i32
    %c0_i32_0 = arith.constant 0 : i32
    %c0_i32_1 = arith.constant 0 : i32
    return %c0_i32, %c0_i32_0 : i32, i32
  }
  func.func @transform_10(%arg0: i32) -> (i32, i32) {
    %c0_i32 = arith.constant 0 : i32
    %c0_i32_0 = arith.constant 0 : i32
    %c0_i32_1 = arith.constant 0 : i32
    return %c0_i32, %c0_i32_0 : i32, i32
  }
  func.func @transform_11(%arg0: i32) -> (i32, i32) {
    %c0_i32 = arith.constant 0 : i32
    %c0_i32_0 = arith.constant 0 : i32
    %c0_i32_1 = arith.constant 0 : i32
    return %c0_i32, %c0_i32_0 : i32, i32
  }
  func.func @transform_12(%arg0: i32) -> (i32, i32) {
    %c0_i32 = arith.constant 0 : i32
    %c0_i32_0 = arith.constant 0 : i32
    %c0_i32_1 = arith.constant 0 : i32
    return %c0_i32, %c0_i32_0 : i32, i32
  }
  func.func @transform_13(%arg0: i32) -> (i32, i32) {
    %c0_i32 = arith.constant 0 : i32
    %c0_i32_0 = arith.constant 0 : i32
    %c0_i32_1 = arith.constant 0 : i32
    return %c0_i32, %c0_i32_0 : i32, i32
  }
  func.func @transform_14(%arg0: i32) -> (i32, i32) {
    %c0_i32 = arith.constant 0 : i32
    %c0_i32_0 = arith.constant 0 : i32
    %c0_i32_1 = arith.constant 0 : i32
    return %c0_i32, %c0_i32_0 : i32, i32
  }
  func.func @transform_15(%arg0: i32) -> (i32, i32) {
    %c0_i32 = arith.constant 0 : i32
    %c0_i32_0 = arith.constant 0 : i32
    %c0_i32_1 = arith.constant 0 : i32
    return %c0_i32, %c0_i32_0 : i32, i32
  }
  func.func @transform_16(%arg0: i32) -> (i32, i32) {
    %c0_i32 = arith.constant 0 : i32
    %c0_i32_0 = arith.constant 0 : i32
    %c0_i32_1 = arith.constant 0 : i32
    return %c0_i32, %c0_i32_0 : i32, i32
  }
  func.func @transform_17(%arg0: i32) -> (i32, i32) {
    %c0_i32 = arith.constant 0 : i32
    %c0_i32_0 = arith.constant 0 : i32
    %c0_i32_1 = arith.constant 0 : i32
    return %c0_i32, %c0_i32_0 : i32, i32
  }
  func.func @transform_18(%arg0: i32) -> (i32, i32) {
    %c0_i32 = arith.constant 0 : i32
    %c0_i32_0 = arith.constant 0 : i32
    %c0_i32_1 = arith.constant 0 : i32
    return %c0_i32, %c0_i32_0 : i32, i32
  }
  func.func @transform_19(%arg0: i32) -> (i32, i32) {
    %c0_i32 = arith.constant 0 : i32
    %c0_i32_0 = arith.constant 0 : i32
    %c0_i32_1 = arith.constant 0 : i32
    return %c0_i32, %c0_i32_0 : i32, i32
  }
  func.func @transform_20(%arg0: i32) -> (i32, i32) {
    %c0_i32 = arith.constant 0 : i32
    %c0_i32_0 = arith.constant 0 : i32
    %c0_i32_1 = arith.constant 0 : i32
    return %c0_i32, %c0_i32_0 : i32, i32
  }
  func.func @transform_21(%arg0: i32) -> (i32, i32) {
    %c0_i32 = arith.constant 0 : i32
    %c0_i32_0 = arith.constant 0 : i32
    %c0_i32_1 = arith.constant 0 : i32
    return %c0_i32, %c0_i32_0 : i32, i32
  }
  func.func @transform_22(%arg0: i32) -> (i32, i32) {
    %c0_i32 = arith.constant 0 : i32
    %c0_i32_0 = arith.constant 0 : i32
    %c0_i32_1 = arith.constant 0 : i32
    return %c0_i32, %c0_i32_0 : i32, i32
  }
  func.func @transform_23(%arg0: i32) -> (i32, i32) {
    %c0_i32 = arith.constant 0 : i32
    %c0_i32_0 = arith.constant 0 : i32
    %c0_i32_1 = arith.constant 0 : i32
    return %c0_i32, %c0_i32_0 : i32, i32
  }
  func.func @transform_24(%arg0: i32) -> (i32, i32) {
    %c0_i32 = arith.constant 0 : i32
    %c0_i32_0 = arith.constant 0 : i32
    %c0_i32_1 = arith.constant 0 : i32
    return %c0_i32, %c0_i32_0 : i32, i32
  }
  func.func @transform_25(%arg0: i32) -> (i32, i32) {
    %c0_i32 = arith.constant 0 : i32
    %c0_i32_0 = arith.constant 0 : i32
    %c0_i32_1 = arith.constant 0 : i32
    return %c0_i32, %c0_i32_0 : i32, i32
  }
  func.func @transform_26(%arg0: i32) -> (i32, i32) {
    %c0_i32 = arith.constant 0 : i32
    %c0_i32_0 = arith.constant 0 : i32
    %c0_i32_1 = arith.constant 0 : i32
    return %c0_i32, %c0_i32_0 : i32, i32
  }
  func.func @transform_27(%arg0: i32) -> (i32, i32) {
    %c0_i32 = arith.constant 0 : i32
    %c0_i32_0 = arith.constant 0 : i32
    %c0_i32_1 = arith.constant 0 : i32
    return %c0_i32, %c0_i32_0 : i32, i32
  }
  func.func @transform_28(%arg0: i32) -> (i32, i32) {
    %c0_i32 = arith.constant 0 : i32
    %c0_i32_0 = arith.constant 0 : i32
    %c0_i32_1 = arith.constant 0 : i32
    return %c0_i32, %c0_i32_0 : i32, i32
  }
  func.func @transform_29(%arg0: i32) -> (i32, i32) {
    %c0_i32 = arith.constant 0 : i32
    %c0_i32_0 = arith.constant 0 : i32
    %c0_i32_1 = arith.constant 0 : i32
    return %c0_i32, %c0_i32_0 : i32, i32
  }
  func.func @transform_30(%arg0: i32) -> (i32, i32) {
    %c0_i32 = arith.constant 0 : i32
    %c0_i32_0 = arith.constant 0 : i32
    %c0_i32_1 = arith.constant 0 : i32
    return %c0_i32, %c0_i32_0 : i32, i32
  }
  func.func @transform_31(%arg0: i32) -> (i32, i32) {
    %c0_i32 = arith.constant 0 : i32
    %c0_i32_0 = arith.constant 0 : i32
    %c0_i32_1 = arith.constant 0 : i32
    return %c0_i32, %c0_i32_0 : i32, i32
  }
  func.func @transform_33(%arg0: i32) -> (i32, i32) {
    %c0_i32 = arith.constant 0 : i32
    %c0_i32_0 = arith.constant 0 : i32
    %c0_i32_1 = arith.constant 0 : i32
    return %c0_i32, %c0_i32_0 : i32, i32
  }
  func.func @transform_34(%arg0: i32) -> (i32, i32) {
    %c0_i32 = arith.constant 0 : i32
    %c0_i32_0 = arith.constant 0 : i32
    %c0_i32_1 = arith.constant 0 : i32
    return %c0_i32, %c0_i32_0 : i32, i32
  }
  func.func @transform_35(%arg0: i32) -> (i32, i32) {
    %c0_i32 = arith.constant 0 : i32
    %c0_i32_0 = arith.constant 0 : i32
    %c0_i32_1 = arith.constant 0 : i32
    return %c0_i32, %c0_i32_0 : i32, i32
  }
  func.func @transform_36(%arg0: i32) -> (i32, i32) {
    %c0_i32 = arith.constant 0 : i32
    %c0_i32_0 = arith.constant 0 : i32
    %c0_i32_1 = arith.constant 0 : i32
    return %c0_i32, %c0_i32_0 : i32, i32
  }
  func.func @transform_37(%arg0: i32) -> (i32, i32) {
    %c0_i32 = arith.constant 0 : i32
    %c0_i32_0 = arith.constant 0 : i32
    %c0_i32_1 = arith.constant 0 : i32
    return %c0_i32, %c0_i32_0 : i32, i32
  }
  func.func @transform_38(%arg0: i32) -> (i32, i32) {
    %c0_i32 = arith.constant 0 : i32
    %c0_i32_0 = arith.constant 0 : i32
    %c0_i32_1 = arith.constant 0 : i32
    return %c0_i32, %c0_i32_0 : i32, i32
  }
  func.func @transform_39(%arg0: i32) -> (i32, i32) {
    %c0_i32 = arith.constant 0 : i32
    %c0_i32_0 = arith.constant 0 : i32
    %c0_i32_1 = arith.constant 0 : i32
    return %c0_i32, %c0_i32_0 : i32, i32
  }
  func.func @transform_40(%arg0: i32) -> (i32, i32, i32) {
    %c0_i32 = arith.constant 0 : i32
    %c0_i32_0 = arith.constant 0 : i32
    %c0_i32_1 = arith.constant 0 : i32
    return %arg0, %c0_i32, %c0_i32_0 : i32, i32, i32
  }
}

</mosaic_0001>

<bundles_post_ra>
// kernel: qnetwork_forward.1
= control target key start
LH: loop header
LB: loop body
LE: loop exit
PB: predicated region body
PF: predicated region fallthrough
CT: control target
= control target key end

     0   :  { %s4912_s6 = smov 1   ;;  %s4913_s10 = smov 2   ;;  %s5848_s0 = inlined_call_operand.smem [shape: u32[41], index: -1, kind: input, shape index: {}] }
   0x1   :  { %s4974_s5 = sld [smem:[%s5848_s0]]   ;;  %s4914_s14 = smov 3  }
   0x2   :  { %s4979_s9 = sld [smem:[%s5848_s0 + %s4912_s6]]   ;;  %s4915_s18 = smov 4  }
   0x3   :  { %s4984_s13 = sld [smem:[%s5848_s0 + %s4913_s10]]   ;;  %s4916_s22 = smov 5  }
   0x4   :  { %s4989_s17 = sld [smem:[%s5848_s0 + %s4914_s14]]   ;;  %s4917_s26 = smov 6  }
   0x5   :  { %s4994_s21 = sld [smem:[%s5848_s0 + %s4915_s18]]   ;;  %s4918_s30 = smov 7  }
   0x6   :  { %s4999_s25 = sld [smem:[%s5848_s0 + %s4916_s22]]   ;;  %s4919_s4 = smov 8  }
   0x7   :  { %5881 = sst [smem:[#allocation11_spill]] %s4974_s5  ;;  %s4920_s10 = smov 9  }
   0x8   :  { %5882 = sst [smem:[#allocation12_spill]] %s4979_s9  ;;  %s4921_s15 = smov 10  }
   0x9   :  { %5883 = sst [smem:[#allocation13_spill]] %s4984_s13  ;;  %s4922_s20 = smov 11  }
   0xa   :  { %5884 = sst [smem:[#allocation14_spill]] %s4989_s17  ;;  %s4924_s1 = smov 13  }
   0xb   :  { %s5004_s29 = sld [smem:[%s5848_s0 + %s4917_s26]]   ;;  %s4923_s26 = smov 12  }
   0xc   :  { %s5009_s3 = sld [smem:[%s5848_s0 + %s4918_s30]]   ;;  %s4925_s7 = smov 14  }
   0xd   :  { %s5014_s8 = sld [smem:[%s5848_s0 + %s4919_s4]]   ;;  %s4927_s22 = smov 16  }
   0xe   :  { %s5019_s14 = sld [smem:[%s5848_s0 + %s4920_s10]]   ;;  %s4928_s28 = smov 17  }
   0xf   :  { %s5024_s19 = sld [smem:[%s5848_s0 + %s4921_s15]]   ;;  %s4926_s15 = smov 15  }
  0x10   :  { %s5029_s24 = sld [smem:[%s5848_s0 + %s4922_s20]]  }
  0x11   :  { %s5034_s30 = sld [smem:[%s5848_s0 + %s4923_s26]]  }
  0x12   :  { %5885 = sst [smem:[#allocation15_spill]] %s5009_s3 }
  0x13   :  { %5886 = sst [smem:[#allocation16_spill]] %s5014_s8 }
  0x14   :  { %5887 = sst [smem:[#allocation17_spill]] %s5019_s14 }
  0x15   :  { %s5039_s6 = sld [smem:[%s5848_s0 + %s4924_s1]]  }
  0x16   :  { %s5044_s12 = sld [smem:[%s5848_s0 + %s4925_s7]]   ;;  %s4929_s7 = smov 18  }
  0x17   :  { %5888 = sst [smem:[#allocation18_spill]] %s5034_s30 }
  0x18   :  { %s5049_s20 = sld [smem:[%s5848_s0 + %s4926_s15]]   ;;  %s4930_s15 = smov 19  }
  0x19   :  { %s5054_s27 = sld [smem:[%s5848_s0 + %s4927_s22]]   ;;  %s4931_s22 = smov 20  }
  0x1a   :  { %s5059_s4 = sld [smem:[%s5848_s0 + %s4928_s28]]   ;;  %s4932_s28 = smov 21  }
  0x1b   :  { %5889 = sst [smem:[#allocation19_spill]] %s5039_s6 }
  0x1c   :  { %5890 = sst [smem:[#allocation20_spill]] %s5044_s12 }
  0x1d   :  { %s5064_s12 = sld [smem:[%s5848_s0 + %s4929_s7]]   ;;  %s4933_s7 = smov 22  }
  0x1e   :  { %5891 = sst [smem:[#allocation21_spill]] %s5049_s20 }
  0x1f   :  { %5892 = sst [smem:[#allocation22_spill]] %s5054_s27 }
  0x20   :  { %5893 = sst [smem:[#allocation23_spill]] %s5059_s4 }
  0x21   :  { %s5069_s20 = sld [smem:[%s5848_s0 + %s4930_s15]]   ;;  %s4934_s15 = smov 23  }
  0x22   :  { %s5074_s27 = sld [smem:[%s5848_s0 + %s4931_s22]]   ;;  %s4935_s22 = smov 24  }
  0x23   :  { %5894 = sst [smem:[#allocation24_spill]] %s5064_s12 }
  0x24   :  { %s5079_s4 = sld [smem:[%s5848_s0 + %s4932_s28]]   ;;  %s4936_s28 = smov 25  }
  0x25   :  { %s5084_s12 = sld [smem:[%s5848_s0 + %s4933_s7]]   ;;  %s4937_s7 = smov 26  }
  0x27   :  { %5895 = sst [smem:[#allocation25_spill]] %s5069_s20 }
  0x28   :  { %5896 = sst [smem:[#allocation26_spill]] %s5074_s27 }
  0x29   :  { %s5089_s20 = sld [smem:[%s5848_s0 + %s4934_s15]]   ;;  %s4938_s15 = smov 27  }
  0x2a   :  { %5897 = sst [smem:[#allocation27_spill]] %s5079_s4 }
  0x2b   :  { %5898 = sst [smem:[#allocation28_spill]] %s5084_s12 }
  0x2c   :  { %s5094_s27 = sld [smem:[%s5848_s0 + %s4935_s22]]   ;;  %s4939_s22 = smov 28  }
  0x2d   :  { %s5099_s4 = sld [smem:[%s5848_s0 + %s4936_s28]]   ;;  %s4940_s28 = smov 29  }
  0x2e   :  { %s5104_s12 = sld [smem:[%s5848_s0 + %s4937_s7]]   ;;  %s4941_s7 = smov 30  }
  0x2f   :  { %5899 = sst [smem:[#allocation29_spill]] %s5089_s20 }
  0x30   :  { %s5109_s20 = sld [smem:[%s5848_s0 + %s4938_s15]]   ;;  %s4942_s15 = smov 31  }
  0x32   :  { %5900 = sst [smem:[#allocation30_spill]] %s5094_s27 }
  0x33   :  { %5901 = sst [smem:[#allocation31_spill]] %s5099_s4 }
  0x34   :  { %5902 = sst [smem:[#allocation32_spill]] %s5104_s12 }
  0x35   :  { %s5114_s27 = sld [smem:[%s5848_s0 + %s4939_s22]]   ;;  %s4943_s22 = smov 32  }
  0x36   :  { %5903 = sst [smem:[#allocation33_spill]] %s5109_s20 }
  0x37   :  { %s5119_s4 = sld [smem:[%s5848_s0 + %s4940_s28]]   ;;  %s4944_s28 = smov 33  }
  0x38   :  { %s5124_s12 = sld [smem:[%s5848_s0 + %s4941_s7]]   ;;  %s4945_s7 = smov 34  }
  0x39   :  { %s5129_s20 = sld [smem:[%s5848_s0 + %s4942_s15]]   ;;  %s4946_s15 = smov 35  }
  0x3b   :  { %5904 = sst [smem:[#allocation34_spill]] %s5114_s27 }
  0x3c   :  { %s5134_s27 = sld [smem:[%s5848_s0 + %s4943_s22]]   ;;  %s4947_s22 = smov 36  }
  0x3d   :  { %5905 = sst [smem:[#allocation35_spill]] %s5119_s4 }
  0x3e   :  { %5906 = sst [smem:[#allocation36_spill]] %s5124_s12 }
  0x3f   :  { %5907 = sst [smem:[#allocation37_spill]] %s5129_s20 }
  0x40   :  { %s5139_s4 = sld [smem:[%s5848_s0 + %s4944_s28]]   ;;  %s4948_s28 = smov 37  }
  0x41   :  { %s5144_s12 = sld [smem:[%s5848_s0 + %s4945_s7]]   ;;  %s4949_s7 = smov 38  }
  0x42   :  { %5908 = sst [smem:[#allocation38_spill]] %s5134_s27 }
  0x43   :  { %s5149_s20 = sld [smem:[%s5848_s0 + %s4946_s15]]   ;;  %s4950_s15 = smov 39  }
  0x44   :  { %s5154_s30 = sld [smem:[%s5848_s0 + %s4947_s22]]   ;;  %s4951_s22 = smov 40  }
  0x46   :  { %5909 = sst [smem:[#allocation39_spill]] %s5139_s4 }
  0x47   :  { %5910 = sst [smem:[#allocation40_spill]] %s5144_s12 }
  0x48   :  { %s5159_s4 = sld [smem:[%s5848_s0 + %s4948_s28]]  }
  0x49   :  { %5911 = sst [smem:[#allocation41_spill]] %s5149_s20 }
  0x4a   :  { %5912 = sst [smem:[#allocation42_spill]] %s5154_s30 }
  0x4b   :  { %s5164_s12 = sld [smem:[%s5848_s0 + %s4949_s7]]  }
  0x4c   :  { %s5169_s20 = sld [smem:[%s5848_s0 + %s4950_s15]]  }
  0x4d   :  { %s5174_s30 = sld [smem:[%s5848_s0 + %s4951_s22]]  }
  0x4e   :  { %86 = vsyncpa [#allocation7], 0 }
  0x4f   :  { %88 = vsyncpa [#allocation7 + $0x1], 0  ;;  %s5176_s28 = smov 0   ;;  %s5178_s1 = smov 0  }
  0x50   :  { %s5180_s2 = smov 0   ;;  %s5182_s7 = smov 0  }
  0x51 LB: > { %s5913_s9 = sld [smem:[#allocation12_spill]]  ;;  %s5197_s0 = sadd.s32 4294967295, %s4910_s7   ;;  %s4902_s1 = sphi %s5178_s1, %s5960_s1   ;;  %s4898_s28 = sphi %s5176_s28, %s5959_s28   ;;  %s4910_s7 = sphi %s5182_s7, %s5962_s7   ;;  %s4906_s2 = sphi %s5180_s2, %s5961_s2  }
  0x52   : > { %s5914_s27 = sld [smem:[#allocation38_spill]]  ;;  %s4335_s10 = sadd.s32 4294967294, %s4910_s7  }
  0x53   : > { %s5201_s11 = sadd.s32 1, %s4910_s7   ;;  %s925_s15 = sadd.s32 1, %s4906_s2 }
  0x54   : > { %s922_s16 = ssub.s32 %s4910_s7, %s5201_s11  ;;  %p935_p0 = scmp.ne.s32.totalorder %s4906_s2, %s4902_s1 }
  0x55   : > { %p923_p1 = scmp.eq.s32.totalorder %s922_s16, 0  ;;  %p936_p2 = scmp.eq.s32.totalorder %s5197_s0, 1 }
  0x56   : > { %p941_p3 = scmp.ne.s32.totalorder %s4902_s1, %s4898_s28  ;;  %p942_p4 = scmp.eq.s32.totalorder %s4335_s10, 1 }
  0x57   : > { %s5212_s18 = scalar_select %p923_p1, %s4906_s2, %s925_s15  }
  0x58   : > { %p5214_p5 = por %p936_p2, %p935_p0  ;;  %p5218_p6 = por %p942_p4, %p941_p3 }
  0x59   : > { %5915 = sst [smem:[#allocation43_spill]] %s5212_s18  ;;  %p4338_p7 = scmp.ge.s32.totalorder %s4910_s7, 1 }
  0x5a   : > { %p1081_p8 = scmp.lt.s32.totalorder %s4910_s7, 3 }
  0x5c   : > { %p1082_p9 = pnand %p4338_p7, %p1081_p8 }
  0x5d   : > { %s5857_s26 = sand.u32 (!%p1082_p9), 1, %s4902_s1   ;;  %p1175_p10 = scmp.lt.s32.totalorder (!%p1082_p9), %s5197_s0, 1 }
  0x5e   : > { %1085 = sbr.rel (%p1082_p9) target bundleno = 6851 (0x1ac3), region = 176  ;;  %s5918_s5 = sld [smem:[#allocation11_spill]] (!%p1082_p9) }
  0x63   : > { %v1212_v0 = vld [vmem:[%s5914_s27] sm:$0xff]  ;;  %v1214_v1 = vld [vmem:[%s5914_s27 + $0x8] sm:$0xff]  ;;  %v1216_v2 = vld [vmem:[%s5914_s27 + $0x10] sm:$0xff]  ;;  %s1176_s10 = scalar_select %p1175_p10, %s5197_s0, 1 }
  0x64   : > { %1213 = vst [vmem:[#allocation4 + $0x2b0] sm:$0xff] %v1212_v0  ;;  %1215 = vst [vmem:[#allocation4 + $0xd0] sm:$0xff] %v1214_v1  ;;  %v1218_v3 = vld [vmem:[%s5914_s27 + $0x18] sm:$0xff]  ;;  %v1220_v4 = vld [vmem:[%s5914_s27 + $0x20] sm:$0xff] }
  0x65   : > { %1217 = vst [vmem:[#allocation4 + $0x10] sm:$0xff] %v1216_v2  ;;  %v1222_v5 = vld [vmem:[%s5914_s27 + $0x28] sm:$0xff]  ;;  %1219 = vst [vmem:[#allocation4 + $0x48] sm:$0xff] %v1218_v3  ;;  %v1224_v6 = vld [vmem:[%s5914_s27 + $0x30] sm:$0xff]  ;;  %s4339_s15 = sshll.u32 %s1176_s10, 2  ;;  %s5336_s10 = scalar_lea.vmem [#allocation6], %s5857_s26 }
  0x66   : > { %1221 = vst [vmem:[#allocation4 + $0x320] sm:$0xff] %v1220_v4  ;;  %1223 = vst [vmem:[#allocation4 + $0x38] sm:$0xff] %v1222_v5  ;;  %v1226_v7 = vld [vmem:[%s5914_s27 + $0x38] sm:$0xff]  ;;  %v1228_v8 = vld [vmem:[%s5914_s27 + $0x40] sm:$0xff]  ;;  %s5243_s16 = scalar_lea.vmem %s5918_s5, %s4339_s15  ;;  %s5858_s15 = smov 11  }
  0x67   : > { %1225 = vst [vmem:[#allocation4 + $0xf8] sm:$0xff] %v1224_v6  ;;  %1227 = vst [vmem:[#allocation4 + $0x100] sm:$0xff] %v1226_v7  ;;  %v1230_v9 = vld [vmem:[%s5914_s27 + $0x48] sm:$0xff]  ;;  %v1232_v10 = vld [vmem:[%s5914_s27 + $0x50] sm:$0xff] }
  0x68   : > { %1229 = vst [vmem:[#allocation4 + $0x80] sm:$0xff] %v1228_v8  ;;  %v1234_v11 = vld [vmem:[%s5914_s27 + $0x58] sm:$0xff]  ;;  %1231 = vst [vmem:[#allocation4 + $0x308] sm:$0xff] %v1230_v9  ;;  %v1236_v12 = vld [vmem:[%s5914_s27 + $0x60] sm:$0xff] }
  0x69   : > { %1233 = vst [vmem:[#allocation4 + $0x138] sm:$0xff] %v1232_v10  ;;  %1235 = vst [vmem:[#allocation4 + $0xf0] sm:$0xff] %v1234_v11  ;;  %v1238_v13 = vld [vmem:[%s5914_s27 + $0x68] sm:$0xff]  ;;  %v1240_v14 = vld [vmem:[%s5914_s27 + $0x70] sm:$0xff] }
  0x6a   : > { %1237 = vst [vmem:[#allocation4 + $0x18] sm:$0xff] %v1236_v12  ;;  %1239 = vst [vmem:[#allocation4 + $0x2c8] sm:$0xff] %v1238_v13  ;;  %v1242_v15 = vld [vmem:[%s5914_s27 + $0x78] sm:$0xff]  ;;  %v1244_v16 = vld [vmem:[%s5914_s27 + $0x80] sm:$0xff] }
  0x6b   : > { %1241 = vst [vmem:[#allocation4 + $0x318] sm:$0xff] %v1240_v14  ;;  %v1246_v17 = vld [vmem:[%s5914_s27 + $0x88] sm:$0xff]  ;;  %1243 = vst [vmem:[#allocation4 + $0x20] sm:$0xff] %v1242_v15  ;;  %v1248_v18 = vld [vmem:[%s5914_s27 + $0x90] sm:$0xff] }
  0x6c   : > { %1245 = vst [vmem:[#allocation4 + $0x2c0] sm:$0xff] %v1244_v16  ;;  %1247 = vst [vmem:[#allocation4 + $0x188] sm:$0xff] %v1246_v17  ;;  %v1250_v19 = vld [vmem:[%s5914_s27 + $0x98] sm:$0xff]  ;;  %v1252_v20 = vld [vmem:[%s5914_s27 + $0xa0] sm:$0xff] }
  0x6d   : > { %1249 = vst [vmem:[#allocation4 + $0x198] sm:$0xff] %v1248_v18  ;;  %1251 = vst [vmem:[#allocation4 + $0x148] sm:$0xff] %v1250_v19  ;;  %v1254_v21 = vld [vmem:[%s5914_s27 + $0xa8] sm:$0xff]  ;;  %v1256_v22 = vld [vmem:[%s5914_s27 + $0xb0] sm:$0xff] }
  0x6e   : > { %1253 = vst [vmem:[#allocation4 + $0x2d0] sm:$0xff] %v1252_v20  ;;  %v1258_v23 = vld [vmem:[%s5914_s27 + $0xb8] sm:$0xff]  ;;  %1255 = vst [vmem:[#allocation4 + $0x268] sm:$0xff] %v1254_v21  ;;  %v1260_v24 = vld [vmem:[%s5914_s27 + $0xc0] sm:$0xff] }
  0x6f   : > { %1257 = vst [vmem:[#allocation4 + $0x108] sm:$0xff] %v1256_v22  ;;  %1259 = vst [vmem:[#allocation4 + $0x88] sm:$0xff] %v1258_v23  ;;  %v1262_v25 = vld [vmem:[%s5914_s27 + $0xc8] sm:$0xff]  ;;  %v1264_v26 = vld [vmem:[%s5914_s27 + $0xd0] sm:$0xff] }
  0x70   : > { %1261 = vst [vmem:[#allocation4 + $0x248] sm:$0xff] %v1260_v24  ;;  %1263 = vst [vmem:[#allocation4 + $0xc8] sm:$0xff] %v1262_v25  ;;  %v1266_v27 = vld [vmem:[%s5914_s27 + $0xd8] sm:$0xff]  ;;  %v1268_v28 = vld [vmem:[%s5914_s27 + $0xe0] sm:$0xff] }
  0x71   : > { %1265 = vst [vmem:[#allocation4 + $0x118] sm:$0xff] %v1264_v26  ;;  %v1270_v29 = vld [vmem:[%s5914_s27 + $0xe8] sm:$0xff]  ;;  %1267 = vst [vmem:[#allocation4 + $0x1d0] sm:$0xff] %v1266_v27  ;;  %v1272_v30 = vld [vmem:[%s5914_s27 + $0xf0] sm:$0xff] }
  0x72   : > { %1269 = vst [vmem:[#allocation4 + $0x240] sm:$0xff] %v1268_v28  ;;  %1271 = vst [vmem:[#allocation4 + $0x278] sm:$0xff] %v1270_v29  ;;  %v1274_v31 = vld [vmem:[%s5914_s27 + $0xf8] sm:$0xff]  ;;  %v1276_v32 = vld [vmem:[%s5914_s27 + $0x100] sm:$0xff] }
  0x73   : > { %1273 = vst [vmem:[#allocation4 + $0x258] sm:$0xff] %v1272_v30  ;;  %1275 = vst [vmem:[#allocation4 + $0x150] sm:$0xff] %v1274_v31  ;;  %v1278_v33 = vld [vmem:[%s5914_s27 + $0x108] sm:$0xff]  ;;  %v1280_v34 = vld [vmem:[%s5914_s27 + $0x110] sm:$0xff] }
  0x74   : > { %1277 = vst [vmem:[#allocation4 + $0x178] sm:$0xff] %v1276_v32  ;;  %v1282_v35 = vld [vmem:[%s5914_s27 + $0x118] sm:$0xff]  ;;  %1279 = vst [vmem:[#allocation4 + $0xb8] sm:$0xff] %v1278_v33  ;;  %v1284_v36 = vld [vmem:[%s5914_s27 + $0x120] sm:$0xff] }
  0x75   : > { %1281 = vst [vmem:[#allocation4 + $0x300] sm:$0xff] %v1280_v34  ;;  %1283 = vst [vmem:[#allocation4 + $0x1c8] sm:$0xff] %v1282_v35  ;;  %v1286_v37 = vld [vmem:[%s5914_s27 + $0x128] sm:$0xff]  ;;  %v1288_v38 = vld [vmem:[%s5914_s27 + $0x130] sm:$0xff] }
  0x76   : > { %1285 = vst [vmem:[#allocation4 + $0x1d8] sm:$0xff] %v1284_v36  ;;  %1287 = vst [vmem:[#allocation4 + $0xa0] sm:$0xff] %v1286_v37  ;;  %v1290_v39 = vld [vmem:[%s5914_s27 + $0x138] sm:$0xff]  ;;  %v1292_v40 = vld [vmem:[%s5914_s27 + $0x140] sm:$0xff] }
  0x77   : > { %1289 = vst [vmem:[#allocation4 + $0x338] sm:$0xff] %v1288_v38  ;;  %v1294_v41 = vld [vmem:[%s5914_s27 + $0x148] sm:$0xff]  ;;  %1291 = vst [vmem:[#allocation4 + $0x1a0] sm:$0xff] %v1290_v39  ;;  %v1296_v42 = vld [vmem:[%s5914_s27 + $0x150] sm:$0xff] }
  0x78   : > { %1293 = vst [vmem:[#allocation4 + $0x228] sm:$0xff] %v1292_v40  ;;  %1295 = vst [vmem:[#allocation4 + $0x78] sm:$0xff] %v1294_v41  ;;  %v1298_v43 = vld [vmem:[%s5914_s27 + $0x158] sm:$0xff]  ;;  %v1300_v44 = vld [vmem:[%s5914_s27 + $0x160] sm:$0xff]  ;;  %v4953_v41 = vmov 0.0  }
  0x79   : > { %1297 = vst [vmem:[#allocation4 + $0xa8] sm:$0xff] %v1296_v42  ;;  %1299 = vst [vmem:[#allocation4 + $0x1e0] sm:$0xff] %v1298_v43  ;;  %v1302_v45 = vld [vmem:[%s5914_s27 + $0x168] sm:$0xff]  ;;  %v1304_v46 = vld [vmem:[%s5914_s27 + $0x170] sm:$0xff] }
  0x7a   : > { %1301 = vst [vmem:[#allocation4 + $0x298] sm:$0xff] %v1300_v44  ;;  %v1306_v47 = vld [vmem:[%s5914_s27 + $0x178] sm:$0xff]  ;;  %1303 = vst [vmem:[#allocation4 + $0xd8] sm:$0xff] %v1302_v45  ;;  %v1308_v48 = vld [vmem:[%s5914_s27 + $0x180] sm:$0xff] }
  0x7b   : > { %1305 = vst [vmem:[#allocation4 + $0x8] sm:$0xff] %v1304_v46  ;;  %1307 = vst [vmem:[#allocation4 + $0x2a0] sm:$0xff] %v1306_v47  ;;  %v1310_v49 = vld [vmem:[%s5914_s27 + $0x188] sm:$0xff]  ;;  %v1312_v50 = vld [vmem:[%s5914_s27 + $0x190] sm:$0xff] }
  0x7c   : > { %1309 = vst [vmem:[#allocation4 + $0x70] sm:$0xff] %v1308_v48  ;;  %1311 = vst [vmem:[#allocation4 + $0x40] sm:$0xff] %v1310_v49  ;;  %v1314_v51 = vld [vmem:[%s5914_s27 + $0x198] sm:$0xff]  ;;  %v1316_v52 = vld [vmem:[%s5914_s27 + $0x1a0] sm:$0xff] }
  0x7d   : > { %1313 = vst [vmem:[#allocation4 + $0x230] sm:$0xff] %v1312_v50  ;;  %v1318_v53 = vld [vmem:[%s5914_s27 + $0x1a8] sm:$0xff]  ;;  %1315 = vst [vmem:[#allocation4 + $0x180] sm:$0xff] %v1314_v51  ;;  %v1320_v54 = vld [vmem:[%s5914_s27 + $0x1b0] sm:$0xff] }
  0x7e   : > { %1317 = vst [vmem:[#allocation4 + $0x208] sm:$0xff] %v1316_v52  ;;  %1319 = vst [vmem:[#allocation4 + $0x2f0] sm:$0xff] %v1318_v53  ;;  %v1322_v55 = vld [vmem:[%s5914_s27 + $0x1b8] sm:$0xff]  ;;  %v1324_v56 = vld [vmem:[%s5914_s27 + $0x1c0] sm:$0xff] }
  0x7f   : > { %1321 = vst [vmem:[#allocation4 + $0x210] sm:$0xff] %v1320_v54  ;;  %1323 = vst [vmem:[#allocation4 + $0x110] sm:$0xff] %v1322_v55  ;;  %v1326_v57 = vld [vmem:[%s5914_s27 + $0x1c8] sm:$0xff]  ;;  %v1328_v58 = vld [vmem:[%s5914_s27 + $0x1d0] sm:$0xff] }
  0x80   : > { %1325 = vst [vmem:[#allocation4 + $0x270] sm:$0xff] %v1324_v56  ;;  %v1330_v59 = vld [vmem:[%s5914_s27 + $0x1d8] sm:$0xff]  ;;  %1327 = vst [vmem:[#allocation4 + $0xe8] sm:$0xff] %v1326_v57  ;;  %v1332_v60 = vld [vmem:[%s5914_s27 + $0x1e0] sm:$0xff] }
  0x81   : > { %1329 = vst [vmem:[#allocation4 + $0x2d8] sm:$0xff] %v1328_v58  ;;  %1331 = vst [vmem:[#allocation4 + $0x158] sm:$0xff] %v1330_v59  ;;  %v1334_v61 = vld [vmem:[%s5914_s27 + $0x1e8] sm:$0xff]  ;;  %v1336_v62 = vld [vmem:[%s5914_s27 + $0x1f0] sm:$0xff] }
  0x82   : > { %1333 = vst [vmem:[#allocation4 + $0x2b8] sm:$0xff] %v1332_v60  ;;  %1335 = vst [vmem:[#allocation4 + $0x90] sm:$0xff] %v1334_v61  ;;  %v1338_v63 = vld [vmem:[%s5914_s27 + $0x1f8] sm:$0xff]  ;;  %v1340_v0 = vld [vmem:[%s5914_s27 + $0x200] sm:$0xff] }
  0x83   : > { %1337 = vst [vmem:[#allocation4 + $0x168] sm:$0xff] %v1336_v62  ;;  %v1342_v1 = vld [vmem:[%s5914_s27 + $0x208] sm:$0xff]  ;;  %1339 = vst [vmem:[#allocation4 + $0x1b0] sm:$0xff] %v1338_v63  ;;  %v1344_v2 = vld [vmem:[%s5914_s27 + $0x210] sm:$0xff] }
  0x84   : > { %1341 = vst [vmem:[#allocation4 + $0x260] sm:$0xff] %v1340_v0  ;;  %1343 = vst [vmem:[#allocation4 + $0x50] sm:$0xff] %v1342_v1  ;;  %v1346_v3 = vld [vmem:[%s5914_s27 + $0x218] sm:$0xff]  ;;  %v1348_v4 = vld [vmem:[%s5914_s27 + $0x220] sm:$0xff] }
  0x85   : > { %1345 = vst [vmem:[#allocation4 + $0x328] sm:$0xff] %v1344_v2  ;;  %1347 = vst [vmem:[#allocation4 + $0x220] sm:$0xff] %v1346_v3  ;;  %v1350_v5 = vld [vmem:[%s5914_s27 + $0x228] sm:$0xff]  ;;  %v1352_v6 = vld [vmem:[%s5914_s27 + $0x230] sm:$0xff] }
  0x86   : > { %1349 = vst [vmem:[#allocation4 + $0x170] sm:$0xff] %v1348_v4  ;;  %v1354_v7 = vld [vmem:[%s5914_s27 + $0x238] sm:$0xff]  ;;  %1351 = vst [vmem:[#allocation4 + $0x250] sm:$0xff] %v1350_v5  ;;  %v1356_v8 = vld [vmem:[%s5914_s27 + $0x240] sm:$0xff] }
  0x87   : > { %1353 = vst [vmem:[#allocation4 + $0x28] sm:$0xff] %v1352_v6  ;;  %1355 = vst [vmem:[#allocation4] sm:$0xff] %v1354_v7  ;;  %v1358_v9 = vld [vmem:[%s5914_s27 + $0x248] sm:$0xff]  ;;  %v1360_v10 = vld [vmem:[%s5914_s27 + $0x250] sm:$0xff] }
  0x88   : > { %1357 = vst [vmem:[#allocation4 + $0x60] sm:$0xff] %v1356_v8  ;;  %1359 = vst [vmem:[#allocation4 + $0x1b8] sm:$0xff] %v1358_v9  ;;  %v1362_v11 = vld [vmem:[%s5914_s27 + $0x258] sm:$0xff]  ;;  %v1364_v12 = vld [vmem:[%s5914_s27 + $0x260] sm:$0xff] }
  0x89   : > { %1361 = vst [vmem:[#allocation4 + $0x140] sm:$0xff] %v1360_v10  ;;  %v1366_v13 = vld [vmem:[%s5914_s27 + $0x268] sm:$0xff]  ;;  %1363 = vst [vmem:[#allocation4 + $0x2a8] sm:$0xff] %v1362_v11  ;;  %v1368_v14 = vld [vmem:[%s5914_s27 + $0x270] sm:$0xff] }
  0x8a   : > { %1365 = vst [vmem:[#allocation4 + $0x1f0] sm:$0xff] %v1364_v12  ;;  %1367 = vst [vmem:[#allocation4 + $0x68] sm:$0xff] %v1366_v13  ;;  %v1370_v15 = vld [vmem:[%s5914_s27 + $0x278] sm:$0xff]  ;;  %v1372_v16 = vld [vmem:[%s5914_s27 + $0x280] sm:$0xff] }
  0x8b   : > { %1369 = vst [vmem:[#allocation4 + $0xe0] sm:$0xff] %v1368_v14  ;;  %1371 = vst [vmem:[#allocation4 + $0x120] sm:$0xff] %v1370_v15  ;;  %v1374_v17 = vld [vmem:[%s5914_s27 + $0x288] sm:$0xff]  ;;  %v1376_v18 = vld [vmem:[%s5914_s27 + $0x290] sm:$0xff] }
  0x8c   : > { %1373 = vst [vmem:[#allocation4 + $0x330] sm:$0xff] %v1372_v16  ;;  %v1378_v19 = vld [vmem:[%s5914_s27 + $0x298] sm:$0xff]  ;;  %1375 = vst [vmem:[#allocation4 + $0x190] sm:$0xff] %v1374_v17  ;;  %v1380_v20 = vld [vmem:[%s5914_s27 + $0x2a0] sm:$0xff] }
  0x8d   : > { %1377 = vst [vmem:[#allocation4 + $0x1a8] sm:$0xff] %v1376_v18  ;;  %1379 = vst [vmem:[#allocation4 + $0x98] sm:$0xff] %v1378_v19  ;;  %v1382_v21 = vld [vmem:[%s5914_s27 + $0x2a8] sm:$0xff]  ;;  %v1384_v22 = vld [vmem:[%s5914_s27 + $0x2b0] sm:$0xff] }
  0x8e   : > { %1381 = vst [vmem:[#allocation4 + $0x1e8] sm:$0xff] %v1380_v20  ;;  %1383 = vst [vmem:[#allocation4 + $0x130] sm:$0xff] %v1382_v21  ;;  %v1386_v23 = vld [vmem:[%s5914_s27 + $0x2b8] sm:$0xff]  ;;  %v1388_v24 = vld [vmem:[%s5914_s27 + $0x2c0] sm:$0xff] }
  0x8f   : > { %1385 = vst [vmem:[#allocation4 + $0x238] sm:$0xff] %v1384_v22  ;;  %v1390_v25 = vld [vmem:[%s5914_s27 + $0x2c8] sm:$0xff]  ;;  %1387 = vst [vmem:[#allocation4 + $0x128] sm:$0xff] %v1386_v23  ;;  %v1392_v26 = vld [vmem:[%s5914_s27 + $0x2d0] sm:$0xff] }
  0x90   : > { %1389 = vst [vmem:[#allocation4 + $0x200] sm:$0xff] %v1388_v24  ;;  %1391 = vst [vmem:[#allocation4 + $0x2f8] sm:$0xff] %v1390_v25  ;;  %v1394_v27 = vld [vmem:[%s5914_s27 + $0x2d8] sm:$0xff]  ;;  %v1396_v28 = vld [vmem:[%s5914_s27 + $0x2e0] sm:$0xff] }
  0x91   : > { %1393 = vst [vmem:[#allocation4 + $0x1c0] sm:$0xff] %v1392_v26  ;;  %1395 = vst [vmem:[#allocation4 + $0x218] sm:$0xff] %v1394_v27  ;;  %v1398_v29 = vld [vmem:[%s5914_s27 + $0x2e8] sm:$0xff]  ;;  %v1400_v30 = vld [vmem:[%s5914_s27 + $0x2f0] sm:$0xff] }
  0x92   : > { %1397 = vst [vmem:[#allocation4 + $0x58] sm:$0xff] %v1396_v28  ;;  %v1402_v31 = vld [vmem:[%s5914_s27 + $0x2f8] sm:$0xff]  ;;  %1399 = vst [vmem:[#allocation4 + $0x30] sm:$0xff] %v1398_v29  ;;  %v1404_v32 = vld [vmem:[%s5914_s27 + $0x300] sm:$0xff] }
  0x93   : > { %1401 = vst [vmem:[#allocation4 + $0xc0] sm:$0xff] %v1400_v30  ;;  %1403 = vst [vmem:[#allocation4 + $0x2e0] sm:$0xff] %v1402_v31  ;;  %v1406_v33 = vld [vmem:[%s5914_s27 + $0x308] sm:$0xff]  ;;  %v1408_v34 = vld [vmem:[%s5914_s27 + $0x310] sm:$0xff] }
  0x94   : > { %1405 = vst [vmem:[#allocation4 + $0x290] sm:$0xff] %v1404_v32  ;;  %1407 = vst [vmem:[#allocation4 + $0x288] sm:$0xff] %v1406_v33  ;;  %v1410_v35 = vld [vmem:[%s5914_s27 + $0x318] sm:$0xff]  ;;  %v1412_v36 = vld [vmem:[%s5914_s27 + $0x320] sm:$0xff] }
  0x95   : > { %1409 = vst [vmem:[#allocation4 + $0x310] sm:$0xff] %v1408_v34  ;;  %v1414_v37 = vld [vmem:[%s5914_s27 + $0x328] sm:$0xff]  ;;  %1411 = vst [vmem:[#allocation4 + $0x160] sm:$0xff] %v1410_v35  ;;  %v1416_v38 = vld [vmem:[%s5914_s27 + $0x330] sm:$0xff] }
  0x96   : > { %1413 = vst [vmem:[#allocation4 + $0x280] sm:$0xff] %v1412_v36  ;;  %1415 = vst [vmem:[#allocation4 + $0x2e8] sm:$0xff] %v1414_v37  ;;  %v1418_v39 = vld [vmem:[%s5914_s27 + $0x338] sm:$0xff]  ;;  %v1430_v40 = vld [vmem:[%s5243_s16] sm:$0xf] }
  0x97   : > { %1417 = vst [vmem:[#allocation4 + $0x1f8] sm:$0xff] %v1416_v38  ;;  %1419 = vst [vmem:[#allocation4 + $0xb0] sm:$0xff] %v1418_v39  ;;  %1432 = vrot.lane.b32.xlu0 %v1430_v40, %s5858_s15 }
  0x98   : > { %1429 = vst [vmem:[#allocation2] sm:$0xf] %v4953_v41 }
  0x99   : > { %1427 = vsyncadd [#allocation5], 13312  ;;  %4534 = vmatprep.subr.mxu0 %v4953_v41  ;;  %vm1435_vm0 = vcmask 904280   ;;  %vm1438_vm1 = vcmask 814080   ;;  %s5861_s26 = smov 106   ;;  %s5875_s16 = smov 108  }
  0x9a   : > { %s5863_s15 = smov 107   ;;  %s5865_s5 = smov 117   ;;  %vm4960_vm2 = vmmov 0   ;;  %v4961_v52 = vmov 0   ;;  %vm1504_vm3 = vcmask 1043456   ;;  %vm1500_vm4 = vcmask 293888  }
  0x9b   : > { %s5919_s17 = sld [smem:[#allocation14_spill]]  ;;  %s5873_s27 = smov 116   ;;  %4544 = vmatprep.mubr.msk.f32.mxu0 %vm4960_vm2, %v4953_v41  ;;  %4845 = vset.pattern.permute.xlu1 %v4961_v52  ;;  %v5377_v7 = vld [vmem:[%s5913_s9] ss:$0 sm:$0xff]  ;;  %v1649_v22 = vld [vmem:[%s4999_s25 + $0x8] sm:$0xf] }
  0x9c   : > { %4846 = vset.pattern.permute.xlu0 %v4961_v52  ;;  %s5920_s13 = sld [smem:[#allocation13_spill]]  ;;  %v1641_v19 = vld [vmem:[%s4994_s21] sm:$0xff]  ;;  %s5929_s18 = smov 127   ;;  %v1642_v38 = vld [vmem:[%s4994_s21 + $0x8] sm:$0xf]  ;;  %vm1753_vm5 = vcmask 97280  }
  0x9d   : > { %s5925_s3 = sld [smem:[#allocation15_spill]]  ;;  %4557 = vmatprep.mubr.msk.f32.mxu1 %vm1500_vm4, %v1641_v19  ;;  %v1648_v23 = vld [vmem:[%s4999_s25] sm:$0xff] }
  0x9e   : > { %s5931_s14 = sld [smem:[#allocation17_spill]] }
  0x9f   : > { %s5932_s8 = sld [smem:[#allocation16_spill]] }
  0xa0   : > { %s5933_s6 = sld [smem:[#allocation19_spill]] }
  0xa1   : > { %v1494_v53 = vld [vmem:[%s5919_s17] sm:$0xf]  ;;  %s5927_s17 = smov 126  }
  0xa2   : > { %v1488_v2 = vld [vmem:[%s5920_s13] sm:$0xf]  ;;  %s5926_s13 = smov 116  }
  0xa3   : > { %v1747_v24 = vld [vmem:[%s5925_s3] sm:$0xf]  ;;  %s5930_s3 = smov 108  }
 0x109   : > { %v1433_v42 = vpop.permute.xlu0 %1432 }
 0x10a   : > { %1436 = vst.msk [vmem:[#allocation2] sm:$0xf] %vm1435_vm0, %v1433_v42 }
 0x111   : > { %v5343_v43 = vld [vmem:[#allocation2] sm:$0xf] }
 0x112   : > { %v1482_v44 = vld [vmem:[#allocation2] sm:$0xf]  ;;  %1439 = vst.msk [vmem:[#allocation3] sm:$0xf] %vm1438_vm1, %v5343_v43 }
 0x113   : > { %v1470_v45 = vld [vmem:[#allocation2] sm:$0xf]  ;;  %1484 = vrot.lane.b32.xlu0 %v1482_v44, %s5861_s26  ;;  %s5871_s26 = smov 126  }
 0x114   : > { %1472 = vrot.lane.b32.xlu1 %v1470_v45, %s5875_s16  ;;  %v1476_v46 = vld [vmem:[#allocation2] sm:$0xf] }
 0x115   : > { %v1458_v47 = vld [vmem:[#allocation2] sm:$0xf] }
 0x116   : > { %v1464_v48 = vld [vmem:[#allocation2] sm:$0xf] }
 0x117   : > { %1460 = vrot.lane.b32.xlu0 %v1458_v47, %s5865_s5  ;;  %v1446_v49 = vld [vmem:[#allocation2] sm:$0xf]  ;;  %s5867_s5 = smov 127  }
 0x118   : > { %1478 = vrot.lane.b32.xlu1 %v1476_v46, %s5863_s15  ;;  %v1452_v50 = vld [vmem:[#allocation2] sm:$0xf]  ;;  %s5869_s15 = smov 118  }
 0x119   : > { %v1440_v51 = vld [vmem:[#allocation2] sm:$0xf] }
 0x11b   : > { %1448 = vrot.lane.b32.xlu0 %v1446_v49, %s5871_s26  ;;  %s5923_s26 = smov 107   ;;  %v1746_v49 = vld [vmem:[%s5004_s29] sm:$0xf] }
 0x11c   : > { %1466 = vrot.lane.b32.xlu1 %v1464_v48, %s5873_s27  ;;  %s5924_s27 = smov 117  }
 0x11f   : > { %1442 = vrot.lane.b32.xlu0 %v1440_v51, %s5867_s5  ;;  %s5921_s5 = smov 11  }
 0x120   : > { %1454 = vrot.lane.b32.xlu1 %v1452_v50, %s5869_s15  ;;  %s5922_s15 = smov 106  }
 0x124   : > { %1497 = vperm.xlu1 %4845, %v1494_v53  }
 0x185   : > { %v1485_v54 = vpop.permute.xlu0 %1484 }
 0x186   : > { %v1473_v55 = vpop.permute.xlu1 %1472  ;;  %1487 = vst.msk [vmem:[#allocation3 + $0x20] sm:$0xf] %vm1438_vm1, %v1485_v54 }
 0x187   : > { %1475 = vst.msk [vmem:[#allocation3 + $0x18] sm:$0xf] %vm1438_vm1, %v1473_v55 }
 0x189   : > { %v1461_v57 = vpop.permute.xlu0 %1460 }
 0x18a   : > { %v1479_v56 = vpop.permute.xlu1 %1478  ;;  %1463 = vst.msk [vmem:[#allocation3 + $0x10] sm:$0xf] %vm1438_vm1, %v1461_v57 }
 0x18b   : > { %1481 = vst.msk [vmem:[#allocation3 + $0x1c] sm:$0xf] %vm1438_vm1, %v1479_v56 }
 0x18d   : > { %v1449_v59 = vpop.permute.xlu0 %1448  ;;  %v1493_v60 = vld [vmem:[#allocation3 + $0x20] sm:$0xf] }
 0x18e   : > { %v1467_v58 = vpop.permute.xlu1 %1466  ;;  %1451 = vst.msk [vmem:[#allocation3 + $0x8] sm:$0xf] %vm1438_vm1, %v1449_v59  ;;  %4535 = vmatpush3.msk.msra.mxu0 %vm1504_vm3, %v1493_v60 }
 0x18f   : > { %1469 = vst.msk [vmem:[#allocation3 + $0x14] sm:$0xf] %vm1438_vm1, %v1467_v58  ;;  %4536 = vmatprep.subr.mxu0 %v4953_v41 }
 0x191   : > { %v1443_v63 = vpop.permute.xlu0 %1442 }
 0x192   : > { %v1492_v61 = vld [vmem:[#allocation3 + $0x18] sm:$0xff]  ;;  %v1455_v62 = vpop.permute.xlu1 %1454  ;;  %1445 = vst.msk [vmem:[#allocation3 + $0x4] sm:$0xf] %vm1438_vm1, %v1443_v63 }
 0x193   : > { %1457 = vst.msk [vmem:[#allocation3 + $0xc] sm:$0xf] %vm1438_vm1, %v1455_v62  ;;  %4537 = vmatpush3.msra.mxu0 %v1492_v61 }
 0x194   : > { %4538 = vmatprep.subr.mxu0 %v4953_v41 }
 0x196   : > { %v1491_v0 = vld [vmem:[#allocation3 + $0x10] sm:$0xff] }
 0x197   : > { %4539 = vmatpush3.msra.mxu0 %v1491_v0 }
 0x198   : > { %4540 = vmatprep.subr.mxu0 %v4953_v41 }
 0x199   : > { %v1489_v3 = vld [vmem:[#allocation3] sm:$0xff] }
 0x19a   : > { %v1490_v1 = vld [vmem:[#allocation3 + $0x8] sm:$0xff] }
 0x19b   : > { %4541 = vmatpush3.msra.mxu0 %v1490_v1 }
 0x19c   : > { %4542 = vmatprep.subr.mxu0 %v4953_v41 }
 0x19d   : > { %4543 = vmatpush3.msra.mxu0 %v1489_v3 }
 0x19e   : > { %4545 = vmatmul.mubr.msk.f32.vlgmr.msra.gmra.mxu0 %vm1500_vm4, %v1488_v2  ;;  %4560 = vmatprep.subr.mxu0 %v4953_v41  ;;  %v1894_v2 = vld [vmem:[%s5931_s14] sm:$0xf]  ;;  %s5939_s14 = sld [smem:[#allocation25_spill]] }
 0x19f   : > { %4564 = vmatprep.mubr.msk.f32.mxu0 %vm4960_vm2, %v4953_v41  ;;  %v1498_v4 = vpop.permute.xlu1 %1497 }
 0x25e   : > { %v1574_v5 = vpop.f32.mrf.mxu0 }
 0x25f   : > { %v1575_v6 = vadd.f32 %v1574_v5, %v1498_v4 }
 0x260   : > { %v4546_v8 = vpop.f32.mrf.mxu0 }
 0x261   : > { %v1578_v9 = vmax.f32 %v1575_v6, 0.0 }
 0x263   : > { %v1585_v10 = vmul.f32 %v5377_v7, %v1578_v9 }
 0x265   : > { %1587 = vrot.lane.b32.xlu0 %v1585_v10, %s5921_s5 }
 0x2d7   : > { %v1588_v11 = vpop.permute.xlu0 %1587 }
 0x2d8   : > { %1590 = vst.msk [vmem:[#allocation2] sm:$0xf] %vm1435_vm0, %v1588_v11 }
 0x2df   : > { %v1591_v12 = vld [vmem:[#allocation2] sm:$0xf] }
 0x2e0   : > { %v1635_v13 = vld [vmem:[#allocation2] sm:$0xf]  ;;  %1592 = vst.msk [vmem:[#allocation3] sm:$0xf] %vm1438_vm1, %v1591_v12 }
 0x2e1   : > { %v1623_v14 = vld [vmem:[#allocation2] sm:$0xf]  ;;  %1637 = vrot.lane.b32.xlu1 %v1635_v13, %s5922_s15 }
 0x2e2   : > { %1625 = vrot.lane.b32.xlu0 %v1623_v14, %s5875_s16  ;;  %v1629_v15 = vld [vmem:[#allocation2] sm:$0xf]  ;;  %s5928_s16 = smov 118  }
 0x2e3   : > { %v1611_v16 = vld [vmem:[#allocation2] sm:$0xf] }
 0x2e4   : > { %v1617_v17 = vld [vmem:[#allocation2] sm:$0xf] }
 0x2e5   : > { %1631 = vrot.lane.b32.xlu1 %v1629_v15, %s5923_s26  ;;  %v1599_v18 = vld [vmem:[#allocation2] sm:$0xf] }
 0x2e6   : > { %1613 = vrot.lane.b32.xlu0 %v1611_v16, %s5924_s27  ;;  %v1605_v20 = vld [vmem:[#allocation2] sm:$0xf] }
 0x2e7   : > { %v1593_v21 = vld [vmem:[#allocation2] sm:$0xf] }
 0x2e8   : > { %v1888_v16 = vld [vmem:[%s5932_s8] sm:$0xf]  ;;  %s5938_s8 = sld [smem:[#allocation23_spill]] }
 0x2e9   : > { %1619 = vrot.lane.b32.xlu1 %v1617_v17, %s5926_s13 }
 0x2ea   : > { %1601 = vrot.lane.b32.xlu0 %v1599_v18, %s5927_s17 }
 0x2ed   : > { %1607 = vrot.lane.b32.xlu1 %v1605_v20, %s5928_s16 }
 0x2ee   : > { %1595 = vrot.lane.b32.xlu0 %v1593_v21, %s5929_s18 }
 0x2f1   : > { %1657 = vperm.xlu1 %4845, %v1649_v22  }
 0x2f2   : > { %1652 = vperm.xlu0 %4846, %v1648_v23  }
 0x2f5   : > { %1750 = vperm.xlu1 %4845, %v1747_v24  }
 0x353   : > { %v1638_v25 = vpop.permute.xlu1 %1637 }
 0x354   : > { %v1626_v26 = vpop.permute.xlu0 %1625  ;;  %1640 = vst.msk [vmem:[#allocation3 + $0x20] sm:$0xf] %vm1438_vm1, %v1638_v25 }
 0x355   : > { %1628 = vst.msk [vmem:[#allocation3 + $0x18] sm:$0xf] %vm1438_vm1, %v1626_v26 }
 0x357   : > { %v1632_v27 = vpop.permute.xlu1 %1631 }
 0x358   : > { %v1614_v28 = vpop.permute.xlu0 %1613  ;;  %1634 = vst.msk [vmem:[#allocation3 + $0x1c] sm:$0xf] %vm1438_vm1, %v1632_v27 }
 0x359   : > { %1616 = vst.msk [vmem:[#allocation3 + $0x10] sm:$0xf] %vm1438_vm1, %v1614_v28 }
 0x35b   : > { %v1620_v29 = vpop.permute.xlu1 %1619  ;;  %v1647_v31 = vld [vmem:[#allocation3 + $0x20] sm:$0xf] }
 0x35c   : > { %v1602_v30 = vpop.permute.xlu0 %1601  ;;  %1622 = vst.msk [vmem:[#allocation3 + $0x14] sm:$0xf] %vm1438_vm1, %v1620_v29  ;;  %4547 = vmatprep.subr.msk.mxu1 %vm1504_vm3, %v1647_v31 }
 0x35d   : > { %1604 = vst.msk [vmem:[#allocation3 + $0x8] sm:$0xf] %vm1438_vm1, %v1602_v30  ;;  %4548 = vmatpush3.msk.msra.mxu1 %vm1504_vm3, %v1647_v31 }
 0x35f   : > { %v1646_v32 = vld [vmem:[#allocation3 + $0x18] sm:$0xff]  ;;  %v1608_v33 = vpop.permute.xlu1 %1607 }
 0x360   : > { %v1596_v34 = vpop.permute.xlu0 %1595  ;;  %1610 = vst.msk [vmem:[#allocation3 + $0xc] sm:$0xf] %vm1438_vm1, %v1608_v33  ;;  %4549 = vmatprep.subr.mxu1 %v1646_v32 }
 0x361   : > { %1598 = vst.msk [vmem:[#allocation3 + $0x4] sm:$0xf] %vm1438_vm1, %v1596_v34  ;;  %4550 = vmatpush3.msra.mxu1 %v1646_v32  ;;  %v2033_v32 = vld [vmem:[%s5024_s19] sm:$0xff] }
 0x363   : > { %v1645_v35 = vld [vmem:[#allocation3 + $0x10] sm:$0xff] }
 0x364   : > { %4551 = vmatprep.subr.mxu1 %v1645_v35 }
 0x365   : > { %4552 = vmatpush3.msra.mxu1 %v1645_v35  ;;  %v2041_v35 = vld [vmem:[%s5029_s24 + $0x8] sm:$0xf] }
 0x367   : > { %v1644_v36 = vld [vmem:[#allocation3 + $0x8] sm:$0xff] }
 0x368   : > { %4553 = vmatprep.subr.mxu1 %v1644_v36  ;;  %v1643_v37 = vld [vmem:[#allocation3] sm:$0xff] }
 0x369   : > { %4554 = vmatpush3.msra.mxu1 %v1644_v36  ;;  %v2040_v36 = vld [vmem:[%s5029_s24] sm:$0xff] }
 0x36a   : > { %4555 = vmatprep.subr.mxu1 %v1643_v37 }
 0x36b   : > { %4556 = vmatpush3.msra.mxu1 %v1643_v37  ;;  %v2139_v37 = vld [vmem:[%s5933_s6] sm:$0xf]  ;;  %s5934_s6 = sld [smem:[#allocation18_spill]] }
 0x36c   : > { %4558 = vmatmul.mubr.msk.f32.vlgmr.msra.gmra.mxu1 %vm1500_vm4, %v1642_v38  ;;  %4567 = vmatprep.subr.mxu1 %v4953_v41  ;;  %v1658_v39 = vpop.permute.xlu1 %1657 }
 0x36d   : > { %4577 = vmatprep.mubr.msk.f32.mxu1 %vm4960_vm2, %v4953_v41  ;;  %v1653_v42 = vpop.permute.xlu0 %1652 }
 0x370   : > { %v1751_v50 = vpop.permute.xlu1 %1750 }
 0x42c   : > { %v4559_v40 = vpop.f32.mrf.mxu1 }
 0x42d   : > { %v1741_v44 = vadd.f32 %v4559_v40, %v1658_v39 }
 0x42e   : > { %v1735_v45 = vpop.f32.mrf.mxu1 }
 0x42f   : > { %v1745_v46 = vmax.f32 %v1741_v44, 0.0  ;;  %v1736_v47 = vadd.f32 %v1735_v45, %v1653_v42 }
 0x431   : > { %v1744_v48 = vmax.f32 %v1736_v47, 0.0  ;;  %4561 = vmatpush3.msk.msra.mxu0 %vm1504_vm3, %v1745_v46 }
 0x432   : > { %4562 = vmatprep.subr.mxu0 %v4953_v41 }
 0x433   : > { %4563 = vmatpush3.msra.mxu0 %v1744_v48 }
 0x434   : > { %4565 = vmatmul.mubr.msk.f32.vlgmr.msra.gmra.mxu0 %vm1753_vm5, %v1746_v49 }
 0x435   : > { %4590 = vmatprep.mubr.msk.f32.mxu0 %vm1500_vm4, %v2033_v32 }
 0x4f4   : > { %v1826_v51 = vpop.f32.mrf.mxu0 }
 0x4f5   : > { %v1827_v52 = vadd.f32 %v1826_v51, %v1751_v50 }
 0x4f6   : > { %v4566_v53 = vpop.f32.mrf.mxu0 }
 0x4f7   : > { %v1830_v54 = vmax.f32 %v1827_v52, 0.0  ;;  %v2034_v53 = vld [vmem:[%s5024_s19 + $0x8] sm:$0xf] }
 0x4f9   : > { %v1831_v55 = vmul.f32 %v5377_v7, %v1830_v54 }
 0x4fb   : > { %1833 = vrot.lane.b32.xlu1 %v1831_v55, %s5921_s5 }
 0x56d   : > { %v1834_v56 = vpop.permute.xlu1 %1833 }
 0x56e   : > { %v1836_v57 = vadd.f32 %v1834_v56, %v5343_v43 }
 0x570   : > { %1837 = vst.msk [vmem:[#allocation2] sm:$0xf] %vm1435_vm0, %v1836_v57 }
 0x577   : > { %v1882_v58 = vld [vmem:[#allocation2] sm:$0xf] }
 0x578   : > { %v1870_v59 = vld [vmem:[#allocation2] sm:$0xf]  ;;  %1884 = vrot.lane.b32.xlu0 %v1882_v58, %s5922_s15 }
 0x579   : > { %1872 = vrot.lane.b32.xlu1 %v1870_v59, %s5930_s3  ;;  %v5421_v60 = vld [vmem:[#allocation2] sm:$0xf] }
 0x57a   : > { %1839 = vst.msk [vmem:[#allocation3] sm:$0xf] %vm1438_vm1, %v5421_v60  ;;  %v1876_v61 = vld [vmem:[#allocation2] sm:$0xf] }
 0x57b   : > { %v1858_v62 = vld [vmem:[#allocation2] sm:$0xf] }
 0x57c   : > { %1878 = vrot.lane.b32.xlu0 %v1876_v61, %s5923_s26  ;;  %v1864_v43 = vld [vmem:[#allocation2] sm:$0xf] }
 0x57d   : > { %1860 = vrot.lane.b32.xlu1 %v1858_v62, %s5924_s27  ;;  %v1846_v63 = vld [vmem:[#allocation2] sm:$0xf] }
 0x57e   : > { %v1852_v0 = vld [vmem:[#allocation2] sm:$0xf] }
 0x57f   : > { %v1840_v1 = vld [vmem:[#allocation2] sm:$0xf] }
 0x580   : > { %1866 = vrot.lane.b32.xlu0 %v1864_v43, %s5926_s13  ;;  %v2138_v43 = vld [vmem:[%s5934_s6] sm:$0xf]  ;;  %s5935_s6 = sld [smem:[#allocation21_spill]] }
 0x581   : > { %1848 = vrot.lane.b32.xlu1 %v1846_v63, %s5927_s17 }
 0x584   : > { %1854 = vrot.lane.b32.xlu0 %v1852_v0, %s5928_s16 }
 0x585   : > { %1842 = vrot.lane.b32.xlu1 %v1840_v1, %s5929_s18 }
 0x588   : > { %1897 = vperm.xlu0 %4846, %v1894_v2  }
 0x5ea   : > { %v1885_v3 = vpop.permute.xlu0 %1884 }
 0x5eb   : > { %v1873_v4 = vpop.permute.xlu1 %1872  ;;  %1887 = vst.msk [vmem:[#allocation3 + $0x20] sm:$0xf] %vm1438_vm1, %v1885_v3 }
 0x5ec   : > { %1875 = vst.msk [vmem:[#allocation3 + $0x18] sm:$0xf] %vm1438_vm1, %v1873_v4 }
 0x5ee   : > { %v1879_v5 = vpop.permute.xlu0 %1878 }
 0x5ef   : > { %v1861_v6 = vpop.permute.xlu1 %1860  ;;  %1881 = vst.msk [vmem:[#allocation3 + $0x1c] sm:$0xf] %vm1438_vm1, %v1879_v5 }
 0x5f0   : > { %1863 = vst.msk [vmem:[#allocation3 + $0x10] sm:$0xf] %vm1438_vm1, %v1861_v6 }
 0x5f2   : > { %v1867_v8 = vpop.permute.xlu0 %1866  ;;  %v1893_v10 = vld [vmem:[#allocation3 + $0x20] sm:$0xf] }
 0x5f3   : > { %v1849_v9 = vpop.permute.xlu1 %1848  ;;  %1869 = vst.msk [vmem:[#allocation3 + $0x14] sm:$0xf] %vm1438_vm1, %v1867_v8  ;;  %4568 = vmatpush3.msk.msra.mxu1 %vm1504_vm3, %v1893_v10 }
 0x5f4   : > { %1851 = vst.msk [vmem:[#allocation3 + $0x8] sm:$0xf] %vm1438_vm1, %v1849_v9  ;;  %4569 = vmatprep.subr.mxu1 %v4953_v41 }
 0x5f6   : > { %v1892_v11 = vld [vmem:[#allocation3 + $0x18] sm:$0xff]  ;;  %v1855_v12 = vpop.permute.xlu0 %1854 }
 0x5f7   : > { %v1843_v13 = vpop.permute.xlu1 %1842  ;;  %1857 = vst.msk [vmem:[#allocation3 + $0xc] sm:$0xf] %vm1438_vm1, %v1855_v12  ;;  %4570 = vmatpush3.msra.mxu1 %v1892_v11 }
 0x5f8   : > { %1845 = vst.msk [vmem:[#allocation3 + $0x4] sm:$0xf] %vm1438_vm1, %v1843_v13  ;;  %4571 = vmatprep.subr.mxu1 %v4953_v41 }
 0x5fa   : > { %v1891_v14 = vld [vmem:[#allocation3 + $0x10] sm:$0xff] }
 0x5fb   : > { %4572 = vmatpush3.msra.mxu1 %v1891_v14 }
 0x5fc   : > { %4573 = vmatprep.subr.mxu1 %v4953_v41 }
 0x5fe   : > { %v1890_v15 = vld [vmem:[#allocation3 + $0x8] sm:$0xff] }
 0x5ff   : > { %4574 = vmatpush3.msra.mxu1 %v1890_v15  ;;  %v1889_v17 = vld [vmem:[#allocation3] sm:$0xff] }
 0x600   : > { %4575 = vmatprep.subr.mxu1 %v4953_v41 }
 0x601   : > { %4576 = vmatpush3.msra.mxu1 %v1889_v17 }
 0x602   : > { %4578 = vmatmul.mubr.msk.f32.vlgmr.msra.gmra.mxu1 %vm1500_vm4, %v1888_v16  ;;  %v2285_v16 = vld [vmem:[%s5935_s6] sm:$0xf]  ;;  %s5936_s6 = sld [smem:[#allocation20_spill]] }
 0x603   : > { %v1898_v18 = vpop.permute.xlu0 %1897 }
 0x6c2   : > { %v1972_v19 = vpop.f32.mrf.mxu1 }
 0x6c3   : > { %v1973_v20 = vadd.f32 %v1972_v19, %v1898_v18 }
 0x6c4   : > { %v4579_v21 = vpop.f32.mrf.mxu1 }
 0x6c5   : > { %v1976_v22 = vmax.f32 %v1973_v20, 0.0 }
 0x6c7   : > { %v1977_v23 = vmul.f32 %v5377_v7, %v1976_v22 }
 0x6c9   : > { %1979 = vrot.lane.b32.xlu1 %v1977_v23, %s5921_s5 }
 0x73b   : > { %v1980_v24 = vpop.permute.xlu1 %1979 }
 0x73c   : > { %1982 = vst.msk [vmem:[#allocation2] sm:$0xf] %vm1435_vm0, %v1980_v24 }
 0x743   : > { %v2027_v25 = vld [vmem:[#allocation2] sm:$0xf] }
 0x744   : > { %v2015_v26 = vld [vmem:[#allocation2] sm:$0xf]  ;;  %2029 = vrot.lane.b32.xlu0 %v2027_v25, %s5922_s15 }
 0x745   : > { %2017 = vrot.lane.b32.xlu1 %v2015_v26, %s5930_s3  ;;  %v1983_v27 = vld [vmem:[#allocation2] sm:$0xf] }
 0x746   : > { %1984 = vst.msk [vmem:[#allocation3] sm:$0xf] %vm1438_vm1, %v1983_v27  ;;  %v2021_v28 = vld [vmem:[#allocation2] sm:$0xf] }
 0x747   : > { %v2003_v29 = vld [vmem:[#allocation2] sm:$0xf] }
 0x748   : > { %2023 = vrot.lane.b32.xlu0 %v2021_v28, %s5923_s26  ;;  %v2009_v30 = vld [vmem:[#allocation2] sm:$0xf] }
 0x749   : > { %2005 = vrot.lane.b32.xlu1 %v2003_v29, %s5924_s27  ;;  %v1991_v31 = vld [vmem:[#allocation2] sm:$0xf] }
 0x74a   : > { %v1997_v33 = vld [vmem:[#allocation2] sm:$0xf] }
 0x74b   : > { %v1985_v34 = vld [vmem:[#allocation2] sm:$0xf] }
 0x74c   : > { %2011 = vrot.lane.b32.xlu0 %v2009_v30, %s5926_s13  ;;  %v2279_v29 = vld [vmem:[%s5936_s6] sm:$0xf]  ;;  %s5937_s6 = sld [smem:[#allocation22_spill]] }
 0x74d   : > { %1993 = vrot.lane.b32.xlu1 %v1991_v31, %s5927_s17 }
 0x750   : > { %1999 = vrot.lane.b32.xlu0 %v1997_v33, %s5928_s16 }
 0x751   : > { %1987 = vrot.lane.b32.xlu1 %v1985_v34, %s5929_s18 }
 0x754   : > { %2049 = vperm.xlu0 %4846, %v2041_v35  }
 0x755   : > { %2044 = vperm.xlu1 %4845, %v2040_v36  }
 0x758   : > { %2142 = vperm.xlu0 %4846, %v2139_v37  }
 0x7b6   : > { %v2030_v38 = vpop.permute.xlu0 %2029 }
 0x7b7   : > { %v2018_v39 = vpop.permute.xlu1 %2017  ;;  %2032 = vst.msk [vmem:[#allocation3 + $0x20] sm:$0xf] %vm1438_vm1, %v2030_v38 }
 0x7b8   : > { %2020 = vst.msk [vmem:[#allocation3 + $0x18] sm:$0xf] %vm1438_vm1, %v2018_v39 }
 0x7ba   : > { %v2024_v40 = vpop.permute.xlu0 %2023 }
 0x7bb   : > { %v2006_v42 = vpop.permute.xlu1 %2005  ;;  %2026 = vst.msk [vmem:[#allocation3 + $0x1c] sm:$0xf] %vm1438_vm1, %v2024_v40 }
 0x7bc   : > { %2008 = vst.msk [vmem:[#allocation3 + $0x10] sm:$0xf] %vm1438_vm1, %v2006_v42 }
 0x7be   : > { %v2012_v44 = vpop.permute.xlu0 %2011  ;;  %v2039_v46 = vld [vmem:[#allocation3 + $0x20] sm:$0xf] }
 0x7bf   : > { %v1994_v45 = vpop.permute.xlu1 %1993  ;;  %2014 = vst.msk [vmem:[#allocation3 + $0x14] sm:$0xf] %vm1438_vm1, %v2012_v44  ;;  %4580 = vmatprep.subr.msk.mxu0 %vm1504_vm3, %v2039_v46 }
 0x7c0   : > { %1996 = vst.msk [vmem:[#allocation3 + $0x8] sm:$0xf] %vm1438_vm1, %v1994_v45  ;;  %4581 = vmatpush3.msk.msra.mxu0 %vm1504_vm3, %v2039_v46 }
 0x7c2   : > { %v2038_v47 = vld [vmem:[#allocation3 + $0x18] sm:$0xff]  ;;  %v2000_v48 = vpop.permute.xlu0 %1999 }
 0x7c3   : > { %v1988_v49 = vpop.permute.xlu1 %1987  ;;  %2002 = vst.msk [vmem:[#allocation3 + $0xc] sm:$0xf] %vm1438_vm1, %v2000_v48  ;;  %4582 = vmatprep.subr.mxu0 %v2038_v47 }
 0x7c4   : > { %1990 = vst.msk [vmem:[#allocation3 + $0x4] sm:$0xf] %vm1438_vm1, %v1988_v49  ;;  %4583 = vmatpush3.msra.mxu0 %v2038_v47  ;;  %v2424_v47 = vld [vmem:[%s5937_s6] sm:$0xff] }
 0x7c5   : > { %4623 = vmatprep.mubr.msk.f32.mxu1 %vm1500_vm4, %v2424_v47 }
 0x7c6   : > { %v2037_v50 = vld [vmem:[#allocation3 + $0x10] sm:$0xff] }
 0x7c7   : > { %4584 = vmatprep.subr.mxu0 %v2037_v50 }
 0x7c8   : > { %4585 = vmatpush3.msra.mxu0 %v2037_v50  ;;  %v2432_v50 = vld [vmem:[%s5938_s8 + $0x8] sm:$0xf] }
 0x7ca   : > { %v2036_v51 = vld [vmem:[#allocation3 + $0x8] sm:$0xff] }
 0x7cb   : > { %4586 = vmatprep.subr.mxu0 %v2036_v51  ;;  %v2035_v52 = vld [vmem:[#allocation3] sm:$0xff] }
 0x7cc   : > { %4587 = vmatpush3.msra.mxu0 %v2036_v51  ;;  %v2431_v51 = vld [vmem:[%s5938_s8] sm:$0xff]  ;;  %s5945_s8 = sld [smem:[#allocation31_spill]] }
 0x7cd   : > { %4588 = vmatprep.subr.mxu0 %v2035_v52 }
 0x7ce   : > { %4589 = vmatpush3.msra.mxu0 %v2035_v52  ;;  %v2530_v52 = vld [vmem:[%s5939_s14] sm:$0xf]  ;;  %s5940_s14 = sld [smem:[#allocation24_spill]] }
 0x7cf   : > { %4591 = vmatmul.mubr.msk.f32.vlgmr.msra.gmra.mxu0 %vm1500_vm4, %v2034_v53  ;;  %4593 = vmatprep.subr.mxu0 %v4953_v41  ;;  %v2050_v54 = vpop.permute.xlu0 %2049 }
 0x7d0   : > { %4597 = vmatprep.mubr.msk.f32.mxu0 %vm4960_vm2, %v4953_v41  ;;  %v2045_v57 = vpop.permute.xlu1 %2044 }
 0x7d3   : > { %v2143_v63 = vpop.permute.xlu0 %2142 }
 0x88f   : > { %v4592_v55 = vpop.f32.mrf.mxu0 }
 0x890   : > { %v2133_v56 = vadd.f32 %v4592_v55, %v2050_v54 }
 0x891   : > { %v2127_v58 = vpop.f32.mrf.mxu0 }
 0x892   : > { %v2137_v59 = vmax.f32 %v2133_v56, 0.0  ;;  %v2128_v61 = vadd.f32 %v2127_v58, %v2045_v57 }
 0x894   : > { %v2136_v62 = vmax.f32 %v2128_v61, 0.0  ;;  %4594 = vmatpush3.msk.msra.mxu0 %vm1504_vm3, %v2137_v59 }
 0x895   : > { %4595 = vmatprep.subr.mxu0 %v4953_v41 }
 0x896   : > { %4596 = vmatpush3.msra.mxu0 %v2136_v62 }
 0x897   : > { %4598 = vmatmul.mubr.msk.f32.vlgmr.msra.gmra.mxu0 %vm1753_vm5, %v2138_v43  ;;  %4600 = vmatprep.subr.mxu0 %v4953_v41 }
 0x898   : > { %4610 = vmatprep.mubr.msk.f32.mxu0 %vm4960_vm2, %v4953_v41 }
 0x957   : > { %v2217_v0 = vpop.f32.mrf.mxu0 }
 0x958   : > { %v2218_v1 = vadd.f32 %v2217_v0, %v2143_v63 }
 0x959   : > { %v4599_v2 = vpop.f32.mrf.mxu0 }
 0x95a   : > { %v2221_v3 = vmax.f32 %v2218_v1, 0.0  ;;  %v2425_v2 = vld [vmem:[%s5937_s6 + $0x8] sm:$0xf]  ;;  %s5944_s6 = sld [smem:[#allocation29_spill]] }
 0x95c   : > { %v2222_v4 = vmul.f32 %v5377_v7, %v2221_v3 }
 0x95e   : > { %2224 = vrot.lane.b32.xlu1 %v2222_v4, %s5921_s5 }
 0x9d0   : > { %v2225_v5 = vpop.permute.xlu1 %2224 }
 0x9d1   : > { %v2227_v6 = vadd.f32 %v2225_v5, %v5421_v60 }
 0x9d3   : > { %2228 = vst.msk [vmem:[#allocation2] sm:$0xf] %vm1435_vm0, %v2227_v6 }
 0x9da   : > { %v2273_v8 = vld [vmem:[#allocation2] sm:$0xf] }
 0x9db   : > { %v2261_v9 = vld [vmem:[#allocation2] sm:$0xf]  ;;  %2275 = vrot.lane.b32.xlu0 %v2273_v8, %s5922_s15 }
 0x9dc   : > { %2263 = vrot.lane.b32.xlu1 %v2261_v9, %s5930_s3  ;;  %v5492_v10 = vld [vmem:[#allocation2] sm:$0xf] }
 0x9dd   : > { %2230 = vst.msk [vmem:[#allocation3] sm:$0xf] %vm1438_vm1, %v5492_v10  ;;  %v2267_v11 = vld [vmem:[#allocation2] sm:$0xf] }
 0x9de   : > { %v2249_v12 = vld [vmem:[#allocation2] sm:$0xf] }
 0x9df   : > { %2269 = vrot.lane.b32.xlu0 %v2267_v11, %s5923_s26  ;;  %v2255_v60 = vld [vmem:[#allocation2] sm:$0xf] }
 0x9e0   : > { %2251 = vrot.lane.b32.xlu1 %v2249_v12, %s5924_s27  ;;  %v2237_v13 = vld [vmem:[#allocation2] sm:$0xf] }
 0x9e1   : > { %v2243_v14 = vld [vmem:[#allocation2] sm:$0xf] }
 0x9e2   : > { %v2231_v15 = vld [vmem:[#allocation2] sm:$0xf] }
 0x9e3   : > { %2257 = vrot.lane.b32.xlu0 %v2255_v60, %s5926_s13  ;;  %v2529_v60 = vld [vmem:[%s5940_s14] sm:$0xf]  ;;  %s5941_s14 = sld [smem:[#allocation27_spill]] }
 0x9e4   : > { %2239 = vrot.lane.b32.xlu1 %v2237_v13, %s5927_s17 }
 0x9e7   : > { %2245 = vrot.lane.b32.xlu0 %v2243_v14, %s5928_s16 }
 0x9e8   : > { %2233 = vrot.lane.b32.xlu1 %v2231_v15, %s5929_s18 }
 0x9eb   : > { %2288 = vperm.xlu0 %4846, %v2285_v16  }
 0xa4d   : > { %v2276_v17 = vpop.permute.xlu0 %2275 }
 0xa4e   : > { %v2264_v18 = vpop.permute.xlu1 %2263  ;;  %2278 = vst.msk [vmem:[#allocation3 + $0x20] sm:$0xf] %vm1438_vm1, %v2276_v17 }
 0xa4f   : > { %2266 = vst.msk [vmem:[#allocation3 + $0x18] sm:$0xf] %vm1438_vm1, %v2264_v18 }
 0xa51   : > { %v2270_v19 = vpop.permute.xlu0 %2269 }
 0xa52   : > { %v2252_v20 = vpop.permute.xlu1 %2251  ;;  %2272 = vst.msk [vmem:[#allocation3 + $0x1c] sm:$0xf] %vm1438_vm1, %v2270_v19 }
 0xa53   : > { %2254 = vst.msk [vmem:[#allocation3 + $0x10] sm:$0xf] %vm1438_vm1, %v2252_v20 }
 0xa55   : > { %v2258_v21 = vpop.permute.xlu0 %2257  ;;  %v2284_v23 = vld [vmem:[#allocation3 + $0x20] sm:$0xf] }
 0xa56   : > { %v2240_v22 = vpop.permute.xlu1 %2239  ;;  %2260 = vst.msk [vmem:[#allocation3 + $0x14] sm:$0xf] %vm1438_vm1, %v2258_v21  ;;  %4601 = vmatpush3.msk.msra.mxu0 %vm1504_vm3, %v2284_v23 }
 0xa57   : > { %2242 = vst.msk [vmem:[#allocation3 + $0x8] sm:$0xf] %vm1438_vm1, %v2240_v22  ;;  %4602 = vmatprep.subr.mxu0 %v4953_v41 }
 0xa59   : > { %v2246_v24 = vpop.permute.xlu0 %2245  ;;  %v2283_v26 = vld [vmem:[#allocation3 + $0x18] sm:$0xff] }
 0xa5a   : > { %v2234_v25 = vpop.permute.xlu1 %2233  ;;  %2248 = vst.msk [vmem:[#allocation3 + $0xc] sm:$0xf] %vm1438_vm1, %v2246_v24  ;;  %4603 = vmatpush3.msra.mxu0 %v2283_v26 }
 0xa5b   : > { %2236 = vst.msk [vmem:[#allocation3 + $0x4] sm:$0xf] %vm1438_vm1, %v2234_v25  ;;  %4604 = vmatprep.subr.mxu0 %v4953_v41 }
 0xa5d   : > { %v2282_v27 = vld [vmem:[#allocation3 + $0x10] sm:$0xff] }
 0xa5e   : > { %4605 = vmatpush3.msra.mxu0 %v2282_v27 }
 0xa5f   : > { %4606 = vmatprep.subr.mxu0 %v4953_v41 }
 0xa61   : > { %v2281_v28 = vld [vmem:[#allocation3 + $0x8] sm:$0xff] }
 0xa62   : > { %4607 = vmatpush3.msra.mxu0 %v2281_v28  ;;  %v2280_v30 = vld [vmem:[#allocation3] sm:$0xff] }
 0xa63   : > { %4608 = vmatprep.subr.mxu0 %v4953_v41 }
 0xa64   : > { %4609 = vmatpush3.msra.mxu0 %v2280_v30 }
 0xa65   : > { %4611 = vmatmul.mubr.msk.f32.vlgmr.msra.gmra.mxu0 %vm1500_vm4, %v2279_v29  ;;  %4626 = vmatprep.subr.mxu0 %v4953_v41  ;;  %v2676_v29 = vld [vmem:[%s5941_s14] sm:$0xf]  ;;  %s5942_s14 = sld [smem:[#allocation26_spill]] }
 0xa66   : > { %4630 = vmatprep.mubr.msk.f32.mxu0 %vm4960_vm2, %v4953_v41  ;;  %v2289_v31 = vpop.permute.xlu0 %2288 }
 0xb25   : > { %v2363_v32 = vpop.f32.mrf.mxu0 }
 0xb26   : > { %v2364_v33 = vadd.f32 %v2363_v32, %v2289_v31 }
 0xb27   : > { %v4612_v34 = vpop.f32.mrf.mxu0 }
 0xb28   : > { %v2367_v35 = vmax.f32 %v2364_v33, 0.0 }
 0xb2a   : > { %v2368_v36 = vmul.f32 %v5377_v7, %v2367_v35 }
 0xb2c   : > { %2370 = vrot.lane.b32.xlu1 %v2368_v36, %s5921_s5 }
 0xb9e   : > { %v2371_v37 = vpop.permute.xlu1 %2370 }
 0xb9f   : > { %2373 = vst.msk [vmem:[#allocation2] sm:$0xf] %vm1435_vm0, %v2371_v37 }
 0xba6   : > { %v2418_v38 = vld [vmem:[#allocation2] sm:$0xf] }
 0xba7   : > { %v2406_v39 = vld [vmem:[#allocation2] sm:$0xf]  ;;  %2420 = vrot.lane.b32.xlu0 %v2418_v38, %s5922_s15 }
 0xba8   : > { %2408 = vrot.lane.b32.xlu1 %v2406_v39, %s5930_s3  ;;  %v2374_v40 = vld [vmem:[#allocation2] sm:$0xf] }
 0xba9   : > { %2375 = vst.msk [vmem:[#allocation3] sm:$0xf] %vm1438_vm1, %v2374_v40  ;;  %v2412_v42 = vld [vmem:[#allocation2] sm:$0xf] }
 0xbaa   : > { %v2394_v44 = vld [vmem:[#allocation2] sm:$0xf] }
 0xbab   : > { %2414 = vrot.lane.b32.xlu0 %v2412_v42, %s5923_s26  ;;  %v2400_v45 = vld [vmem:[#allocation2] sm:$0xf] }
 0xbac   : > { %2396 = vrot.lane.b32.xlu1 %v2394_v44, %s5924_s27  ;;  %v2382_v46 = vld [vmem:[#allocation2] sm:$0xf] }
 0xbad   : > { %v2388_v48 = vld [vmem:[#allocation2] sm:$0xf] }
 0xbae   : > { %v2376_v49 = vld [vmem:[#allocation2] sm:$0xf] }
 0xbaf   : > { %2402 = vrot.lane.b32.xlu0 %v2400_v45, %s5926_s13  ;;  %v2670_v44 = vld [vmem:[%s5942_s14] sm:$0xf]  ;;  %s5943_s14 = sld [smem:[#allocation28_spill]] }
 0xbb0   : > { %2384 = vrot.lane.b32.xlu1 %v2382_v46, %s5927_s17 }
 0xbb3   : > { %2390 = vrot.lane.b32.xlu0 %v2388_v48, %s5928_s16 }
 0xbb4   : > { %2378 = vrot.lane.b32.xlu1 %v2376_v49, %s5929_s18 }
 0xbb7   : > { %2440 = vperm.xlu0 %4846, %v2432_v50  }
 0xbb8   : > { %2435 = vperm.xlu1 %4845, %v2431_v51  }
 0xbbb   : > { %2533 = vperm.xlu0 %4846, %v2530_v52  }
 0xc19   : > { %v2421_v53 = vpop.permute.xlu0 %2420 }
 0xc1a   : > { %v2409_v54 = vpop.permute.xlu1 %2408  ;;  %2423 = vst.msk [vmem:[#allocation3 + $0x20] sm:$0xf] %vm1438_vm1, %v2421_v53 }
 0xc1b   : > { %2411 = vst.msk [vmem:[#allocation3 + $0x18] sm:$0xf] %vm1438_vm1, %v2409_v54 }
 0xc1d   : > { %v2415_v55 = vpop.permute.xlu0 %2414 }
 0xc1e   : > { %v2397_v56 = vpop.permute.xlu1 %2396  ;;  %2417 = vst.msk [vmem:[#allocation3 + $0x1c] sm:$0xf] %vm1438_vm1, %v2415_v55 }
 0xc1f   : > { %2399 = vst.msk [vmem:[#allocation3 + $0x10] sm:$0xf] %vm1438_vm1, %v2397_v56 }
 0xc21   : > { %v2403_v57 = vpop.permute.xlu0 %2402  ;;  %v2430_v59 = vld [vmem:[#allocation3 + $0x20] sm:$0xf] }
 0xc22   : > { %v2385_v58 = vpop.permute.xlu1 %2384  ;;  %2405 = vst.msk [vmem:[#allocation3 + $0x14] sm:$0xf] %vm1438_vm1, %v2403_v57  ;;  %4613 = vmatprep.subr.msk.mxu1 %vm1504_vm3, %v2430_v59 }
 0xc23   : > { %2387 = vst.msk [vmem:[#allocation3 + $0x8] sm:$0xf] %vm1438_vm1, %v2385_v58  ;;  %4614 = vmatpush3.msk.msra.mxu1 %vm1504_vm3, %v2430_v59  ;;  %v2815_v59 = vld [vmem:[%s5943_s14] sm:$0xff] }
 0xc25   : > { %v2391_v61 = vpop.permute.xlu0 %2390  ;;  %v2429_v43 = vld [vmem:[#allocation3 + $0x18] sm:$0xff] }
 0xc26   : > { %v2379_v62 = vpop.permute.xlu1 %2378  ;;  %2393 = vst.msk [vmem:[#allocation3 + $0xc] sm:$0xf] %vm1438_vm1, %v2391_v61  ;;  %4615 = vmatprep.subr.mxu1 %v2429_v43 }
 0xc27   : > { %2381 = vst.msk [vmem:[#allocation3 + $0x4] sm:$0xf] %vm1438_vm1, %v2379_v62  ;;  %4616 = vmatpush3.msra.mxu1 %v2429_v43  ;;  %v2823_v43 = vld [vmem:[%s5944_s6 + $0x8] sm:$0xf] }
 0xc29   : > { %v2428_v63 = vld [vmem:[#allocation3 + $0x10] sm:$0xff] }
 0xc2a   : > { %4617 = vmatprep.subr.mxu1 %v2428_v63 }
 0xc2b   : > { %4618 = vmatpush3.msra.mxu1 %v2428_v63  ;;  %v2822_v63 = vld [vmem:[%s5944_s6] sm:$0xff]  ;;  %s5950_s6 = sld [smem:[#allocation35_spill]] }
 0xc2d   : > { %v2427_v0 = vld [vmem:[#allocation3 + $0x8] sm:$0xff] }
 0xc2e   : > { %4619 = vmatprep.subr.mxu1 %v2427_v0  ;;  %v2426_v1 = vld [vmem:[#allocation3] sm:$0xff] }
 0xc2f   : > { %4620 = vmatpush3.msra.mxu1 %v2427_v0  ;;  %v2921_v0 = vld [vmem:[%s5945_s8] sm:$0xf]  ;;  %s5946_s8 = sld [smem:[#allocation30_spill]] }
 0xc30   : > { %4621 = vmatprep.subr.mxu1 %v2426_v1 }
 0xc31   : > { %4622 = vmatpush3.msra.mxu1 %v2426_v1 }
 0xc32   : > { %4624 = vmatmul.mubr.msk.f32.vlgmr.msra.gmra.mxu1 %vm1500_vm4, %v2425_v2  ;;  %4633 = vmatprep.subr.mxu1 %v4953_v41  ;;  %v2441_v3 = vpop.permute.xlu0 %2440 }
 0xc33   : > { %4643 = vmatprep.mubr.msk.f32.mxu1 %vm4960_vm2, %v4953_v41  ;;  %v2436_v6 = vpop.permute.xlu1 %2435 }
 0xc36   : > { %v2534_v13 = vpop.permute.xlu0 %2533 }
 0xcf2   : > { %v4625_v4 = vpop.f32.mrf.mxu1 }
 0xcf3   : > { %v2524_v5 = vadd.f32 %v4625_v4, %v2441_v3 }
 0xcf4   : > { %v2518_v8 = vpop.f32.mrf.mxu1 }
 0xcf5   : > { %v2528_v9 = vmax.f32 %v2524_v5, 0.0  ;;  %v2519_v11 = vadd.f32 %v2518_v8, %v2436_v6 }
 0xcf7   : > { %v2527_v12 = vmax.f32 %v2519_v11, 0.0  ;;  %4627 = vmatpush3.msk.msra.mxu0 %vm1504_vm3, %v2528_v9 }
 0xcf8   : > { %4628 = vmatprep.subr.mxu0 %v4953_v41 }
 0xcf9   : > { %4629 = vmatpush3.msra.mxu0 %v2527_v12 }
 0xcfa   : > { %4631 = vmatmul.mubr.msk.f32.vlgmr.msra.gmra.mxu0 %vm1753_vm5, %v2529_v60 }
 0xcfb   : > { %4656 = vmatprep.mubr.msk.f32.mxu0 %vm1500_vm4, %v2815_v59 }
 0xdba   : > { %v2608_v14 = vpop.f32.mrf.mxu0 }
 0xdbb   : > { %v2609_v15 = vadd.f32 %v2608_v14, %v2534_v13 }
 0xdbc   : > { %v4632_v16 = vpop.f32.mrf.mxu0 }
 0xdbd   : > { %v2612_v17 = vmax.f32 %v2609_v15, 0.0  ;;  %v2816_v15 = vld [vmem:[%s5943_s14 + $0x8] sm:$0xf] }
 0xdbf   : > { %v2613_v18 = vmul.f32 %v5377_v7, %v2612_v17 }
 0xdc1   : > { %2615 = vrot.lane.b32.xlu1 %v2613_v18, %s5921_s5 }
 0xe33   : > { %v2616_v19 = vpop.permute.xlu1 %2615 }
 0xe34   : > { %v2618_v20 = vadd.f32 %v2616_v19, %v5492_v10 }
 0xe36   : > { %2619 = vst.msk [vmem:[#allocation2] sm:$0xf] %vm1435_vm0, %v2618_v20 }
 0xe3d   : > { %v2664_v21 = vld [vmem:[#allocation2] sm:$0xf] }
 0xe3e   : > { %v2652_v22 = vld [vmem:[#allocation2] sm:$0xf]  ;;  %2666 = vrot.lane.b32.xlu0 %v2664_v21, %s5922_s15 }
 0xe3f   : > { %2654 = vrot.lane.b32.xlu1 %v2652_v22, %s5930_s3  ;;  %v5563_v23 = vld [vmem:[#allocation2] sm:$0xf] }
 0xe40   : > { %2621 = vst.msk [vmem:[#allocation3] sm:$0xf] %vm1438_vm1, %v5563_v23  ;;  %v2658_v24 = vld [vmem:[#allocation2] sm:$0xf] }
 0xe41   : > { %v2640_v25 = vld [vmem:[#allocation2] sm:$0xf] }
 0xe42   : > { %2660 = vrot.lane.b32.xlu0 %v2658_v24, %s5923_s26  ;;  %v2646_v10 = vld [vmem:[#allocation2] sm:$0xf] }
 0xe43   : > { %2642 = vrot.lane.b32.xlu1 %v2640_v25, %s5924_s27  ;;  %v2628_v26 = vld [vmem:[#allocation2] sm:$0xf] }
 0xe44   : > { %v2634_v27 = vld [vmem:[#allocation2] sm:$0xf] }
 0xe45   : > { %v2622_v28 = vld [vmem:[#allocation2] sm:$0xf] }
 0xe46   : > { %2648 = vrot.lane.b32.xlu0 %v2646_v10, %s5926_s13  ;;  %v2920_v25 = vld [vmem:[%s5946_s8] sm:$0xf]  ;;  %s5947_s8 = sld [smem:[#allocation33_spill]] }
 0xe47   : > { %2630 = vrot.lane.b32.xlu1 %v2628_v26, %s5927_s17 }
 0xe4a   : > { %2636 = vrot.lane.b32.xlu0 %v2634_v27, %s5928_s16 }
 0xe4b   : > { %2624 = vrot.lane.b32.xlu1 %v2622_v28, %s5929_s18 }
 0xe4e   : > { %2679 = vperm.xlu0 %4846, %v2676_v29  }
 0xeb0   : > { %v2667_v30 = vpop.permute.xlu0 %2666 }
 0xeb1   : > { %v2655_v31 = vpop.permute.xlu1 %2654  ;;  %2669 = vst.msk [vmem:[#allocation3 + $0x20] sm:$0xf] %vm1438_vm1, %v2667_v30  ;;  %v5629_v30 = vld [vmem:[%s5913_s9] ss:$0 sm:$0xff]  ;;  %s5951_s9 = sld [smem:[#allocation37_spill]] }
 0xeb2   : > { %2657 = vst.msk [vmem:[#allocation3 + $0x18] sm:$0xf] %vm1438_vm1, %v2655_v31 }
 0xeb4   : > { %v2661_v32 = vpop.permute.xlu0 %2660 }
 0xeb5   : > { %v2643_v33 = vpop.permute.xlu1 %2642  ;;  %2663 = vst.msk [vmem:[#allocation3 + $0x1c] sm:$0xf] %vm1438_vm1, %v2661_v32 }
 0xeb6   : > { %2645 = vst.msk [vmem:[#allocation3 + $0x10] sm:$0xf] %vm1438_vm1, %v2643_v33 }
 0xeb8   : > { %v2649_v34 = vpop.permute.xlu0 %2648  ;;  %v2675_v36 = vld [vmem:[#allocation3 + $0x20] sm:$0xf] }
 0xeb9   : > { %v2631_v35 = vpop.permute.xlu1 %2630  ;;  %2651 = vst.msk [vmem:[#allocation3 + $0x14] sm:$0xf] %vm1438_vm1, %v2649_v34  ;;  %4634 = vmatpush3.msk.msra.mxu1 %vm1504_vm3, %v2675_v36 }
 0xeba   : > { %2633 = vst.msk [vmem:[#allocation3 + $0x8] sm:$0xf] %vm1438_vm1, %v2631_v35  ;;  %4635 = vmatprep.subr.mxu1 %v4953_v41 }
 0xebc   : > { %v2637_v37 = vpop.permute.xlu0 %2636  ;;  %v2674_v39 = vld [vmem:[#allocation3 + $0x18] sm:$0xff] }
 0xebd   : > { %v2625_v38 = vpop.permute.xlu1 %2624  ;;  %2639 = vst.msk [vmem:[#allocation3 + $0xc] sm:$0xf] %vm1438_vm1, %v2637_v37  ;;  %4636 = vmatpush3.msra.mxu1 %v2674_v39 }
 0xebe   : > { %2627 = vst.msk [vmem:[#allocation3 + $0x4] sm:$0xf] %vm1438_vm1, %v2625_v38  ;;  %4637 = vmatprep.subr.mxu1 %v4953_v41 }
 0xec0   : > { %v2673_v40 = vld [vmem:[#allocation3 + $0x10] sm:$0xff] }
 0xec1   : > { %4638 = vmatpush3.msra.mxu1 %v2673_v40 }
 0xec2   : > { %4639 = vmatprep.subr.mxu1 %v4953_v41 }
 0xec4   : > { %v2672_v42 = vld [vmem:[#allocation3 + $0x8] sm:$0xff] }
 0xec5   : > { %4640 = vmatpush3.msra.mxu1 %v2672_v42  ;;  %v2671_v45 = vld [vmem:[#allocation3] sm:$0xff] }
 0xec6   : > { %4641 = vmatprep.subr.mxu1 %v4953_v41 }
 0xec7   : > { %4642 = vmatpush3.msra.mxu1 %v2671_v45 }
 0xec8   : > { %4644 = vmatmul.mubr.msk.f32.vlgmr.msra.gmra.mxu1 %vm1500_vm4, %v2670_v44  ;;  %4659 = vmatprep.subr.mxu1 %v4953_v41  ;;  %v3067_v44 = vld [vmem:[%s5947_s8] sm:$0xf]  ;;  %s5948_s8 = sld [smem:[#allocation32_spill]] }
 0xec9   : > { %4663 = vmatprep.mubr.msk.f32.mxu1 %vm4960_vm2, %v4953_v41  ;;  %v2680_v46 = vpop.permute.xlu0 %2679 }
 0xf88   : > { %v2754_v47 = vpop.f32.mrf.mxu1 }
 0xf89   : > { %v2755_v48 = vadd.f32 %v2754_v47, %v2680_v46 }
 0xf8a   : > { %v4645_v49 = vpop.f32.mrf.mxu1 }
 0xf8b   : > { %v2758_v50 = vmax.f32 %v2755_v48, 0.0 }
 0xf8d   : > { %v2759_v51 = vmul.f32 %v5377_v7, %v2758_v50 }
 0xf8f   : > { %2761 = vrot.lane.b32.xlu1 %v2759_v51, %s5921_s5 }
0x1001   : > { %v2762_v52 = vpop.permute.xlu1 %2761 }
0x1002   : > { %2764 = vst.msk [vmem:[#allocation2] sm:$0xf] %vm1435_vm0, %v2762_v52 }
0x1009   : > { %v2809_v53 = vld [vmem:[#allocation2] sm:$0xf] }
0x100a   : > { %v2797_v54 = vld [vmem:[#allocation2] sm:$0xf]  ;;  %2811 = vrot.lane.b32.xlu0 %v2809_v53, %s5922_s15 }
0x100b   : > { %2799 = vrot.lane.b32.xlu1 %v2797_v54, %s5930_s3  ;;  %v2765_v55 = vld [vmem:[#allocation2] sm:$0xf] }
0x100c   : > { %2766 = vst.msk [vmem:[#allocation3] sm:$0xf] %vm1438_vm1, %v2765_v55  ;;  %v2803_v56 = vld [vmem:[#allocation2] sm:$0xf] }
0x100d   : > { %v2785_v57 = vld [vmem:[#allocation2] sm:$0xf] }
0x100e   : > { %2805 = vrot.lane.b32.xlu0 %v2803_v56, %s5923_s26  ;;  %v2791_v7 = vld [vmem:[#allocation2] sm:$0xf] }
0x100f   : > { %2787 = vrot.lane.b32.xlu1 %v2785_v57, %s5924_s27  ;;  %v2773_v58 = vld [vmem:[#allocation2] sm:$0xf] }
0x1010   : > { %v2779_v61 = vld [vmem:[#allocation2] sm:$0xf] }
0x1011   : > { %v2767_v62 = vld [vmem:[#allocation2] sm:$0xf] }
0x1012   : > { %2793 = vrot.lane.b32.xlu0 %v2791_v7, %s5926_s13  ;;  %v3061_v57 = vld [vmem:[%s5948_s8] sm:$0xf]  ;;  %s5949_s8 = sld [smem:[#allocation34_spill]] }
0x1013   : > { %2775 = vrot.lane.b32.xlu1 %v2773_v58, %s5927_s17 }
0x1016   : > { %2781 = vrot.lane.b32.xlu0 %v2779_v61, %s5928_s16 }
0x1017   : > { %2769 = vrot.lane.b32.xlu1 %v2767_v62, %s5929_s18 }
0x101a   : > { %2831 = vperm.xlu0 %4846, %v2823_v43  }
0x101b   : > { %2826 = vperm.xlu1 %4845, %v2822_v63  }
0x101e   : > { %2924 = vperm.xlu0 %4846, %v2921_v0  }
0x107c   : > { %v2812_v1 = vpop.permute.xlu0 %2811 }
0x107d   : > { %v2800_v2 = vpop.permute.xlu1 %2799  ;;  %2814 = vst.msk [vmem:[#allocation3 + $0x20] sm:$0xf] %vm1438_vm1, %v2812_v1 }
0x107e   : > { %2802 = vst.msk [vmem:[#allocation3 + $0x18] sm:$0xf] %vm1438_vm1, %v2800_v2 }
0x1080   : > { %v2806_v3 = vpop.permute.xlu0 %2805 }
0x1081   : > { %v2788_v4 = vpop.permute.xlu1 %2787  ;;  %2808 = vst.msk [vmem:[#allocation3 + $0x1c] sm:$0xf] %vm1438_vm1, %v2806_v3 }
0x1082   : > { %2790 = vst.msk [vmem:[#allocation3 + $0x10] sm:$0xf] %vm1438_vm1, %v2788_v4 }
0x1084   : > { %v2794_v5 = vpop.permute.xlu0 %2793  ;;  %v2821_v8 = vld [vmem:[#allocation3 + $0x20] sm:$0xf] }
0x1085   : > { %v2776_v6 = vpop.permute.xlu1 %2775  ;;  %2796 = vst.msk [vmem:[#allocation3 + $0x14] sm:$0xf] %vm1438_vm1, %v2794_v5  ;;  %4646 = vmatprep.subr.msk.mxu0 %vm1504_vm3, %v2821_v8 }
0x1086   : > { %2778 = vst.msk [vmem:[#allocation3 + $0x8] sm:$0xf] %vm1438_vm1, %v2776_v6  ;;  %4647 = vmatpush3.msk.msra.mxu0 %vm1504_vm3, %v2821_v8 }
0x1088   : > { %v2782_v9 = vpop.permute.xlu0 %2781  ;;  %v2820_v12 = vld [vmem:[#allocation3 + $0x18] sm:$0xff] }
0x1089   : > { %v2770_v11 = vpop.permute.xlu1 %2769  ;;  %2784 = vst.msk [vmem:[#allocation3 + $0xc] sm:$0xf] %vm1438_vm1, %v2782_v9  ;;  %4648 = vmatprep.subr.mxu0 %v2820_v12  ;;  %v3206_v9 = vld [vmem:[%s5949_s8] sm:$0xff] }
0x108a   : > { %2772 = vst.msk [vmem:[#allocation3 + $0x4] sm:$0xf] %vm1438_vm1, %v2770_v11  ;;  %4649 = vmatpush3.msra.mxu0 %v2820_v12 }
0x108c   : > { %v2819_v60 = vld [vmem:[#allocation3 + $0x10] sm:$0xff] }
0x108d   : > { %4650 = vmatprep.subr.mxu0 %v2819_v60 }
0x108e   : > { %4651 = vmatpush3.msra.mxu0 %v2819_v60  ;;  %v3214_v60 = vld [vmem:[%s5950_s6 + $0x8] sm:$0xf] }
0x1090   : > { %v2818_v13 = vld [vmem:[#allocation3 + $0x8] sm:$0xff] }
0x1091   : > { %4652 = vmatprep.subr.mxu0 %v2818_v13  ;;  %v2817_v14 = vld [vmem:[#allocation3] sm:$0xff] }
0x1092   : > { %4653 = vmatpush3.msra.mxu0 %v2818_v13  ;;  %v3213_v13 = vld [vmem:[%s5950_s6] sm:$0xff] }
0x1093   : > { %4654 = vmatprep.subr.mxu0 %v2817_v14 }
0x1094   : > { %4655 = vmatpush3.msra.mxu0 %v2817_v14  ;;  %v3312_v14 = vld [vmem:[%s5951_s9] sm:$0xf]  ;;  %s5952_s9 = sld [smem:[#allocation36_spill]] }
0x1095   : > { %4657 = vmatmul.mubr.msk.f32.vlgmr.msra.gmra.mxu0 %vm1500_vm4, %v2816_v15  ;;  %4666 = vmatprep.subr.mxu0 %v4953_v41  ;;  %v2832_v16 = vpop.permute.xlu0 %2831 }
0x1096   : > { %4676 = vmatprep.mubr.msk.f32.mxu0 %vm4960_vm2, %v4953_v41  ;;  %v2827_v19 = vpop.permute.xlu1 %2826 }
0x1099   : > { %v2925_v10 = vpop.permute.xlu0 %2924 }
0x1155   : > { %v4658_v17 = vpop.f32.mrf.mxu0 }
0x1156   : > { %v2915_v18 = vadd.f32 %v4658_v17, %v2832_v16 }
0x1157   : > { %v2909_v20 = vpop.f32.mrf.mxu0 }
0x1158   : > { %v2919_v21 = vmax.f32 %v2915_v18, 0.0  ;;  %v2910_v22 = vadd.f32 %v2909_v20, %v2827_v19 }
0x115a   : > { %v2918_v24 = vmax.f32 %v2910_v22, 0.0  ;;  %4660 = vmatpush3.msk.msra.mxu1 %vm1504_vm3, %v2919_v21 }
0x115b   : > { %4661 = vmatprep.subr.mxu1 %v4953_v41 }
0x115c   : > { %4662 = vmatpush3.msra.mxu1 %v2918_v24 }
0x115d   : > { %4664 = vmatmul.mubr.msk.f32.vlgmr.msra.gmra.mxu1 %vm1753_vm5, %v2920_v25 }
0x115e   : > { %4689 = vmatprep.mubr.msk.f32.mxu1 %vm1500_vm4, %v3206_v9 }
0x121d   : > { %v2999_v26 = vpop.f32.mrf.mxu1 }
0x121e   : > { %v3000_v27 = vadd.f32 %v2999_v26, %v2925_v10 }
0x121f   : > { %v4665_v28 = vpop.f32.mrf.mxu1 }
0x1220   : > { %v3003_v29 = vmax.f32 %v3000_v27, 0.0  ;;  %v3207_v28 = vld [vmem:[%s5949_s8 + $0x8] sm:$0xf] }
0x1222   : > { %v3004_v31 = vmul.f32 %v5629_v30, %v3003_v29 }
0x1224   : > { %3006 = vrot.lane.b32.xlu1 %v3004_v31, %s5921_s5 }
0x1296   : > { %v3007_v32 = vpop.permute.xlu1 %3006 }
0x1297   : > { %v3009_v33 = vadd.f32 %v3007_v32, %v5563_v23 }
0x1299   : > { %3010 = vst.msk [vmem:[#allocation2] sm:$0xf] %vm1435_vm0, %v3009_v33 }
0x12a0   : > { %v3055_v34 = vld [vmem:[#allocation2] sm:$0xf] }
0x12a1   : > { %v3043_v35 = vld [vmem:[#allocation2] sm:$0xf]  ;;  %3057 = vrot.lane.b32.xlu0 %v3055_v34, %s5922_s15 }
0x12a2   : > { %3045 = vrot.lane.b32.xlu1 %v3043_v35, %s5930_s3  ;;  %v5637_v36 = vld [vmem:[#allocation2] sm:$0xf] }
0x12a3   : > { %3012 = vst.msk [vmem:[#allocation3] sm:$0xf] %vm1438_vm1, %v5637_v36  ;;  %v3049_v37 = vld [vmem:[#allocation2] sm:$0xf] }
0x12a4   : > { %v3031_v38 = vld [vmem:[#allocation2] sm:$0xf] }
0x12a5   : > { %3051 = vrot.lane.b32.xlu0 %v3049_v37, %s5923_s26  ;;  %v3037_v23 = vld [vmem:[#allocation2] sm:$0xf] }
0x12a6   : > { %3033 = vrot.lane.b32.xlu1 %v3031_v38, %s5924_s27  ;;  %v3019_v39 = vld [vmem:[#allocation2] sm:$0xf] }
0x12a7   : > { %v3025_v40 = vld [vmem:[#allocation2] sm:$0xf] }
0x12a8   : > { %v3013_v42 = vld [vmem:[#allocation2] sm:$0xf] }
0x12a9   : > { %3039 = vrot.lane.b32.xlu0 %v3037_v23, %s5926_s13  ;;  %v3311_v23 = vld [vmem:[%s5952_s9] sm:$0xf] }
0x12aa   : > { %3021 = vrot.lane.b32.xlu1 %v3019_v39, %s5927_s17 }
0x12ad   : > { %3027 = vrot.lane.b32.xlu0 %v3025_v40, %s5928_s16 }
0x12ae   : > { %3015 = vrot.lane.b32.xlu1 %v3013_v42, %s5929_s18 }
0x12b1   : > { %3070 = vperm.xlu0 %4846, %v3067_v44  }
0x1313   : > { %v3058_v45 = vpop.permute.xlu0 %3057 }
0x1314   : > { %v3046_v46 = vpop.permute.xlu1 %3045  ;;  %3060 = vst.msk [vmem:[#allocation3 + $0x20] sm:$0xf] %vm1438_vm1, %v3058_v45 }
0x1315   : > { %3048 = vst.msk [vmem:[#allocation3 + $0x18] sm:$0xf] %vm1438_vm1, %v3046_v46 }
0x1317   : > { %v3052_v47 = vpop.permute.xlu0 %3051 }
0x1318   : > { %v3034_v48 = vpop.permute.xlu1 %3033  ;;  %3054 = vst.msk [vmem:[#allocation3 + $0x1c] sm:$0xf] %vm1438_vm1, %v3052_v47 }
0x1319   : > { %3036 = vst.msk [vmem:[#allocation3 + $0x10] sm:$0xf] %vm1438_vm1, %v3034_v48 }
0x131b   : > { %v3040_v49 = vpop.permute.xlu0 %3039  ;;  %v3066_v51 = vld [vmem:[#allocation3 + $0x20] sm:$0xf] }
0x131c   : > { %v3022_v50 = vpop.permute.xlu1 %3021  ;;  %3042 = vst.msk [vmem:[#allocation3 + $0x14] sm:$0xf] %vm1438_vm1, %v3040_v49  ;;  %4667 = vmatpush3.msk.msra.mxu0 %vm1504_vm3, %v3066_v51 }
0x131d   : > { %3024 = vst.msk [vmem:[#allocation3 + $0x8] sm:$0xf] %vm1438_vm1, %v3022_v50  ;;  %4668 = vmatprep.subr.mxu0 %v4953_v41 }
0x131f   : > { %v3028_v52 = vpop.permute.xlu0 %3027  ;;  %v3065_v54 = vld [vmem:[#allocation3 + $0x18] sm:$0xff] }
0x1320   : > { %v3016_v53 = vpop.permute.xlu1 %3015  ;;  %3030 = vst.msk [vmem:[#allocation3 + $0xc] sm:$0xf] %vm1438_vm1, %v3028_v52  ;;  %4669 = vmatpush3.msra.mxu0 %v3065_v54 }
0x1321   : > { %3018 = vst.msk [vmem:[#allocation3 + $0x4] sm:$0xf] %vm1438_vm1, %v3016_v53  ;;  %4670 = vmatprep.subr.mxu0 %v4953_v41 }
0x1323   : > { %v3064_v55 = vld [vmem:[#allocation3 + $0x10] sm:$0xff] }
0x1324   : > { %4671 = vmatpush3.msra.mxu0 %v3064_v55 }
0x1325   : > { %4672 = vmatprep.subr.mxu0 %v4953_v41 }
0x1327   : > { %v3063_v56 = vld [vmem:[#allocation3 + $0x8] sm:$0xff] }
0x1328   : > { %4673 = vmatpush3.msra.mxu0 %v3063_v56  ;;  %v3062_v7 = vld [vmem:[#allocation3] sm:$0xff] }
0x1329   : > { %4674 = vmatprep.subr.mxu0 %v4953_v41 }
0x132a   : > { %4675 = vmatpush3.msra.mxu0 %v3062_v7 }
0x132b   : > { %4677 = vmatmul.mubr.msk.f32.vlgmr.msra.gmra.mxu0 %vm1500_vm4, %v3061_v57  ;;  %4692 = vmatprep.subr.mxu0 %v4953_v41 }
0x132c   : > { %4696 = vmatprep.mubr.msk.f32.mxu0 %vm4960_vm2, %v4953_v41  ;;  %v3071_v58 = vpop.permute.xlu0 %3070 }
0x13eb   : > { %v3145_v59 = vpop.f32.mrf.mxu0 }
0x13ec   : > { %v3146_v61 = vadd.f32 %v3145_v59, %v3071_v58 }
0x13ed   : > { %v4678_v62 = vpop.f32.mrf.mxu0 }
0x13ee   : > { %v3149_v43 = vmax.f32 %v3146_v61, 0.0 }
0x13f0   : > { %v3150_v63 = vmul.f32 %v5629_v30, %v3149_v43 }
0x13f2   : > { %3152 = vrot.lane.b32.xlu1 %v3150_v63, %s5921_s5 }
0x1464   : > { %v3153_v0 = vpop.permute.xlu1 %3152 }
0x1465   : > { %3155 = vst.msk [vmem:[#allocation2] sm:$0xf] %vm1435_vm0, %v3153_v0 }
0x146c   : > { %v3200_v1 = vld [vmem:[#allocation2] sm:$0xf] }
0x146d   : > { %v3188_v2 = vld [vmem:[#allocation2] sm:$0xf]  ;;  %3202 = vrot.lane.b32.xlu0 %v3200_v1, %s5922_s15 }
0x146e   : > { %3190 = vrot.lane.b32.xlu1 %v3188_v2, %s5930_s3  ;;  %v3156_v3 = vld [vmem:[#allocation2] sm:$0xf] }
0x146f   : > { %3157 = vst.msk [vmem:[#allocation3] sm:$0xf] %vm1438_vm1, %v3156_v3  ;;  %v3194_v4 = vld [vmem:[#allocation2] sm:$0xf] }
0x1470   : > { %v3176_v5 = vld [vmem:[#allocation2] sm:$0xf] }
0x1471   : > { %3196 = vrot.lane.b32.xlu0 %v3194_v4, %s5923_s26  ;;  %v3182_v6 = vld [vmem:[#allocation2] sm:$0xf] }
0x1472   : > { %3178 = vrot.lane.b32.xlu1 %v3176_v5, %s5924_s27  ;;  %v3164_v8 = vld [vmem:[#allocation2] sm:$0xf] }
0x1473   : > { %v3170_v11 = vld [vmem:[#allocation2] sm:$0xf] }
0x1474   : > { %v3158_v12 = vld [vmem:[#allocation2] sm:$0xf] }
0x1475   : > { %3184 = vrot.lane.b32.xlu0 %v3182_v6, %s5926_s13 }
0x1476   : > { %3166 = vrot.lane.b32.xlu1 %v3164_v8, %s5927_s17 }
0x1479   : > { %3172 = vrot.lane.b32.xlu0 %v3170_v11, %s5928_s16 }
0x147a   : > { %3160 = vrot.lane.b32.xlu1 %v3158_v12, %s5929_s18 }
0x147d   : > { %3222 = vperm.xlu0 %4846, %v3214_v60  }
0x147e   : > { %3217 = vperm.xlu1 %4845, %v3213_v13  }
0x1481   : > { %3315 = vperm.xlu0 %4846, %v3312_v14  }
0x14df   : > { %v3203_v15 = vpop.permute.xlu0 %3202 }
0x14e0   : > { %v3191_v16 = vpop.permute.xlu1 %3190  ;;  %3205 = vst.msk [vmem:[#allocation3 + $0x20] sm:$0xf] %vm1438_vm1, %v3203_v15 }
0x14e1   : > { %3193 = vst.msk [vmem:[#allocation3 + $0x18] sm:$0xf] %vm1438_vm1, %v3191_v16 }
0x14e3   : > { %v3197_v17 = vpop.permute.xlu0 %3196 }
0x14e4   : > { %v3179_v18 = vpop.permute.xlu1 %3178  ;;  %3199 = vst.msk [vmem:[#allocation3 + $0x1c] sm:$0xf] %vm1438_vm1, %v3197_v17 }
0x14e5   : > { %3181 = vst.msk [vmem:[#allocation3 + $0x10] sm:$0xf] %vm1438_vm1, %v3179_v18 }
0x14e7   : > { %v3185_v19 = vpop.permute.xlu0 %3184  ;;  %v3212_v21 = vld [vmem:[#allocation3 + $0x20] sm:$0xf] }
0x14e8   : > { %v3167_v20 = vpop.permute.xlu1 %3166  ;;  %3187 = vst.msk [vmem:[#allocation3 + $0x14] sm:$0xf] %vm1438_vm1, %v3185_v19  ;;  %4679 = vmatprep.subr.msk.mxu1 %vm1504_vm3, %v3212_v21 }
0x14e9   : > { %3169 = vst.msk [vmem:[#allocation3 + $0x8] sm:$0xf] %vm1438_vm1, %v3167_v20  ;;  %4680 = vmatpush3.msk.msra.mxu1 %vm1504_vm3, %v3212_v21 }
0x14eb   : > { %v3173_v22 = vpop.permute.xlu0 %3172  ;;  %v3211_v25 = vld [vmem:[#allocation3 + $0x18] sm:$0xff] }
0x14ec   : > { %v3161_v24 = vpop.permute.xlu1 %3160  ;;  %3175 = vst.msk [vmem:[#allocation3 + $0xc] sm:$0xf] %vm1438_vm1, %v3173_v22  ;;  %4681 = vmatprep.subr.mxu1 %v3211_v25 }
0x14ed   : > { %3163 = vst.msk [vmem:[#allocation3 + $0x4] sm:$0xf] %vm1438_vm1, %v3161_v24  ;;  %4682 = vmatpush3.msra.mxu1 %v3211_v25 }
0x14ef   : > { %v3210_v10 = vld [vmem:[#allocation3 + $0x10] sm:$0xff] }
0x14f0   : > { %4683 = vmatprep.subr.mxu1 %v3210_v10 }
0x14f1   : > { %4684 = vmatpush3.msra.mxu1 %v3210_v10 }
0x14f3   : > { %v3209_v26 = vld [vmem:[#allocation3 + $0x8] sm:$0xff] }
0x14f4   : > { %4685 = vmatprep.subr.mxu1 %v3209_v26  ;;  %v3208_v27 = vld [vmem:[#allocation3] sm:$0xff] }
0x14f5   : > { %4686 = vmatpush3.msra.mxu1 %v3209_v26 }
0x14f6   : > { %4687 = vmatprep.subr.mxu1 %v3208_v27 }
0x14f7   : > { %4688 = vmatpush3.msra.mxu1 %v3208_v27 }
0x14f8   : > { %4690 = vmatmul.mubr.msk.f32.vlgmr.msra.gmra.mxu1 %vm1500_vm4, %v3207_v28  ;;  %v3223_v29 = vpop.permute.xlu0 %3222 }
0x14f9   : > { %v3218_v33 = vpop.permute.xlu1 %3217 }
0x14fc   : > { %v3316_v39 = vpop.permute.xlu0 %3315 }
0x15b8   : > { %v4691_v31 = vpop.f32.mrf.mxu1 }
0x15b9   : > { %v3306_v32 = vadd.f32 %v4691_v31, %v3223_v29 }
0x15ba   : > { %v3300_v34 = vpop.f32.mrf.mxu1 }
0x15bb   : > { %v3310_v35 = vmax.f32 %v3306_v32, 0.0  ;;  %v3301_v37 = vadd.f32 %v3300_v34, %v3218_v33 }
0x15bd   : > { %v3309_v38 = vmax.f32 %v3301_v37, 0.0  ;;  %4693 = vmatpush3.msk.msra.mxu0 %vm1504_vm3, %v3310_v35 }
0x15be   : > { %4694 = vmatprep.subr.mxu0 %v4953_v41 }
0x15bf   : > { %4695 = vmatpush3.msra.mxu0 %v3309_v38 }
0x15c0   : > { %4697 = vmatmul.mubr.msk.f32.vlgmr.msra.gmra.mxu0 %vm1753_vm5, %v3311_v23 }
0x1680   : > { %v3390_v40 = vpop.f32.mrf.mxu0 }
0x1681   : > { %v3391_v42 = vadd.f32 %v3390_v40, %v3316_v39 }
0x1682   : > { %v4698_v44 = vpop.f32.mrf.mxu0 }
0x1683   : > { %v3394_v45 = vmax.f32 %v3391_v42, 0.0 }
0x1685   : > { %v3395_v46 = vmul.f32 %v5629_v30, %v3394_v45 }
0x1687   : > { %3397 = vrot.lane.b32.xlu1 %v3395_v46, %s5921_s5 }
0x16f9   : > { %v3398_v47 = vpop.permute.xlu1 %3397 }
0x16fa   : > { %v3400_v48 = vadd.f32 %v3398_v47, %v5637_v36 }
0x16fc   : > { %3401 = vst.msk [vmem:[#allocation2] sm:$0xf] %vm1435_vm0, %v3400_v48 }
0x16fd   : > { %4890 = dma.done.wait [#allocation5], 13312 }
0x16fe   : > { %4891 = vsyncadd [#allocation5], 4294953984  ;;  %3511 = vmatprep.mubr.f32.mxu1 %v4953_v41  ;;  %3640 = vmatprep.mubr.f32.mxu0 %v4953_v41  ;;  %v3434_v30 = vld [vmem:[#allocation4 + $0xc8] sm:$0xf]  ;;  %v3564_v55 = vld [vmem:[#allocation4 + $0x180] sm:$0xf] }
0x16ff   : > { %v3433_v51 = vld [vmem:[#allocation4 + $0x248] sm:$0xf]  ;;  %4376 = vmatprep.subr.msk.mxu1 %vm1504_vm3, %v3434_v30  ;;  %v3563_v56 = vld [vmem:[#allocation4 + $0x230] sm:$0xf]  ;;  %4379 = vmatprep.subr.msk.mxu0 %vm1504_vm3, %v3564_v55  ;;  %v3562_v7 = vld [vmem:[#allocation4 + $0x40] sm:$0xff]  ;;  %vm3438_vm6 = vcmask 818176  }
0x1700   : > { %v3432_v36 = vld [vmem:[#allocation4 + $0x88] sm:$0xff]  ;;  %4377 = vmatpush1.msk.msra.mxu1 %vm1504_vm3, %v3433_v51  ;;  %v3429_v58 = vld [vmem:[#allocation4 + $0x2d0] sm:$0xff]  ;;  %4380 = vmatpush1.msk.msra.mxu0 %vm1504_vm3, %v3563_v56  ;;  %v3560_v62 = vld [vmem:[#allocation4 + $0x2a0] sm:$0xff]  ;;  %s5953_s5 = sld [smem:[#allocation40_spill]]  ;;  %vm4137_vm7 = vcmask 523264   ;;  %s4226_s18 = sshll.u32 %s5336_s10, 4  ;;  %s4227_s18 = int_to_ptr.vmem [resolvable:$true] %s4226_s18 }
0x1701   : > { %v3431_v54 = vld [vmem:[#allocation4 + $0x108] sm:$0xff]  ;;  %3455 = vmatprep.subr.mxu1 %v3432_v36  ;;  %v3561_v59 = vld [vmem:[#allocation4 + $0x70] sm:$0xff]  ;;  %3584 = vmatprep.subr.mxu0 %v3562_v7  ;;  %v3427_v43 = vld [vmem:[#allocation4 + $0x198] sm:$0xff]  ;;  %s5954_s13 = sld [smem:[#allocation42_spill]]  ;;  %vm4211_vm8 = vcmask 32768   ;;  %s5957_s15 = sand.u32 1, %s4902_s1  }
0x1702   : > { %v3430_v57 = vld [vmem:[#allocation4 + $0x268] sm:$0xff]  ;;  %3456 = vmatpush1.msra.mxu1 %v3431_v54  ;;  %3585 = vmatpush1.msra.mxu0 %v3561_v59  ;;  %v3558_v1 = vld [vmem:[#allocation4 + $0xd8] sm:$0xff]  ;;  %v3425_v2 = vld [vmem:[#allocation4 + $0x2c0] sm:$0xff]  ;;  %s5955_s17 = sld [smem:[#allocation39_spill]]  ;;  %s4214_s16 = scalar_lea.sflag [#allocation7], %s5957_s15 }
0x1703   : > { %v3408_v49 = vld [vmem:[#allocation2] sm:$0x1]  ;;  %v3666_v50 = vld [vmem:[#allocation2 + $0x2] sm:$0x1]  ;;  %v3537_v52 = vld [vmem:[#allocation2 + $0x1] sm:$0x1]  ;;  %3457 = vmatprep.subr.mxu1 %v3430_v57  ;;  %3586 = vmatprep.subr.mxu0 %v3560_v62 }
0x1704   : > { %3436 = vrot.lane.b32.xlu0 %v3408_v49, %s5924_s27  ;;  %3695 = vrot.lane.b32.xlu1 %v3666_v50, %s5924_s27  ;;  %v3795_v53 = vld [vmem:[#allocation2 + $0x3] sm:$0x1]  ;;  %v3428_v61 = vld [vmem:[#allocation4 + $0x148] sm:$0xff]  ;;  %v3557_v3 = vld [vmem:[#allocation4 + $0x298] sm:$0xff]  ;;  %s5956_s3 = sld [smem:[#allocation41_spill]]  ;;  %s4848_s9 = scalar_lea.vmem %s4227_s18, 16 }
0x1705   : > { %v3559_v63 = vld [vmem:[#allocation4 + $0x8] sm:$0xff]  ;;  %3458 = vmatpush1.msra.mxu1 %v3429_v58  ;;  %v3424_v4 = vld [vmem:[#allocation4 + $0x20] sm:$0xff]  ;;  %v3423_v6 = vld [vmem:[#allocation4 + $0x318] sm:$0xff]  ;;  %p4849_p11 = scmp.ne.s32.totalorder %s4227_s18, %s4848_s9 }
0x1706   : > { %v3426_v0 = vld [vmem:[#allocation4 + $0x188] sm:$0xff]  ;;  %3459 = vmatprep.subr.mxu1 %v3428_v61  ;;  %3587 = vmatpush1.msra.mxu0 %v3559_v63  ;;  %v3556_v5 = vld [vmem:[#allocation4 + $0x1e0] sm:$0xff]  ;;  %v3554_v11 = vld [vmem:[#allocation4 + $0x78] sm:$0xff] }
0x1707   : > { %3460 = vmatpush1.msra.mxu1 %v3427_v43  ;;  %3588 = vmatprep.subr.mxu0 %v3558_v1  ;;  %v3555_v8 = vld [vmem:[#allocation4 + $0xa8] sm:$0xff]  ;;  %v3421_v12 = vld [vmem:[#allocation4 + $0x18] sm:$0xff]  ;;  %v3420_v13 = vld [vmem:[#allocation4 + $0xf0] sm:$0xff]  ;;  %p4850_p12 = pnand %p4849_p11, %p5214_p5 }
0x1708   : > { %3566 = vrot.lane.b32.xlu0 %v3537_v52, %s5924_s27  ;;  %3824 = vrot.lane.b32.xlu1 %v3795_v53, %s5924_s27  ;;  %v3422_v9 = vld [vmem:[#allocation4 + $0x2c8] sm:$0xff]  ;;  %v3552_v14 = vld [vmem:[#allocation4 + $0x1a0] sm:$0xff]  ;;  %v3419_v15 = vld [vmem:[#allocation4 + $0x138] sm:$0xff]  ;;  %s4389_s27 = sshll.u32 %s5197_s0, 4 }
0x1709   : > { %3461 = vmatprep.subr.mxu1 %v3426_v0  ;;  %3589 = vmatpush1.msra.mxu0 %v3557_v3  ;;  %v3553_v60 = vld [vmem:[#allocation4 + $0x228] sm:$0xff]  ;;  %v3551_v16 = vld [vmem:[#allocation4 + $0x338] sm:$0xff]  ;;  %v3550_v18 = vld [vmem:[#allocation4 + $0xa0] sm:$0xff]  ;;  %s5814_s26 = scalar_lea.hbm %s5174_s30, %s4389_s27  ;;  %p4851_p13 = pneg %p4850_p12 }
0x170a   : > { %3462 = vmatpush1.msra.mxu1 %v3425_v2  ;;  %3590 = vmatprep.subr.mxu0 %v3556_v5  ;;  %v3418_v17 = vld [vmem:[#allocation4 + $0x308] sm:$0xff]  ;;  %v3417_v19 = vld [vmem:[#allocation4 + $0x80] sm:$0xff]  ;;  %v3549_v20 = vld [vmem:[#allocation4 + $0x1d8] sm:$0xff] }
0x170b   : > { %3463 = vmatprep.subr.mxu1 %v3424_v4  ;;  %3591 = vmatpush1.msra.mxu0 %v3555_v8  ;;  %v3416_v21 = vld [vmem:[#allocation4 + $0x100] sm:$0xff]  ;;  %v3548_v22 = vld [vmem:[#allocation4 + $0x1c8] sm:$0xff]  ;;  %v3415_v24 = vld [vmem:[#allocation4 + $0xf8] sm:$0xff] }
0x170c   : > { %3464 = vmatpush1.msra.mxu1 %v3423_v6  ;;  %3592 = vmatprep.subr.mxu0 %v3554_v11  ;;  %v3547_v25 = vld [vmem:[#allocation4 + $0x300] sm:$0xff]  ;;  %v3414_v10 = vld [vmem:[#allocation4 + $0x38] sm:$0xff]  ;;  %v3412_v29 = vld [vmem:[#allocation4 + $0x48] sm:$0xff] }
0x170d   : > { %3465 = vmatprep.subr.mxu1 %v3422_v9  ;;  %3593 = vmatpush1.msra.mxu0 %v3553_v60  ;;  %v3546_v26 = vld [vmem:[#allocation4 + $0xb8] sm:$0xff]  ;;  %v3413_v27 = vld [vmem:[#allocation4 + $0x320] sm:$0xff]  ;;  %v3544_v31 = vld [vmem:[#allocation4 + $0x150] sm:$0xff] }
0x170e   : > { %3466 = vmatpush1.msra.mxu1 %v3421_v12  ;;  %3594 = vmatprep.subr.mxu0 %v3552_v14  ;;  %v3545_v28 = vld [vmem:[#allocation4 + $0x178] sm:$0xff]  ;;  %v3411_v32 = vld [vmem:[#allocation4 + $0x10] sm:$0xff]  ;;  %v3541_v38 = vld [vmem:[#allocation4 + $0x240] sm:$0xff] }
0x170f   : > { %3467 = vmatprep.subr.mxu1 %v3420_v13  ;;  %3595 = vmatpush1.msra.mxu0 %v3551_v16  ;;  %v3543_v33 = vld [vmem:[#allocation4 + $0x258] sm:$0xff]  ;;  %v3410_v34 = vld [vmem:[#allocation4 + $0xd0] sm:$0xff]  ;;  %v3693_v23 = vld [vmem:[#allocation4 + $0x68] sm:$0xf] }
0x1710   : > { %3468 = vmatpush1.msra.mxu1 %v3419_v15  ;;  %3596 = vmatprep.subr.mxu0 %v3550_v18  ;;  %v3542_v35 = vld [vmem:[#allocation4 + $0x278] sm:$0xff]  ;;  %v3409_v37 = vld [vmem:[#allocation4 + $0x2b0] sm:$0xff]  ;;  %v3691_v46 = vld [vmem:[#allocation4 + $0x2a8] sm:$0xff] }
0x1711   : > { %3469 = vmatprep.subr.mxu1 %v3418_v17  ;;  %3597 = vmatpush1.msra.mxu0 %v3549_v20  ;;  %v3540_v39 = vld [vmem:[#allocation4 + $0x1d0] sm:$0xff]  ;;  %v3539_v40 = vld [vmem:[#allocation4 + $0x118] sm:$0xff]  ;;  %v3690_v47 = vld [vmem:[#allocation4 + $0x140] sm:$0xff] }
0x1712   : > { %3470 = vmatpush1.msra.mxu1 %v3417_v19  ;;  %3598 = vmatprep.subr.mxu0 %v3548_v22  ;;  %v3822_v42 = vld [vmem:[#allocation4 + $0xb0] sm:$0xf]  ;;  %v3689_v48 = vld [vmem:[#allocation4 + $0x1b8] sm:$0xff]  ;;  %v3688_v49 = vld [vmem:[#allocation4 + $0x60] sm:$0xff] }
0x1713   : > { %3471 = vmatprep.subr.mxu1 %v3416_v21  ;;  %3599 = vmatpush1.msra.mxu0 %v3547_v25  ;;  %v3692_v44 = vld [vmem:[#allocation4 + $0x1f0] sm:$0xf]  ;;  %v3821_v50 = vld [vmem:[#allocation4 + $0x1f8] sm:$0xf]  ;;  %v3687_v51 = vld [vmem:[#allocation4] sm:$0xff] }
0x1714   : > { %3472 = vmatpush1.msra.mxu1 %v3415_v24  ;;  %3600 = vmatprep.subr.mxu0 %v3546_v26  ;;  %v3820_v52 = vld [vmem:[#allocation4 + $0x2e8] sm:$0xff]  ;;  %v3819_v36 = vld [vmem:[#allocation4 + $0x280] sm:$0xff]  ;;  %v3685_v54 = vld [vmem:[#allocation4 + $0x250] sm:$0xff] }
0x1715   : > { %3473 = vmatprep.subr.mxu1 %v3414_v10  ;;  %3601 = vmatpush1.msra.mxu0 %v3545_v28  ;;  %v3686_v53 = vld [vmem:[#allocation4 + $0x28] sm:$0xff]  ;;  %v3818_v55 = vld [vmem:[#allocation4 + $0x160] sm:$0xff]  ;;  %v3684_v56 = vld [vmem:[#allocation4 + $0x170] sm:$0xff] }
0x1716   : > { %3474 = vmatpush1.msra.mxu1 %v3413_v27  ;;  %3602 = vmatprep.subr.mxu0 %v3544_v31  ;;  %v3817_v57 = vld [vmem:[#allocation4 + $0x310] sm:$0xff]  ;;  %v3683_v7 = vld [vmem:[#allocation4 + $0x220] sm:$0xff]  ;;  %v3816_v58 = vld [vmem:[#allocation4 + $0x288] sm:$0xff] }
0x1717   : > { %3475 = vmatprep.subr.mxu1 %v3412_v29  ;;  %3603 = vmatpush1.msra.mxu0 %v3543_v33  ;;  %v3682_v59 = vld [vmem:[#allocation4 + $0x328] sm:$0xff]  ;;  %v3815_v61 = vld [vmem:[#allocation4 + $0x290] sm:$0xff]  ;;  %v3814_v43 = vld [vmem:[#allocation4 + $0x2e0] sm:$0xff] }
0x1718   : > { %3476 = vmatpush1.msra.mxu1 %v3411_v32  ;;  %3604 = vmatprep.subr.mxu0 %v3542_v35  ;;  %v3681_v62 = vld [vmem:[#allocation4 + $0x50] sm:$0xff]  ;;  %v3680_v63 = vld [vmem:[#allocation4 + $0x260] sm:$0xff]  ;;  %v3678_v3 = vld [vmem:[#allocation4 + $0x168] sm:$0xff] }
0x1719   : > { %3477 = vmatprep.subr.mxu1 %v3410_v34  ;;  %3605 = vmatpush1.msra.mxu0 %v3541_v38  ;;  %v3813_v0 = vld [vmem:[#allocation4 + $0xc0] sm:$0xff]  ;;  %v3679_v1 = vld [vmem:[#allocation4 + $0x1b0] sm:$0xff]  ;;  %v3811_v4 = vld [vmem:[#allocation4 + $0x58] sm:$0xff] }
0x171a   : > { %3478 = vmatpush1.msra.mxu1 %v3409_v37  ;;  %3606 = vmatprep.subr.mxu0 %v3540_v39  ;;  %v3812_v2 = vld [vmem:[#allocation4 + $0x30] sm:$0xff]  ;;  %v3810_v6 = vld [vmem:[#allocation4 + $0x218] sm:$0xff]  ;;  %v3809_v9 = vld [vmem:[#allocation4 + $0x1c0] sm:$0xff] }
0x171b   : > { %4382 = vmatprep.subr.msk.mxu1 %vm1504_vm3, %v3693_v23  ;;  %3607 = vmatpush1.msra.mxu0 %v3539_v40  ;;  %v3677_v5 = vld [vmem:[#allocation4 + $0x90] sm:$0xff]  ;;  %v3676_v8 = vld [vmem:[#allocation4 + $0x2b8] sm:$0xff]  ;;  %v3807_v13 = vld [vmem:[#allocation4 + $0x200] sm:$0xff] }
0x171c   : > { %4385 = vmatprep.subr.msk.mxu0 %vm1504_vm3, %v3822_v42  ;;  %v3675_v11 = vld [vmem:[#allocation4 + $0x158] sm:$0xff]  ;;  %v3673_v14 = vld [vmem:[#allocation4 + $0xe8] sm:$0xff]  ;;  %v3672_v16 = vld [vmem:[#allocation4 + $0x270] sm:$0xff] }
0x171d   : > { %v3808_v12 = vld [vmem:[#allocation4 + $0x2f8] sm:$0xff]  ;;  %v3806_v15 = vld [vmem:[#allocation4 + $0x128] sm:$0xff]  ;;  %v3671_v18 = vld [vmem:[#allocation4 + $0x110] sm:$0xff] }
0x171e   : > { %v3674_v60 = vld [vmem:[#allocation4 + $0x2d8] sm:$0xff]  ;;  %v3804_v19 = vld [vmem:[#allocation4 + $0x130] sm:$0xff]  ;;  %v3803_v21 = vld [vmem:[#allocation4 + $0x1e8] sm:$0xff] }
0x171f   : > { %v3805_v17 = vld [vmem:[#allocation4 + $0x238] sm:$0xff]  ;;  %v3670_v20 = vld [vmem:[#allocation4 + $0x210] sm:$0xff]  ;;  %v3668_v10 = vld [vmem:[#allocation4 + $0x208] sm:$0xff] }
0x1720   : > { %v3669_v22 = vld [vmem:[#allocation4 + $0x2f0] sm:$0xff]  ;;  %v3802_v24 = vld [vmem:[#allocation4 + $0x98] sm:$0xff]  ;;  %v3801_v26 = vld [vmem:[#allocation4 + $0x1a8] sm:$0xff] }
0x1721   : > { %v3800_v27 = vld [vmem:[#allocation4 + $0x190] sm:$0xff]  ;;  %v3798_v29 = vld [vmem:[#allocation4 + $0x120] sm:$0xff] }
0x1722   : > { %v3799_v28 = vld [vmem:[#allocation4 + $0x330] sm:$0xff]  ;;  %v3797_v31 = vld [vmem:[#allocation4 + $0xe0] sm:$0xff] }
0x1723   : > { %v3956_v33 = vld [vmem:[%s5953_s5 + $0xf8] sm:$0xff]  ;;  %v3955_v35 = vld [vmem:[%s5953_s5 + $0xf0] sm:$0xff]  ;;  %v3954_v38 = vld [vmem:[%s5953_s5 + $0xe8] sm:$0xff] }
0x1724   : > { %v3940_v34 = vld [vmem:[%s5953_s5 + $0x78] sm:$0xff]  ;;  %v3939_v37 = vld [vmem:[%s5953_s5 + $0x70] sm:$0xff]  ;;  %v3938_v23 = vld [vmem:[%s5953_s5 + $0x68] sm:$0xff] }
0x1725   : > { %v3953_v39 = vld [vmem:[%s5953_s5 + $0xe0] sm:$0xff]  ;;  %v3952_v42 = vld [vmem:[%s5953_s5 + $0xd8] sm:$0xff] }
0x1726   : > { %v3937_v40 = vld [vmem:[%s5953_s5 + $0x60] sm:$0xff] }
0x1776   : > { %v3437_v45 = vpop.permute.xlu0 %3436  ;;  %v3696_v25 = vpop.permute.xlu1 %3695 }
0x1777   : > { %4378 = vmatmul.mubr.msk.f32.vlgmr.msra.gmra.mxu1 %vm3438_vm6, %v3437_v45  ;;  %v3951_v45 = vld [vmem:[%s5953_s5 + $0xd0] sm:$0xff] }
0x1778   : > { %4383 = vmatpush1.msk.msra.mxu1 %vm1504_vm3, %v3692_v44  ;;  %3769 = vmatprep.mubr.f32.mxu1 %v4953_v41  ;;  %v3936_v44 = vld [vmem:[%s5953_s5 + $0x58] sm:$0xff] }
0x1779   : > { %3713 = vmatprep.subr.mxu1 %v3691_v46  ;;  %v3935_v46 = vld [vmem:[%s5953_s5 + $0x50] sm:$0xff] }
0x177a   : > { %3714 = vmatpush1.msra.mxu1 %v3690_v47  ;;  %v3567_v30 = vpop.permute.xlu0 %3566  ;;  %v3825_v32 = vpop.permute.xlu1 %3824  ;;  %v3950_v47 = vld [vmem:[%s5953_s5 + $0xc8] sm:$0xff] }
0x177b   : > { %3715 = vmatprep.subr.mxu1 %v3689_v48  ;;  %4381 = vmatmul.mubr.msk.f32.vlgmr.msra.gmra.mxu0 %vm3438_vm6, %v3567_v30  ;;  %v3934_v48 = vld [vmem:[%s5953_s5 + $0x48] sm:$0xff]  ;;  %v3948_v30 = vld [vmem:[%s5953_s5 + $0xb8] sm:$0xff] }
0x177c   : > { %3716 = vmatpush1.msra.mxu1 %v3688_v49  ;;  %4386 = vmatpush1.msk.msra.mxu0 %vm1504_vm3, %v3821_v50  ;;  %v3949_v49 = vld [vmem:[%s5953_s5 + $0xc0] sm:$0xff] }
0x177d   : > { %3717 = vmatprep.subr.mxu1 %v3687_v51  ;;  %3842 = vmatprep.subr.mxu0 %v3820_v52  ;;  %v3933_v50 = vld [vmem:[%s5953_s5 + $0x40] sm:$0xff]  ;;  %v3932_v51 = vld [vmem:[%s5953_s5 + $0x38] sm:$0xff]  ;;  %v3947_v52 = vld [vmem:[%s5953_s5 + $0xb0] sm:$0xff] }
0x177e   : > { %3718 = vmatpush1.msra.mxu1 %v3686_v53  ;;  %3843 = vmatpush1.msra.mxu0 %v3819_v36  ;;  %v3931_v53 = vld [vmem:[%s5953_s5 + $0x30] sm:$0xff]  ;;  %v3946_v36 = vld [vmem:[%s5953_s5 + $0xa8] sm:$0xff] }
0x177f   : > { %3719 = vmatprep.subr.mxu1 %v3685_v54  ;;  %3844 = vmatprep.subr.mxu0 %v3818_v55  ;;  %v3930_v54 = vld [vmem:[%s5953_s5 + $0x28] sm:$0xff]  ;;  %v3945_v55 = vld [vmem:[%s5953_s5 + $0xa0] sm:$0xff] }
0x1780   : > { %3720 = vmatpush1.msra.mxu1 %v3684_v56  ;;  %3845 = vmatpush1.msra.mxu0 %v3817_v57  ;;  %v3929_v56 = vld [vmem:[%s5953_s5 + $0x20] sm:$0xff]  ;;  %v3944_v57 = vld [vmem:[%s5953_s5 + $0x98] sm:$0xff] }
0x1781   : > { %3721 = vmatprep.subr.mxu1 %v3683_v7  ;;  %3846 = vmatprep.subr.mxu0 %v3816_v58  ;;  %v3928_v7 = vld [vmem:[%s5953_s5 + $0x18] sm:$0xff]  ;;  %v3943_v58 = vld [vmem:[%s5953_s5 + $0x90] sm:$0xff] }
0x1782   : > { %3722 = vmatpush1.msra.mxu1 %v3682_v59  ;;  %3847 = vmatpush1.msra.mxu0 %v3815_v61  ;;  %v3927_v59 = vld [vmem:[%s5953_s5 + $0x10] sm:$0xff]  ;;  %v3942_v61 = vld [vmem:[%s5953_s5 + $0x88] sm:$0xff] }
0x1783   : > { %3723 = vmatprep.subr.mxu1 %v3681_v62  ;;  %3848 = vmatprep.subr.mxu0 %v3814_v43  ;;  %v3926_v62 = vld [vmem:[%s5953_s5 + $0x8] sm:$0xff]  ;;  %v3941_v43 = vld [vmem:[%s5953_s5 + $0x80] sm:$0xff] }
0x1784   : > { %3724 = vmatpush1.msra.mxu1 %v3680_v63  ;;  %3849 = vmatpush1.msra.mxu0 %v3813_v0  ;;  %v3925_v63 = vld [vmem:[%s5953_s5] sm:$0xff]  ;;  %v4055_v0 = vld [vmem:[%s5954_s13 + $0x78] sm:$0xff] }
0x1785   : > { %3725 = vmatprep.subr.mxu1 %v3679_v1  ;;  %3850 = vmatprep.subr.mxu0 %v3812_v2  ;;  %v4054_v1 = vld [vmem:[%s5954_s13 + $0x70] sm:$0xff]  ;;  %v4053_v2 = vld [vmem:[%s5954_s13 + $0x68] sm:$0xff] }
0x1786   : > { %3726 = vmatpush1.msra.mxu1 %v3678_v3  ;;  %3851 = vmatpush1.msra.mxu0 %v3811_v4  ;;  %v4052_v3 = vld [vmem:[%s5954_s13 + $0x60] sm:$0xff]  ;;  %v4051_v4 = vld [vmem:[%s5954_s13 + $0x58] sm:$0xff] }
0x1787   : > { %3727 = vmatprep.subr.mxu1 %v3677_v5  ;;  %3852 = vmatprep.subr.mxu0 %v3810_v6  ;;  %v4050_v5 = vld [vmem:[%s5954_s13 + $0x50] sm:$0xff]  ;;  %v4049_v6 = vld [vmem:[%s5954_s13 + $0x48] sm:$0xff] }
0x1788   : > { %3728 = vmatpush1.msra.mxu1 %v3676_v8  ;;  %3853 = vmatpush1.msra.mxu0 %v3809_v9  ;;  %v4048_v8 = vld [vmem:[%s5954_s13 + $0x40] sm:$0xff]  ;;  %v4047_v9 = vld [vmem:[%s5954_s13 + $0x38] sm:$0xff] }
0x1789   : > { %3729 = vmatprep.subr.mxu1 %v3675_v11  ;;  %3854 = vmatprep.subr.mxu0 %v3808_v12  ;;  %v4046_v11 = vld [vmem:[%s5954_s13 + $0x30] sm:$0xff]  ;;  %v4045_v12 = vld [vmem:[%s5954_s13 + $0x28] sm:$0xff] }
0x178a   : > { %3730 = vmatpush1.msra.mxu1 %v3674_v60  ;;  %3855 = vmatpush1.msra.mxu0 %v3807_v13  ;;  %v4964_v60 = vmov 1966171168  }
0x178b   : > { %3731 = vmatprep.subr.mxu1 %v3673_v14  ;;  %3856 = vmatprep.subr.mxu0 %v3806_v15  ;;  %v3522_v13 = vunpack.c.l.s4 %v4964_v60  ;;  %v3524_v14 = vlaneseq }
0x178c   : > { %3732 = vmatpush1.msra.mxu1 %v3672_v16  ;;  %3857 = vmatpush1.msra.mxu0 %v3805_v17 }
0x178d   : > { %3733 = vmatprep.subr.mxu1 %v3671_v18  ;;  %3858 = vmatprep.subr.mxu0 %v3804_v19  ;;  %v3523_v17 = vunpack.c.0.s8 %v3522_v13  ;;  %v3525_v18 = vshrl.u32 %v3524_v14, 7 }
0x178e   : > { %3734 = vmatpush1.msra.mxu1 %v3670_v20  ;;  %3859 = vmatpush1.msra.mxu0 %v3803_v21 }
0x178f   : > { %3735 = vmatprep.subr.mxu1 %v3669_v22  ;;  %3860 = vmatprep.subr.mxu0 %v3802_v24  ;;  %v3526_v22 = vsub.s32 %v3523_v17, %v3525_v18 }
0x1790   : > { %3736 = vmatpush1.msra.mxu1 %v3668_v10  ;;  %3861 = vmatpush1.msra.mxu0 %v3801_v26 }
0x1791   : > { %4384 = vmatmul.mubr.msk.f32.vlgmr.msra.gmra.mxu1 %vm3438_vm6, %v3696_v25  ;;  %3862 = vmatprep.subr.mxu0 %v3800_v27 }
0x1792   : > { %3863 = vmatpush1.msra.mxu0 %v3799_v28  ;;  %3898 = vmatprep.mubr.f32.mxu0 %v4953_v41 }
0x1793   : > { %3864 = vmatprep.subr.mxu0 %v3798_v29  ;;  %4473 = vmatprep.subr.mxu1 %v3956_v33 }
0x1794   : > { %3865 = vmatpush1.msra.mxu0 %v3797_v31  ;;  %4474 = vmatpush3.msra.mxu1 %v3940_v34  ;;  %v3407_v31 = vld [vmem:[%s5955_s17] sm:$0x3]  ;;  %s4965_s17 = smov [#allocation6]  }
0x1795   : > { %4387 = vmatmul.mubr.msk.f32.vlgmr.msra.gmra.mxu0 %vm3438_vm6, %v3825_v32  ;;  %4699 = vmatprep.subr.mxu0 %v4953_v41 }
0x1796   : > { %4731 = vmatprep.mubr.msk.f32.mxu0 %vm4960_vm2, %v4953_v41  ;;  %4475 = vmatprep.subr.mxu1 %v3955_v35 }
0x1797   : > { %4476 = vmatpush3.msra.mxu1 %v3939_v37  ;;  %4700 = vmatpush3.msra.mxu0 %v4055_v0  ;;  %v4130_v0 = vld [vmem:[%s5164_s12 + $0x10] sm:$0xff] }
0x1798   : > { %4477 = vmatprep.subr.mxu1 %v3954_v38  ;;  %4701 = vmatprep.subr.mxu0 %v4953_v41 }
0x1799   : > { %4478 = vmatpush3.msra.mxu1 %v3938_v23  ;;  %4702 = vmatpush3.msra.mxu0 %v4054_v1  ;;  %v4129_v1 = vld [vmem:[%s5164_s12 + $0x8] sm:$0xff] }
0x179a   : > { %4479 = vmatprep.subr.mxu1 %v3953_v39  ;;  %4703 = vmatprep.subr.mxu0 %v4953_v41 }
0x179b   : > { %4480 = vmatpush3.msra.mxu1 %v3937_v40  ;;  %4704 = vmatpush3.msra.mxu0 %v4053_v2  ;;  %v4128_v2 = vld [vmem:[%s5164_s12] sm:$0xff] }
0x179c   : > { %4481 = vmatprep.subr.mxu1 %v3952_v42  ;;  %4705 = vmatprep.subr.mxu0 %v4953_v41 }
0x179d   : > { %4482 = vmatpush3.msra.mxu1 %v3936_v44  ;;  %4706 = vmatpush3.msra.mxu0 %v4052_v3  ;;  %v4056_v3 = vld [vmem:[%s5159_s4] sm:$0x1] }
0x179e   : > { %4483 = vmatprep.subr.mxu1 %v3951_v45  ;;  %4707 = vmatprep.subr.mxu0 %v4953_v41 }
0x179f   : > { %4484 = vmatpush3.msra.mxu1 %v3935_v46  ;;  %4708 = vmatpush3.msra.mxu0 %v4051_v4  ;;  %v3965_v46 = vsub.s32 1, %v3525_v18 }
0x17a0   : > { %4485 = vmatprep.subr.mxu1 %v3950_v47  ;;  %4709 = vmatprep.subr.mxu0 %v4953_v41  ;;  %v3961_v47 = vsub.s32 0, %v3525_v18 }
0x17a1   : > { %4486 = vmatpush3.msra.mxu1 %v3934_v48  ;;  %4710 = vmatpush3.msra.mxu0 %v4050_v5 }
0x17a2   : > { %4487 = vmatprep.subr.mxu1 %v3949_v49  ;;  %4711 = vmatprep.subr.mxu0 %v4953_v41 }
0x17a3   : > { %4488 = vmatpush3.msra.mxu1 %v3933_v50  ;;  %4712 = vmatpush3.msra.mxu0 %v4049_v6 }
0x17a4   : > { %4489 = vmatprep.subr.mxu1 %v3948_v30  ;;  %4713 = vmatprep.subr.mxu0 %v4953_v41  ;;  %v4044_v30 = vld [vmem:[%s5954_s13 + $0x20] sm:$0xff] }
0x17a5   : > { %4490 = vmatpush3.msra.mxu1 %v3932_v51  ;;  %4714 = vmatpush3.msra.mxu0 %v4048_v8  ;;  %v4043_v51 = vld [vmem:[%s5954_s13 + $0x18] sm:$0xff] }
0x17a6   : > { %4491 = vmatprep.subr.mxu1 %v3947_v52  ;;  %4715 = vmatprep.subr.mxu0 %v4953_v41  ;;  %v4042_v52 = vld [vmem:[%s5954_s13 + $0x10] sm:$0xff] }
0x17a7   : > { %4492 = vmatpush3.msra.mxu1 %v3931_v53  ;;  %4716 = vmatpush3.msra.mxu0 %v4047_v9  ;;  %v4041_v53 = vld [vmem:[%s5954_s13 + $0x8] sm:$0xff]  ;;  %v4136_v9 = vld [vmem:[%s5169_s20] sm:$0x1] }
0x17a8   : > { %4493 = vmatprep.subr.mxu1 %v3946_v36  ;;  %4717 = vmatprep.subr.mxu0 %v4953_v41  ;;  %v4040_v36 = vld [vmem:[%s5954_s13] sm:$0xff] }
0x17a9   : > { %4494 = vmatpush3.msra.mxu1 %v3930_v54  ;;  %4718 = vmatpush3.msra.mxu0 %v4046_v11  ;;  %v4135_v54 = vld [vmem:[%s5164_s12 + $0x38] sm:$0xff] }
0x17aa   : > { %4495 = vmatprep.subr.mxu1 %v3945_v55  ;;  %4719 = vmatprep.subr.mxu0 %v4953_v41  ;;  %v4134_v55 = vld [vmem:[%s5164_s12 + $0x30] sm:$0xff] }
0x17ab   : > { %4496 = vmatpush3.msra.mxu1 %v3929_v56  ;;  %4720 = vmatpush3.msra.mxu0 %v4045_v12  ;;  %v4133_v56 = vld [vmem:[%s5164_s12 + $0x28] sm:$0xff] }
0x17ac   : > { %4497 = vmatprep.subr.mxu1 %v3944_v57  ;;  %4721 = vmatprep.subr.mxu0 %v4953_v41  ;;  %v4132_v57 = vld [vmem:[%s5164_s12 + $0x20] sm:$0xff] }
0x17ad   : > { %4498 = vmatpush3.msra.mxu1 %v3928_v7  ;;  %4722 = vmatpush3.msra.mxu0 %v4044_v30  ;;  %v4131_v7 = vld [vmem:[%s5164_s12 + $0x18] sm:$0xff] }
0x17ae   : > { %4499 = vmatprep.subr.mxu1 %v3943_v58  ;;  %4723 = vmatprep.subr.mxu0 %v4953_v41 }
0x17af   : > { %4500 = vmatpush3.msra.mxu1 %v3927_v59  ;;  %4724 = vmatpush3.msra.mxu0 %v4043_v51  ;;  %v3957_v59 = vld [vmem:[%s5956_s3] sm:$0x1]  ;;  %s4852_s3 = sshll.u32 %s4965_s17, 4  ;;  %s4853_s3 = int_to_ptr.vmem [resolvable:$false] %s4852_s3 }
0x17b0   : > { %4501 = vmatprep.subr.mxu1 %v3942_v61  ;;  %4725 = vmatprep.subr.mxu0 %v4953_v41  ;;  %s4854_s0 = scalar_lea.vmem %s4853_s3, 32  ;;  %p4855_p0 = scmp.lt.s32.totalorder %s4227_s18, %s4853_s3 }
0x17b1   : > { %4502 = vmatpush3.msra.mxu1 %v3926_v62  ;;  %4726 = vmatpush3.msra.mxu0 %v4042_v52  ;;  %p4856_p1 = scmp.lt.s32.totalorder %s4854_s0, %s4848_s9 }
0x17b2   : > { %4503 = vmatprep.subr.mxu1 %v3941_v43  ;;  %4727 = vmatprep.subr.mxu0 %v4953_v41 }
0x17b3   : > { %4504 = vmatpush3.msra.mxu1 %v3925_v63  ;;  %4728 = vmatpush3.msra.mxu0 %v4041_v53  ;;  %p4857_p2 = por %p4856_p1, %p4855_p0 }
0x17b4   : > { %4734 = vmatprep.subr.mxu1 %v4953_v41  ;;  %4729 = vmatprep.subr.mxu0 %v4953_v41 }
0x17b5   : > { %4730 = vmatpush3.msra.mxu0 %v4040_v36  ;;  %p4858_p3 = pnand %p4857_p2, %p4851_p13 }
0x1837   : > { %v3513_v15 = vpop.f32.mrf.mxu1 }
0x1839   : > { %v3515_v19 = vpop.f32.mrf.mxu1 }
0x183a   : > { %v3520_v21 = vcombine.low %v3513_v15, %v3515_v19 }
0x183b   : > { %v3642_v16 = vpop.f32.mrf.mxu0 }
0x183c   : > { %v3527_v25 = vrot.slane %v3520_v21, %v3526_v22 }
0x183d   : > { %v3644_v20 = vpop.f32.mrf.mxu0 }
0x183e   : > { %v3649_v24 = vcombine.low %v3642_v16, %v3644_v20  ;;  %v3534_v28 = vrot.slane %v3527_v25, %v3526_v22 }
0x1840   : > { %v3656_v26 = vrot.slane %v3649_v24, %v3526_v22  ;;  %v3536_v37 = vadd.f32 %v3534_v28, %v3407_v31 }
0x1842   : > { %v3663_v33 = vrot.slane %v3656_v26, %v3526_v22 }
0x1844   : > { %v3665_v39 = vadd.f32 %v3663_v33, %v3536_v37 }
0x1851   : > { %v3771_v10 = vpop.f32.mrf.mxu1 }
0x1853   : > { %v3773_v27 = vpop.f32.mrf.mxu1 }
0x1854   : > { %v3778_v29 = vcombine.low %v3771_v10, %v3773_v27 }
0x1855   : > { %v3900_v32 = vpop.f32.mrf.mxu0 }
0x1856   : > { %v3785_v34 = vrot.slane %v3778_v29, %v3526_v22 }
0x1857   : > { %v3902_v35 = vpop.f32.mrf.mxu0 }
0x1858   : > { %v3792_v38 = vrot.slane %v3785_v34, %v3526_v22  ;;  %v3907_v23 = vcombine.low %v3900_v32, %v3902_v35 }
0x185a   : > { %v3914_v40 = vrot.slane %v3907_v23, %v3526_v22  ;;  %v3794_v42 = vadd.f32 %v3792_v38, %v3665_v39 }
0x185c   : > { %v3921_v44 = vrot.slane %v3914_v40, %v3526_v22 }
0x185e   : > { %v3923_v45 = vadd.f32 %v3921_v44, %v3794_v42 }
0x1860   : > { %v3924_v48 = vmax.f32 %v3923_v45, 0.0 }
0x1862   : > { %v3966_v49 = vrot.slane %v3924_v48, %v3965_v46  ;;  %v3962_v50 = vrot.slane %v3924_v48, %v3961_v47 }
0x1864   : > { %4033 = vmatprep.mubr.f32.mxu1 %v3966_v49 }
0x1865   : > { %4034 = vmatmul.mubr.f32.vlgmr.msra.gmra.mxu1 %v3962_v50 }
0x1866   : > { %4750 = vmatprep.mubr.msk.f32.mxu1 %vm4960_vm2, %v4953_v41  ;;  %4735 = vmatpush3.msra.mxu1 %v4135_v54 }
0x1867   : > { %4736 = vmatprep.subr.mxu1 %v4953_v41 }
0x1868   : > { %4737 = vmatpush3.msra.mxu1 %v4134_v55 }
0x1869   : > { %4738 = vmatprep.subr.mxu1 %v4953_v41 }
0x186a   : > { %4739 = vmatpush3.msra.mxu1 %v4133_v56 }
0x186b   : > { %4740 = vmatprep.subr.mxu1 %v4953_v41 }
0x186c   : > { %4741 = vmatpush3.msra.mxu1 %v4132_v57 }
0x186d   : > { %4742 = vmatprep.subr.mxu1 %v4953_v41 }
0x186e   : > { %4743 = vmatpush3.msra.mxu1 %v4131_v7 }
0x186f   : > { %4744 = vmatprep.subr.mxu1 %v4953_v41 }
0x1870   : > { %4745 = vmatpush3.msra.mxu1 %v4130_v0 }
0x1871   : > { %4746 = vmatprep.subr.mxu1 %v4953_v41 }
0x1872   : > { %4747 = vmatpush3.msra.mxu1 %v4129_v1 }
0x1873   : > { %4748 = vmatprep.subr.mxu1 %v4953_v41 }
0x1874   : > { %4749 = vmatpush3.msra.mxu1 %v4128_v2 }
0x1925   : > { %v4505_v58 = vpop.f32.mrf.mxu1 }
0x1927   : > { %v4506_v61 = vpop.f32.mrf.mxu1 }
0x1928   : > { %v4507_v62 = vadd.f32 %v4506_v61, %v4505_v58 }
0x192a   : > { %v4036_v43 = vadd.f32 %v4507_v62, %v3957_v59 }
0x192c   : > { %v4039_v63 = vmax.f32 %v4036_v43, 0.0 }
0x192e   : > { %4732 = vmatmul.mubr.f32.vlgmr.msra.gmra.mxu0 %v4039_v63 }
0x19ee   : > { %v4123_v4 = vpop.f32.mrf.mxu0 }
0x19ef   : > { %v4124_v5 = vadd.f32 %v4123_v4, %v4056_v3 }
0x19f0   : > { %v4733_v6 = vpop.f32.mrf.mxu0 }
0x19f1   : > { %v4127_v8 = vmax.f32 %v4124_v5, 0.0 }
0x19f3   : > { %4751 = vmatmul.mubr.msk.f32.vlgmr.msra.gmra.mxu1 %vm4137_vm7, %v4127_v8 }
0x1ab3   : > { %v4207_v11 = vpop.f32.mrf.mxu1 }
0x1ab4   : > { %v4208_v12 = vadd.f32 %v4207_v11, %v4136_v9 }
0x1ab5   : > { %v4752_v41 = vpop.f32.mrf.mxu1 }
0x1ab6   : > { %4212 = vst.msk [vmem:[%s5336_s10] sm:$0x1] %vm4211_vm8, %v4208_v12 }
0x1ab7   : > { %4861 = shalt.err (!%p4858_p3)
}
0x1ab8   : > { %s4862_s10 = scalar_lea.hbm %s5814_s26, 16  ;;  %s4866_s27 = scalar_lea.hbm %s5174_s30, 32 }
0x1ab9   : > { %p4863_p4 = scmp.ne.s32.totalorder %s5814_s26, %s4862_s10  ;;  %p4867_p9 = scmp.lt.s32.totalorder %s5814_s26, %s5174_s30 }
0x1aba   : > { %p4868_p10 = scmp.lt.s32.totalorder %s4866_s27, %s4862_s10 }
0x1abb   : > { %p4864_p7 = pnand %p4863_p4, %p5214_p5 }
0x1abc   : > { %p4869_p11 = por %p4868_p10, %p4867_p9 }
0x1abd   : > { %p4865_p8 = pneg %p4864_p7 }
0x1abf   : > { %p4870_p12 = pnand %p4869_p11, %p4865_p8 }
0x1ac1   : > { %4873 = shalt.err (!%p4870_p12)
}
0x1ac2   : > { %4753 = dma.vmem_to_hbm [thread:$0]  (%p5214_p5), %s4227_s18, 16, %s5814_s26, %s4214_s16  }
0x1ac3 PF: > { %p4759_p13 = scmp.ge.s32.totalorder %s4910_s7, 2  ;;  %s4238_s15 = sand.u32 1, %s4898_s28  }
0x1ac4   : > { %s4239_s9 = scalar_lea.sflag [#allocation7], %s4238_s15 }
0x1ac5   : > { %p4756_p0 = pnand %p4759_p13, %p5218_p6 }
0x1ac7   : > { %p4757_p1 = pneg %p4756_p0 }
0x1ac9   : > { %4893 = dma.done.wait (%p4757_p1), %s4239_s9, 16  }
0x1aca   : > { %4895 = vsyncadd (%p4757_p1), %s4239_s9, 4294967280  ;;  %s5958_s17 = sld [smem:[#allocation43_spill]]  ;;  %p91_p2 = scmp.ge.s32.totalorder %s5201_s11, 4  }
0x1acb   : > { %s5959_s28 = smov %s4902_s1  ;;  %s5960_s1 = smov %s4906_s2 }
0x1acc   : > { %s5962_s7 = smov %s5201_s11  ;;  %93 = sbr.rel (!%p91_p2) target bundleno = 81 (0x51), region = 296 }
0x1ad0   : > { %s5961_s2 = smov %s5958_s17 }
0x1ad1   :  { %4243 = vsyncpa [#allocation7], 1 }
0x1ad2   :  { %4245 = vsyncpa [#allocation7 + $0x1], 1 }
0x1ad3   :  { %4246 = vsyncmov [#allocation5] }
0x1ad6   :  { %s4247_s7 = vpop.sfrf %4246 }
0x1ad7   :  { %p4392_p5 = scmp.ne.s32.totalorder %s4247_s7, 0 }
0x1ad9   :  { %4251 = shalt.err (%p4392_p5)  }

</bundles_post_ra>
